<compile_context>
chip_gen: v7x
topology: tpu7x:2x2x1
jax: 0.10.0
libtpu: 0.0.40
codegen_flags: <defaults>
</compile_context>

<pallas_src>
import functools

import jax
import jax.numpy as jnp
from jax.experimental import pallas as pl
from jax.experimental.pallas import tpu as pltpu


def _round_up(x, m):
    return (x + m - 1) // m * m


# ----------------------------------------------------------------------------
# Kernel
# ----------------------------------------------------------------------------
def _lstm_classifier_kernel(
    x_ref,      # (B, 1, Tc, D_in)  f32   streamed chunk of the input
    wih0_ref,   # (D_in, 4*Hp)      bf16
    whh0_ref,   # (Hp,   4*Hp)      bf16
    b0_ref,     # (1,    4*Hp)      f32   (b_ih_l0 + b_hh_l0, gate-padded)
    w1_ref,     # (2*Hp, 4*Hp)      bf16  ([W_ih_l1; W_hh_l1] stacked)
    b1_ref,     # (1,    4*Hp)      f32   (b_ih_l1 + b_hh_l1, gate-padded)
    fc1w_ref,   # (Hp, H)           bf16
    fc1b_ref,   # (1, H)            f32
    fc2w_ref,   # (H, C)            bf16
    fc2b_ref,   # (1, C)            f32
    out_ref,    # (B, C)            f32
    h0_ref, c0_ref, h1_ref, c1_ref,   # (B, Hp) f32 carried LSTM state
    *,
    hidden_pad: int,
):
    Hp = hidden_pad
    G = 4 * Hp
    B, _, Tc, D = x_ref.shape
    chunk = pl.program_id(0)
    cdt = jnp.bfloat16   # MXU operand dtype; accumulate + gate math in f32

    # --- init carried state on the first chunk --------------------------------
    @pl.when(chunk == 0)
    def _init():
        z = jnp.zeros((B, Hp), jnp.float32)
        h0_ref[...] = z
        c0_ref[...] = z
        h1_ref[...] = z
        c1_ref[...] = z

    # --- hoisted layer-0 input projection: ONE big MXU matmul per chunk -------
    xblk = x_ref[...].reshape(B * Tc, D).astype(cdt)            # rows: b*Tc + s
    xp = jnp.dot(xblk, wih0_ref[...], preferred_element_type=jnp.float32)
    xp = (xp + b0_ref[...]).reshape(B, Tc, G)                   # bias folded once

    # Hoist the layer-1 bias broadcast out of the recurrent loop.
    b1b = jnp.broadcast_to(b1_ref[...], (B, G))

    def cell(gates, c):
        # PyTorch gate order i, f, g, o; each gate occupies a lane-aligned
        # Hp-wide block, so these slices are aligned views (no relayout).
        i_g = jax.nn.sigmoid(gates[:, 0 * Hp:1 * Hp])
        f_g = jax.nn.sigmoid(gates[:, 1 * Hp:2 * Hp])
        g_g = jnp.tanh(gates[:, 2 * Hp:3 * Hp])
        o_g = jax.nn.sigmoid(gates[:, 3 * Hp:4 * Hp])
        c_new = f_g * c + i_g * g_g
        h_new = o_g * jnp.tanh(c_new)
        return h_new, c_new

    h0 = h0_ref[...]
    c0 = c0_ref[...]
    h1 = h1_ref[...]
    c1 = c1_ref[...]

    # Fully unrolled recurrence (Tc static & small): per step only one small
    # matmul for layer 0 (h0 @ Whh0) and one fused matmul for layer 1.
    for s in range(Tc):
        g0 = xp[:, s, :] + jnp.dot(h0.astype(cdt), whh0_ref[...],
                                   preferred_element_type=jnp.float32)
        h0, c0 = cell(g0, c0)
        hh = jnp.concatenate([h0, h1], axis=1).astype(cdt)       # (B, 2*Hp)
        g1 = jnp.dot(hh, w1_ref[...],
                     preferred_element_type=jnp.float32) + b1b
        h1, c1 = cell(g1, c1)

    h0_ref[...] = h0
    c0_ref[...] = c0
    h1_ref[...] = h1
    c1_ref[...] = c1

    # --- classifier head on the last chunk only -------------------------------
    @pl.when(chunk == pl.num_programs(0) - 1)
    def _head():
        z = jnp.dot(h1.astype(cdt), fc1w_ref[...],
                    preferred_element_type=jnp.float32) + fc1b_ref[...]
        z = jnp.maximum(z, 0.0)
        # Dropout(p=0.5) is identity in eval mode (matches model.eval()).
        logits = jnp.dot(z.astype(cdt), fc2w_ref[...],
                         preferred_element_type=jnp.float32) + fc2b_ref[...]
        out_ref[...] = logits.astype(out_ref.dtype)


# ----------------------------------------------------------------------------
# Wrapper (weight prep + pallas_call)
# ----------------------------------------------------------------------------
def _pad_gate_cols(w, H, Hp):
    """(rows, 4H) -> (rows, 4*Hp): each gate block zero-padded to Hp lanes."""
    rows = w.shape[0]
    w4 = w.reshape(rows, 4, H)
    out = jnp.zeros((rows, 4, Hp), w.dtype).at[:, :, :H].set(w4)
    return out.reshape(rows, 4 * Hp)


def _pad_rows(w, rows_p):
    rows, cols = w.shape
    return jnp.zeros((rows_p, cols), w.dtype).at[:rows, :].set(w)


def pose_classifier_forward(x, params, *, hidden_size, time_chunk=None):
    """x: (B, T, D_in) float32, batch_first like the PyTorch module."""
    B, T, D_in = x.shape
    H = hidden_size
    C = params["fc2_w"].shape[0]
    Hp = _round_up(H, 128)      # lane-aligned gate blocks
    G = 4 * Hp

    # Pick a time-chunk length that divides T (streaming grid over chunks).
    if time_chunk is None:
        time_chunk = next(c for c in (32, 16, 8, 4, 2, 1) if T % c == 0)
    assert T % time_chunk == 0, "time_chunk must divide T"
    Tc = time_chunk
    nC = T // Tc

    wdt = jnp.bfloat16   # MXU operand dtype for weights (f32 accumulation)

    # Weight prep (glue, not the hot path): transpose to (in, out) layout, pad
    # gate blocks to Hp lanes, pad contraction rows to Hp, fold LSTM biases.
    wih0 = _pad_gate_cols(params["w_ih_l0"].T, H, Hp).astype(wdt)                   # (D_in, G)
    whh0 = _pad_rows(_pad_gate_cols(params["w_hh_l0"].T, H, Hp), Hp).astype(wdt)    # (Hp,  G)
    b0 = _pad_gate_cols((params["b_ih_l0"] + params["b_hh_l0"]).reshape(1, 4 * H),
                        H, Hp).astype(jnp.float32)                                  # (1,   G)
    wih1 = _pad_rows(_pad_gate_cols(params["w_ih_l1"].T, H, Hp), Hp)
    whh1 = _pad_rows(_pad_gate_cols(params["w_hh_l1"].T, H, Hp), Hp)
    w1 = jnp.concatenate([wih1, whh1], axis=0).astype(wdt)                          # (2Hp, G)
    b1 = _pad_gate_cols((params["b_ih_l1"] + params["b_hh_l1"]).reshape(1, 4 * H),
                        H, Hp).astype(jnp.float32)                                  # (1,   G)
    fc1w = _pad_rows(params["fc1_w"].T, Hp).astype(wdt)                             # (Hp,  H)
    fc1b = params["fc1_b"].reshape(1, H).astype(jnp.float32)
    fc2w = params["fc2_w"].T.astype(wdt)                                            # (H,   C)
    fc2b = params["fc2_b"].reshape(1, C).astype(jnp.float32)

    # Free metadata reshape only (no HBM transpose pass over x).
    x_chunks = x.astype(jnp.float32).reshape(B, nC, Tc, D_in)

    kernel = functools.partial(_lstm_classifier_kernel, hidden_pad=Hp)

    const2 = lambda c: (0, 0)
    in_specs = [
        pl.BlockSpec((B, 1, Tc, D_in), lambda c: (0, c, 0, 0)),  # streamed x chunk
        pl.BlockSpec((D_in, G), const2),
        pl.BlockSpec((Hp, G), const2),
        pl.BlockSpec((1, G), const2),
        pl.BlockSpec((2 * Hp, G), const2),
        pl.BlockSpec((1, G), const2),
        pl.BlockSpec((Hp, H), const2),
        pl.BlockSpec((1, H), const2),
        pl.BlockSpec((H, C), const2),
        pl.BlockSpec((1, C), const2),
    ]
    out_spec = pl.BlockSpec((B, C), const2)
    scratch = [pltpu.VMEM((B, Hp), jnp.float32) for _ in range(4)]

    # Conservative VMEM budget with generous headroom.
    nbytes = lambda a: a.size * a.dtype.itemsize
    resident = (sum(nbytes(a) for a in (wih0, whh0, b0, w1, b1, fc1w, fc1b, fc2w, fc2b))
                + 2 * B * Tc * D_in * 4          # double-buffered x chunk (f32)
                + 4 * B * Hp * 4                 # carried h/c scratch
                + B * Tc * G * 4                 # per-chunk input projection
                + 2 * B * C * 4)                 # output block
    vmem_limit = int(min(max(4 * resident, 32 * 1024 * 1024), 48 * 1024 * 1024))

    return pl.pallas_call(
        kernel,
        out_shape=jax.ShapeDtypeStruct((B, C), jnp.float32),
        grid_spec=pltpu.PrefetchScalarGridSpec(
            num_scalar_prefetch=0,
            grid=(nC,),
            in_specs=in_specs,
            out_specs=out_spec,
            scratch_shapes=scratch,
        ),
        compiler_params=pltpu.CompilerParams(
            dimension_semantics=("arbitrary",),   # sequential recurrence over chunks
            vmem_limit_bytes=vmem_limit,
        ),
    )(x_chunks, wih0, whh0, b0, w1, b1, fc1w, fc1b, fc2w, fc2b)


# ----------------------------------------------------------------------------
# Parameter init (mirrors PyTorch shapes) + pure-JAX reference
# ----------------------------------------------------------------------------
def init_params(key, input_size, hidden_size, num_classes):
    H = hidden_size
    k = 1.0 / jnp.sqrt(jnp.float32(H))
    keys = jax.random.split(key, 12)
    u = lambda kk, shape: jax.random.uniform(kk, shape, jnp.float32, -k, k)
    return {
        "w_ih_l0": u(keys[0], (4 * H, input_size)),
        "w_hh_l0": u(keys[1], (4 * H, H)),
        "b_ih_l0": u(keys[2], (4 * H,)),
        "b_hh_l0": u(keys[3], (4 * H,)),
        "w_ih_l1": u(keys[4], (4 * H, H)),
        "w_hh_l1": u(keys[5], (4 * H, H)),
        "b_ih_l1": u(keys[6], (4 * H,)),
        "b_hh_l1": u(keys[7], (4 * H,)),
        "fc1_w": u(keys[8], (H, H)),
        "fc1_b": u(keys[9], (H,)),
        "fc2_w": u(keys[10], (num_classes, H)),
        "fc2_b": u(keys[11], (num_classes,)),
    }


def _reference_forward(x, params):
    """Straightforward f32 JAX implementation of the PyTorch module (eval mode)."""
    B, T, _ = x.shape
    H = params["w_hh_l0"].shape[1]

    def cell(x_t, h, c, w_ih, w_hh, b_ih, b_hh):
        gates = x_t @ w_ih.T + h @ w_hh.T + b_ih + b_hh
        i, f, g, o = jnp.split(gates, 4, axis=1)
        i = jax.nn.sigmoid(i); f = jax.nn.sigmoid(f)
        g = jnp.tanh(g); o = jax.nn.sigmoid(o)
        c = f * c + i * g
        h = o * jnp.tanh(c)
        return h, c

    h0 = c0 = h1 = c1 = jnp.zeros((B, H), jnp.float32)
    for t in range(T):
        h0, c0 = cell(x[:, t, :], h0, c0, params["w_ih_l0"], params["w_hh_l0"],
                      params["b_ih_l0"], params["b_hh_l0"])
        h1, c1 = cell(h0, h1, c1, params["w_ih_l1"], params["w_hh_l1"],
                      params["b_ih_l1"], params["b_hh_l1"])
    z = jnp.maximum(h1 @ params["fc1_w"].T + params["fc1_b"], 0.0)
    return z @ params["fc2_w"].T + params["fc2_b"]


if __name__ == "__main__":
    B, T, D_IN, H, C = 2, 8, 32, 32, 8
    key = jax.random.PRNGKey(0)
    k_x, k_p = jax.random.split(key)
    x = jax.random.normal(k_x, (B, T, D_IN), dtype=jnp.float32)
    params = init_params(k_p, D_IN, H, C)

    # time_chunk=4 -> 2 grid steps: exercises the streamed-chunk state carry.
    out = pose_classifier_forward(x, params, hidden_size=H, time_chunk=4)
    out = jax.block_until_ready(out)
    assert out.shape == (B, C) and out.dtype == jnp.float32

    ref = _reference_forward(x, params)
    max_err = float(jnp.max(jnp.abs(out - ref)))
    assert max_err < 5e-2, f"kernel/reference mismatch: max_err={max_err}"
    print("KERNEL_OK")
</pallas_src>

<mosaic_0001>
module attributes {stable_mosaic.version = 11 : i64} {
  func.func @_lstm_classifier_kernel(%arg0: i32, %arg1: memref<2x1x4x32xf32, #tpu.memory_space<vmem>>, %arg2: memref<32x512xbf16, #tpu.memory_space<vmem>>, %arg3: memref<128x512xbf16, #tpu.memory_space<vmem>>, %arg4: memref<1x512xf32, #tpu.memory_space<vmem>>, %arg5: memref<256x512xbf16, #tpu.memory_space<vmem>>, %arg6: memref<1x512xf32, #tpu.memory_space<vmem>>, %arg7: memref<128x32xbf16, #tpu.memory_space<vmem>>, %arg8: memref<1x32xf32, #tpu.memory_space<vmem>>, %arg9: memref<32x8xbf16, #tpu.memory_space<vmem>>, %arg10: memref<1x8xf32, #tpu.memory_space<vmem>>, %arg11: memref<2x8xf32, #tpu.memory_space<vmem>>, %arg12: memref<2x128xf32, #tpu.memory_space<vmem>>, %arg13: memref<2x128xf32, #tpu.memory_space<vmem>>, %arg14: memref<2x128xf32, #tpu.memory_space<vmem>>, %arg15: memref<2x128xf32, #tpu.memory_space<vmem>>) attributes {dimension_semantics = [#tpu.dimension_semantics<arbitrary>], iteration_bounds = array<i64: 2>, scalar_prefetch = 0 : i64, scratch_operands = 4 : i64, tpu.core_type = #tpu.core_type<tc>, window_params = [{transform_indices = @transform_0, window_bounds = array<i64: 2, 1, 4, 32>}, {pipeline_mode = #tpu.pipeline_mode<synchronous>, transform_indices = @transform_1, window_bounds = array<i64: 32, 512>}, {pipeline_mode = #tpu.pipeline_mode<synchronous>, transform_indices = @transform_2, window_bounds = array<i64: 128, 512>}, {pipeline_mode = #tpu.pipeline_mode<synchronous>, transform_indices = @transform_3, window_bounds = array<i64: 1, 512>}, {pipeline_mode = #tpu.pipeline_mode<synchronous>, transform_indices = @transform_4, window_bounds = array<i64: 256, 512>}, {pipeline_mode = #tpu.pipeline_mode<synchronous>, transform_indices = @transform_5, window_bounds = array<i64: 1, 512>}, {pipeline_mode = #tpu.pipeline_mode<synchronous>, transform_indices = @transform_6, window_bounds = array<i64: 128, 32>}, {pipeline_mode = #tpu.pipeline_mode<synchronous>, transform_indices = @transform_7, window_bounds = array<i64: 1, 32>}, {pipeline_mode = #tpu.pipeline_mode<synchronous>, transform_indices = @transform_8, window_bounds = array<i64: 32, 8>}, {pipeline_mode = #tpu.pipeline_mode<synchronous>, transform_indices = @transform_9, window_bounds = array<i64: 1, 8>}, {pipeline_mode = #tpu.pipeline_mode<synchronous>, transform_indices = @transform_10, window_bounds = array<i64: 2, 8>}]} {
    %c0_i32 = arith.constant 0 : i32
    %0 = arith.cmpi eq, %arg0, %c0_i32 : i32
    %1 = arith.extui %0 : i1 to i32
    %c0_i32_0 = arith.constant 0 : i32
    %2 = arith.cmpi ne, %1, %c0_i32_0 : i32
    scf.if %2 {
      %cst_75 = arith.constant 0.000000e+00 : f32
      %270 = vector.broadcast %cst_75 : f32 to vector<2x128xf32>
      %c0_76 = arith.constant 0 : index
      %c0_77 = arith.constant 0 : index
      %271 = vector.load %arg12[%c0_76, %c0_77] : memref<2x128xf32, #tpu.memory_space<vmem>>, vector<2x128xf32>
      tpu.vector_store %arg12[%c0_76, %c0_77], %270 {strides = array<i32>} : memref<2x128xf32, #tpu.memory_space<vmem>>, vector<2x128xf32>,
      %c0_78 = arith.constant 0 : index
      %c0_79 = arith.constant 0 : index
      %272 = vector.load %arg13[%c0_78, %c0_79] : memref<2x128xf32, #tpu.memory_space<vmem>>, vector<2x128xf32>
      tpu.vector_store %arg13[%c0_78, %c0_79], %270 {strides = array<i32>} : memref<2x128xf32, #tpu.memory_space<vmem>>, vector<2x128xf32>,
      %c0_80 = arith.constant 0 : index
      %c0_81 = arith.constant 0 : index
      %273 = vector.load %arg14[%c0_80, %c0_81] : memref<2x128xf32, #tpu.memory_space<vmem>>, vector<2x128xf32>
      tpu.vector_store %arg14[%c0_80, %c0_81], %270 {strides = array<i32>} : memref<2x128xf32, #tpu.memory_space<vmem>>, vector<2x128xf32>,
      %c0_82 = arith.constant 0 : index
      %c0_83 = arith.constant 0 : index
      %274 = vector.load %arg15[%c0_82, %c0_83] : memref<2x128xf32, #tpu.memory_space<vmem>>, vector<2x128xf32>
      tpu.vector_store %arg15[%c0_82, %c0_83], %270 {strides = array<i32>} : memref<2x128xf32, #tpu.memory_space<vmem>>, vector<2x128xf32>,
    } else {
    }
    %c0 = arith.constant 0 : index
    %c0_1 = arith.constant 0 : index
    %c0_2 = arith.constant 0 : index
    %c0_3 = arith.constant 0 : index
    %3 = vector.load %arg1[%c0, %c0_1, %c0_2, %c0_3] : memref<2x1x4x32xf32, #tpu.memory_space<vmem>>, vector<2x1x4x32xf32>
    %4 = vector.shape_cast %3 : vector<2x1x4x32xf32> to vector<8x32xf32>
    %5 = arith.truncf %4 : vector<8x32xf32> to vector<8x32xbf16>
    %c0_4 = arith.constant 0 : index
    %c0_5 = arith.constant 0 : index
    %6 = vector.load %arg2[%c0_4, %c0_5] : memref<32x512xbf16, #tpu.memory_space<vmem>>, vector<32x512xbf16>
    %cst = arith.constant dense<0.000000e+00> : vector<8x512xf32>
    %7 = tpu.matmul %5, %6, %cst {dimension_numbers = #tpu.dot_dimension_numbers<[1], [0], [0], [1], [0, 0, 1, 1], [], []>} : vector<8x32xbf16>, vector<32x512xbf16>, vector<8x512xf32> -> vector<8x512xf32>
    %c0_6 = arith.constant 0 : index
    %c0_7 = arith.constant 0 : index
    %8 = vector.load %arg4[%c0_6, %c0_7] : memref<1x512xf32, #tpu.memory_space<vmem>>, vector<1x512xf32>
    %9 = vector.broadcast %8 : vector<1x512xf32> to vector<8x512xf32>
    %10 = arith.addf %7, %9 : vector<8x512xf32>
    %11 = vector.shape_cast %10 : vector<8x512xf32> to vector<2x4x512xf32>
    %c0_8 = arith.constant 0 : index
    %c0_9 = arith.constant 0 : index
    %12 = vector.load %arg6[%c0_8, %c0_9] : memref<1x512xf32, #tpu.memory_space<vmem>>, vector<1x512xf32>
    %13 = vector.shape_cast %12 : vector<1x512xf32> to vector<1x512xf32>
    %14 = vector.broadcast %13 : vector<1x512xf32> to vector<2x512xf32>
    %c0_10 = arith.constant 0 : index
    %c0_11 = arith.constant 0 : index
    %15 = vector.load %arg12[%c0_10, %c0_11] : memref<2x128xf32, #tpu.memory_space<vmem>>, vector<2x128xf32>
    %c0_12 = arith.constant 0 : index
    %c0_13 = arith.constant 0 : index
    %16 = vector.load %arg13[%c0_12, %c0_13] : memref<2x128xf32, #tpu.memory_space<vmem>>, vector<2x128xf32>
    %c0_14 = arith.constant 0 : index
    %c0_15 = arith.constant 0 : index
    %17 = vector.load %arg14[%c0_14, %c0_15] : memref<2x128xf32, #tpu.memory_space<vmem>>, vector<2x128xf32>
    %c0_16 = arith.constant 0 : index
    %c0_17 = arith.constant 0 : index
    %18 = vector.load %arg15[%c0_16, %c0_17] : memref<2x128xf32, #tpu.memory_space<vmem>>, vector<2x128xf32>
    %19 = vector.extract_strided_slice %11 {offsets = [0, 0, 0], sizes = [2, 1, 512], strides = [1, 1, 1]} : vector<2x4x512xf32> to vector<2x1x512xf32>
    %20 = vector.shape_cast %19 : vector<2x1x512xf32> to vector<2x512xf32>
    %21 = arith.truncf %15 : vector<2x128xf32> to vector<2x128xbf16>
    %c0_18 = arith.constant 0 : index
    %c0_19 = arith.constant 0 : index
    %22 = vector.load %arg3[%c0_18, %c0_19] : memref<128x512xbf16, #tpu.memory_space<vmem>>, vector<128x512xbf16>
    %cst_20 = arith.constant dense<0.000000e+00> : vector<2x512xf32>
    %23 = tpu.matmul %21, %22, %cst_20 {dimension_numbers = #tpu.dot_dimension_numbers<[1], [0], [0], [1], [0, 0, 1, 1], [], []>} : vector<2x128xbf16>, vector<128x512xbf16>, vector<2x512xf32> -> vector<2x512xf32>
    %24 = arith.addf %20, %23 : vector<2x512xf32>
    %25 = vector.extract_strided_slice %24 {offsets = [0, 0], sizes = [2, 128], strides = [1, 1]} : vector<2x512xf32> to vector<2x128xf32>
    %26 = arith.negf %25 : vector<2x128xf32>
    %27 = math.exp %26 : vector<2x128xf32>
    %cst_21 = arith.constant 1.000000e+00 : f32
    %28 = vector.broadcast %cst_21 : f32 to vector<2x128xf32>
    %29 = arith.addf %28, %27 : vector<2x128xf32>
    %30 = arith.divf %28, %29 : vector<2x128xf32>
    %31 = vector.extract_strided_slice %24 {offsets = [0, 128], sizes = [2, 128], strides = [1, 1]} : vector<2x512xf32> to vector<2x128xf32>
    %32 = arith.negf %31 : vector<2x128xf32>
    %33 = math.exp %32 : vector<2x128xf32>
    %cst_22 = arith.constant 1.000000e+00 : f32
    %34 = vector.broadcast %cst_22 : f32 to vector<2x128xf32>
    %35 = arith.addf %34, %33 : vector<2x128xf32>
    %36 = arith.divf %34, %35 : vector<2x128xf32>
    %37 = vector.extract_strided_slice %24 {offsets = [0, 256], sizes = [2, 128], strides = [1, 1]} : vector<2x512xf32> to vector<2x128xf32>
    %38 = math.tanh %37 : vector<2x128xf32>
    %39 = vector.extract_strided_slice %24 {offsets = [0, 384], sizes = [2, 128], strides = [1, 1]} : vector<2x512xf32> to vector<2x128xf32>
    %40 = arith.negf %39 : vector<2x128xf32>
    %41 = math.exp %40 : vector<2x128xf32>
    %cst_23 = arith.constant 1.000000e+00 : f32
    %42 = vector.broadcast %cst_23 : f32 to vector<2x128xf32>
    %43 = arith.addf %42, %41 : vector<2x128xf32>
    %44 = arith.divf %42, %43 : vector<2x128xf32>
    %45 = arith.mulf %36, %16 : vector<2x128xf32>
    %46 = arith.mulf %30, %38 : vector<2x128xf32>
    %47 = arith.addf %45, %46 : vector<2x128xf32>
    %48 = math.tanh %47 : vector<2x128xf32>
    %49 = arith.mulf %44, %48 : vector<2x128xf32>
    %50 = tpu.concatenate %49, %17 in 1 : vector<2x128xf32>, vector<2x128xf32> -> vector<2x256xf32>
    %51 = arith.truncf %50 : vector<2x256xf32> to vector<2x256xbf16>
    %c0_24 = arith.constant 0 : index
    %c0_25 = arith.constant 0 : index
    %52 = vector.load %arg5[%c0_24, %c0_25] : memref<256x512xbf16, #tpu.memory_space<vmem>>, vector<256x512xbf16>
    %cst_26 = arith.constant dense<0.000000e+00> : vector<2x512xf32>
    %53 = tpu.matmul %51, %52, %cst_26 {dimension_numbers = #tpu.dot_dimension_numbers<[1], [0], [0], [1], [0, 0, 1, 1], [], []>} : vector<2x256xbf16>, vector<256x512xbf16>, vector<2x512xf32> -> vector<2x512xf32>
    %54 = arith.addf %53, %14 : vector<2x512xf32>
    %55 = vector.extract_strided_slice %54 {offsets = [0, 0], sizes = [2, 128], strides = [1, 1]} : vector<2x512xf32> to vector<2x128xf32>
    %56 = arith.negf %55 : vector<2x128xf32>
    %57 = math.exp %56 : vector<2x128xf32>
    %cst_27 = arith.constant 1.000000e+00 : f32
    %58 = vector.broadcast %cst_27 : f32 to vector<2x128xf32>
    %59 = arith.addf %58, %57 : vector<2x128xf32>
    %60 = arith.divf %58, %59 : vector<2x128xf32>
    %61 = vector.extract_strided_slice %54 {offsets = [0, 128], sizes = [2, 128], strides = [1, 1]} : vector<2x512xf32> to vector<2x128xf32>
    %62 = arith.negf %61 : vector<2x128xf32>
    %63 = math.exp %62 : vector<2x128xf32>
    %cst_28 = arith.constant 1.000000e+00 : f32
    %64 = vector.broadcast %cst_28 : f32 to vector<2x128xf32>
    %65 = arith.addf %64, %63 : vector<2x128xf32>
    %66 = arith.divf %64, %65 : vector<2x128xf32>
    %67 = vector.extract_strided_slice %54 {offsets = [0, 256], sizes = [2, 128], strides = [1, 1]} : vector<2x512xf32> to vector<2x128xf32>
    %68 = math.tanh %67 : vector<2x128xf32>
    %69 = vector.extract_strided_slice %54 {offsets = [0, 384], sizes = [2, 128], strides = [1, 1]} : vector<2x512xf32> to vector<2x128xf32>
    %70 = arith.negf %69 : vector<2x128xf32>
    %71 = math.exp %70 : vector<2x128xf32>
    %cst_29 = arith.constant 1.000000e+00 : f32
    %72 = vector.broadcast %cst_29 : f32 to vector<2x128xf32>
    %73 = arith.addf %72, %71 : vector<2x128xf32>
    %74 = arith.divf %72, %73 : vector<2x128xf32>
    %75 = arith.mulf %66, %18 : vector<2x128xf32>
    %76 = arith.mulf %60, %68 : vector<2x128xf32>
    %77 = arith.addf %75, %76 : vector<2x128xf32>
    %78 = math.tanh %77 : vector<2x128xf32>
    %79 = arith.mulf %74, %78 : vector<2x128xf32>
    %80 = vector.extract_strided_slice %11 {offsets = [0, 1, 0], sizes = [2, 1, 512], strides = [1, 1, 1]} : vector<2x4x512xf32> to vector<2x1x512xf32>
    %81 = vector.shape_cast %80 : vector<2x1x512xf32> to vector<2x512xf32>
    %82 = arith.truncf %49 : vector<2x128xf32> to vector<2x128xbf16>
    %c0_30 = arith.constant 0 : index
    %c0_31 = arith.constant 0 : index
    %83 = vector.load %arg3[%c0_30, %c0_31] : memref<128x512xbf16, #tpu.memory_space<vmem>>, vector<128x512xbf16>
    %cst_32 = arith.constant dense<0.000000e+00> : vector<2x512xf32>
    %84 = tpu.matmul %82, %83, %cst_32 {dimension_numbers = #tpu.dot_dimension_numbers<[1], [0], [0], [1], [0, 0, 1, 1], [], []>} : vector<2x128xbf16>, vector<128x512xbf16>, vector<2x512xf32> -> vector<2x512xf32>
    %85 = arith.addf %81, %84 : vector<2x512xf32>
    %86 = vector.extract_strided_slice %85 {offsets = [0, 0], sizes = [2, 128], strides = [1, 1]} : vector<2x512xf32> to vector<2x128xf32>
    %87 = arith.negf %86 : vector<2x128xf32>
    %88 = math.exp %87 : vector<2x128xf32>
    %cst_33 = arith.constant 1.000000e+00 : f32
    %89 = vector.broadcast %cst_33 : f32 to vector<2x128xf32>
    %90 = arith.addf %89, %88 : vector<2x128xf32>
    %91 = arith.divf %89, %90 : vector<2x128xf32>
    %92 = vector.extract_strided_slice %85 {offsets = [0, 128], sizes = [2, 128], strides = [1, 1]} : vector<2x512xf32> to vector<2x128xf32>
    %93 = arith.negf %92 : vector<2x128xf32>
    %94 = math.exp %93 : vector<2x128xf32>
    %cst_34 = arith.constant 1.000000e+00 : f32
    %95 = vector.broadcast %cst_34 : f32 to vector<2x128xf32>
    %96 = arith.addf %95, %94 : vector<2x128xf32>
    %97 = arith.divf %95, %96 : vector<2x128xf32>
    %98 = vector.extract_strided_slice %85 {offsets = [0, 256], sizes = [2, 128], strides = [1, 1]} : vector<2x512xf32> to vector<2x128xf32>
    %99 = math.tanh %98 : vector<2x128xf32>
    %100 = vector.extract_strided_slice %85 {offsets = [0, 384], sizes = [2, 128], strides = [1, 1]} : vector<2x512xf32> to vector<2x128xf32>
    %101 = arith.negf %100 : vector<2x128xf32>
    %102 = math.exp %101 : vector<2x128xf32>
    %cst_35 = arith.constant 1.000000e+00 : f32
    %103 = vector.broadcast %cst_35 : f32 to vector<2x128xf32>
    %104 = arith.addf %103, %102 : vector<2x128xf32>
    %105 = arith.divf %103, %104 : vector<2x128xf32>
    %106 = arith.mulf %97, %47 : vector<2x128xf32>
    %107 = arith.mulf %91, %99 : vector<2x128xf32>
    %108 = arith.addf %106, %107 : vector<2x128xf32>
    %109 = math.tanh %108 : vector<2x128xf32>
    %110 = arith.mulf %105, %109 : vector<2x128xf32>
    %111 = tpu.concatenate %110, %79 in 1 : vector<2x128xf32>, vector<2x128xf32> -> vector<2x256xf32>
    %112 = arith.truncf %111 : vector<2x256xf32> to vector<2x256xbf16>
    %c0_36 = arith.constant 0 : index
    %c0_37 = arith.constant 0 : index
    %113 = vector.load %arg5[%c0_36, %c0_37] : memref<256x512xbf16, #tpu.memory_space<vmem>>, vector<256x512xbf16>
    %cst_38 = arith.constant dense<0.000000e+00> : vector<2x512xf32>
    %114 = tpu.matmul %112, %113, %cst_38 {dimension_numbers = #tpu.dot_dimension_numbers<[1], [0], [0], [1], [0, 0, 1, 1], [], []>} : vector<2x256xbf16>, vector<256x512xbf16>, vector<2x512xf32> -> vector<2x512xf32>
    %115 = arith.addf %114, %14 : vector<2x512xf32>
    %116 = vector.extract_strided_slice %115 {offsets = [0, 0], sizes = [2, 128], strides = [1, 1]} : vector<2x512xf32> to vector<2x128xf32>
    %117 = arith.negf %116 : vector<2x128xf32>
    %118 = math.exp %117 : vector<2x128xf32>
    %cst_39 = arith.constant 1.000000e+00 : f32
    %119 = vector.broadcast %cst_39 : f32 to vector<2x128xf32>
    %120 = arith.addf %119, %118 : vector<2x128xf32>
    %121 = arith.divf %119, %120 : vector<2x128xf32>
    %122 = vector.extract_strided_slice %115 {offsets = [0, 128], sizes = [2, 128], strides = [1, 1]} : vector<2x512xf32> to vector<2x128xf32>
    %123 = arith.negf %122 : vector<2x128xf32>
    %124 = math.exp %123 : vector<2x128xf32>
    %cst_40 = arith.constant 1.000000e+00 : f32
    %125 = vector.broadcast %cst_40 : f32 to vector<2x128xf32>
    %126 = arith.addf %125, %124 : vector<2x128xf32>
    %127 = arith.divf %125, %126 : vector<2x128xf32>
    %128 = vector.extract_strided_slice %115 {offsets = [0, 256], sizes = [2, 128], strides = [1, 1]} : vector<2x512xf32> to vector<2x128xf32>
    %129 = math.tanh %128 : vector<2x128xf32>
    %130 = vector.extract_strided_slice %115 {offsets = [0, 384], sizes = [2, 128], strides = [1, 1]} : vector<2x512xf32> to vector<2x128xf32>
    %131 = arith.negf %130 : vector<2x128xf32>
    %132 = math.exp %131 : vector<2x128xf32>
    %cst_41 = arith.constant 1.000000e+00 : f32
    %133 = vector.broadcast %cst_41 : f32 to vector<2x128xf32>
    %134 = arith.addf %133, %132 : vector<2x128xf32>
    %135 = arith.divf %133, %134 : vector<2x128xf32>
    %136 = arith.mulf %127, %77 : vector<2x128xf32>
    %137 = arith.mulf %121, %129 : vector<2x128xf32>
    %138 = arith.addf %136, %137 : vector<2x128xf32>
    %139 = math.tanh %138 : vector<2x128xf32>
    %140 = arith.mulf %135, %139 : vector<2x128xf32>
    %141 = vector.extract_strided_slice %11 {offsets = [0, 2, 0], sizes = [2, 1, 512], strides = [1, 1, 1]} : vector<2x4x512xf32> to vector<2x1x512xf32>
    %142 = vector.shape_cast %141 : vector<2x1x512xf32> to vector<2x512xf32>
    %143 = arith.truncf %110 : vector<2x128xf32> to vector<2x128xbf16>
    %c0_42 = arith.constant 0 : index
    %c0_43 = arith.constant 0 : index
    %144 = vector.load %arg3[%c0_42, %c0_43] : memref<128x512xbf16, #tpu.memory_space<vmem>>, vector<128x512xbf16>
    %cst_44 = arith.constant dense<0.000000e+00> : vector<2x512xf32>
    %145 = tpu.matmul %143, %144, %cst_44 {dimension_numbers = #tpu.dot_dimension_numbers<[1], [0], [0], [1], [0, 0, 1, 1], [], []>} : vector<2x128xbf16>, vector<128x512xbf16>, vector<2x512xf32> -> vector<2x512xf32>
    %146 = arith.addf %142, %145 : vector<2x512xf32>
    %147 = vector.extract_strided_slice %146 {offsets = [0, 0], sizes = [2, 128], strides = [1, 1]} : vector<2x512xf32> to vector<2x128xf32>
    %148 = arith.negf %147 : vector<2x128xf32>
    %149 = math.exp %148 : vector<2x128xf32>
    %cst_45 = arith.constant 1.000000e+00 : f32
    %150 = vector.broadcast %cst_45 : f32 to vector<2x128xf32>
    %151 = arith.addf %150, %149 : vector<2x128xf32>
    %152 = arith.divf %150, %151 : vector<2x128xf32>
    %153 = vector.extract_strided_slice %146 {offsets = [0, 128], sizes = [2, 128], strides = [1, 1]} : vector<2x512xf32> to vector<2x128xf32>
    %154 = arith.negf %153 : vector<2x128xf32>
    %155 = math.exp %154 : vector<2x128xf32>
    %cst_46 = arith.constant 1.000000e+00 : f32
    %156 = vector.broadcast %cst_46 : f32 to vector<2x128xf32>
    %157 = arith.addf %156, %155 : vector<2x128xf32>
    %158 = arith.divf %156, %157 : vector<2x128xf32>
    %159 = vector.extract_strided_slice %146 {offsets = [0, 256], sizes = [2, 128], strides = [1, 1]} : vector<2x512xf32> to vector<2x128xf32>
    %160 = math.tanh %159 : vector<2x128xf32>
    %161 = vector.extract_strided_slice %146 {offsets = [0, 384], sizes = [2, 128], strides = [1, 1]} : vector<2x512xf32> to vector<2x128xf32>
    %162 = arith.negf %161 : vector<2x128xf32>
    %163 = math.exp %162 : vector<2x128xf32>
    %cst_47 = arith.constant 1.000000e+00 : f32
    %164 = vector.broadcast %cst_47 : f32 to vector<2x128xf32>
    %165 = arith.addf %164, %163 : vector<2x128xf32>
    %166 = arith.divf %164, %165 : vector<2x128xf32>
    %167 = arith.mulf %158, %108 : vector<2x128xf32>
    %168 = arith.mulf %152, %160 : vector<2x128xf32>
    %169 = arith.addf %167, %168 : vector<2x128xf32>
    %170 = math.tanh %169 : vector<2x128xf32>
    %171 = arith.mulf %166, %170 : vector<2x128xf32>
    %172 = tpu.concatenate %171, %140 in 1 : vector<2x128xf32>, vector<2x128xf32> -> vector<2x256xf32>
    %173 = arith.truncf %172 : vector<2x256xf32> to vector<2x256xbf16>
    %c0_48 = arith.constant 0 : index
    %c0_49 = arith.constant 0 : index
    %174 = vector.load %arg5[%c0_48, %c0_49] : memref<256x512xbf16, #tpu.memory_space<vmem>>, vector<256x512xbf16>
    %cst_50 = arith.constant dense<0.000000e+00> : vector<2x512xf32>
    %175 = tpu.matmul %173, %174, %cst_50 {dimension_numbers = #tpu.dot_dimension_numbers<[1], [0], [0], [1], [0, 0, 1, 1], [], []>} : vector<2x256xbf16>, vector<256x512xbf16>, vector<2x512xf32> -> vector<2x512xf32>
    %176 = arith.addf %175, %14 : vector<2x512xf32>
    %177 = vector.extract_strided_slice %176 {offsets = [0, 0], sizes = [2, 128], strides = [1, 1]} : vector<2x512xf32> to vector<2x128xf32>
    %178 = arith.negf %177 : vector<2x128xf32>
    %179 = math.exp %178 : vector<2x128xf32>
    %cst_51 = arith.constant 1.000000e+00 : f32
    %180 = vector.broadcast %cst_51 : f32 to vector<2x128xf32>
    %181 = arith.addf %180, %179 : vector<2x128xf32>
    %182 = arith.divf %180, %181 : vector<2x128xf32>
    %183 = vector.extract_strided_slice %176 {offsets = [0, 128], sizes = [2, 128], strides = [1, 1]} : vector<2x512xf32> to vector<2x128xf32>
    %184 = arith.negf %183 : vector<2x128xf32>
    %185 = math.exp %184 : vector<2x128xf32>
    %cst_52 = arith.constant 1.000000e+00 : f32
    %186 = vector.broadcast %cst_52 : f32 to vector<2x128xf32>
    %187 = arith.addf %186, %185 : vector<2x128xf32>
    %188 = arith.divf %186, %187 : vector<2x128xf32>
    %189 = vector.extract_strided_slice %176 {offsets = [0, 256], sizes = [2, 128], strides = [1, 1]} : vector<2x512xf32> to vector<2x128xf32>
    %190 = math.tanh %189 : vector<2x128xf32>
    %191 = vector.extract_strided_slice %176 {offsets = [0, 384], sizes = [2, 128], strides = [1, 1]} : vector<2x512xf32> to vector<2x128xf32>
    %192 = arith.negf %191 : vector<2x128xf32>
    %193 = math.exp %192 : vector<2x128xf32>
    %cst_53 = arith.constant 1.000000e+00 : f32
    %194 = vector.broadcast %cst_53 : f32 to vector<2x128xf32>
    %195 = arith.addf %194, %193 : vector<2x128xf32>
    %196 = arith.divf %194, %195 : vector<2x128xf32>
    %197 = arith.mulf %188, %138 : vector<2x128xf32>
    %198 = arith.mulf %182, %190 : vector<2x128xf32>
    %199 = arith.addf %197, %198 : vector<2x128xf32>
    %200 = math.tanh %199 : vector<2x128xf32>
    %201 = arith.mulf %196, %200 : vector<2x128xf32>
    %202 = vector.extract_strided_slice %11 {offsets = [0, 3, 0], sizes = [2, 1, 512], strides = [1, 1, 1]} : vector<2x4x512xf32> to vector<2x1x512xf32>
    %203 = vector.shape_cast %202 : vector<2x1x512xf32> to vector<2x512xf32>
    %204 = arith.truncf %171 : vector<2x128xf32> to vector<2x128xbf16>
    %c0_54 = arith.constant 0 : index
    %c0_55 = arith.constant 0 : index
    %205 = vector.load %arg3[%c0_54, %c0_55] : memref<128x512xbf16, #tpu.memory_space<vmem>>, vector<128x512xbf16>
    %cst_56 = arith.constant dense<0.000000e+00> : vector<2x512xf32>
    %206 = tpu.matmul %204, %205, %cst_56 {dimension_numbers = #tpu.dot_dimension_numbers<[1], [0], [0], [1], [0, 0, 1, 1], [], []>} : vector<2x128xbf16>, vector<128x512xbf16>, vector<2x512xf32> -> vector<2x512xf32>
    %207 = arith.addf %203, %206 : vector<2x512xf32>
    %208 = vector.extract_strided_slice %207 {offsets = [0, 0], sizes = [2, 128], strides = [1, 1]} : vector<2x512xf32> to vector<2x128xf32>
    %209 = arith.negf %208 : vector<2x128xf32>
    %210 = math.exp %209 : vector<2x128xf32>
    %cst_57 = arith.constant 1.000000e+00 : f32
    %211 = vector.broadcast %cst_57 : f32 to vector<2x128xf32>
    %212 = arith.addf %211, %210 : vector<2x128xf32>
    %213 = arith.divf %211, %212 : vector<2x128xf32>
    %214 = vector.extract_strided_slice %207 {offsets = [0, 128], sizes = [2, 128], strides = [1, 1]} : vector<2x512xf32> to vector<2x128xf32>
    %215 = arith.negf %214 : vector<2x128xf32>
    %216 = math.exp %215 : vector<2x128xf32>
    %cst_58 = arith.constant 1.000000e+00 : f32
    %217 = vector.broadcast %cst_58 : f32 to vector<2x128xf32>
    %218 = arith.addf %217, %216 : vector<2x128xf32>
    %219 = arith.divf %217, %218 : vector<2x128xf32>
    %220 = vector.extract_strided_slice %207 {offsets = [0, 256], sizes = [2, 128], strides = [1, 1]} : vector<2x512xf32> to vector<2x128xf32>
    %221 = math.tanh %220 : vector<2x128xf32>
    %222 = vector.extract_strided_slice %207 {offsets = [0, 384], sizes = [2, 128], strides = [1, 1]} : vector<2x512xf32> to vector<2x128xf32>
    %223 = arith.negf %222 : vector<2x128xf32>
    %224 = math.exp %223 : vector<2x128xf32>
    %cst_59 = arith.constant 1.000000e+00 : f32
    %225 = vector.broadcast %cst_59 : f32 to vector<2x128xf32>
    %226 = arith.addf %225, %224 : vector<2x128xf32>
    %227 = arith.divf %225, %226 : vector<2x128xf32>
    %228 = arith.mulf %219, %169 : vector<2x128xf32>
    %229 = arith.mulf %213, %221 : vector<2x128xf32>
    %230 = arith.addf %228, %229 : vector<2x128xf32>
    %231 = math.tanh %230 : vector<2x128xf32>
    %232 = arith.mulf %227, %231 : vector<2x128xf32>
    %233 = tpu.concatenate %232, %201 in 1 : vector<2x128xf32>, vector<2x128xf32> -> vector<2x256xf32>
    %234 = arith.truncf %233 : vector<2x256xf32> to vector<2x256xbf16>
    %c0_60 = arith.constant 0 : index
    %c0_61 = arith.constant 0 : index
    %235 = vector.load %arg5[%c0_60, %c0_61] : memref<256x512xbf16, #tpu.memory_space<vmem>>, vector<256x512xbf16>
    %cst_62 = arith.constant dense<0.000000e+00> : vector<2x512xf32>
    %236 = tpu.matmul %234, %235, %cst_62 {dimension_numbers = #tpu.dot_dimension_numbers<[1], [0], [0], [1], [0, 0, 1, 1], [], []>} : vector<2x256xbf16>, vector<256x512xbf16>, vector<2x512xf32> -> vector<2x512xf32>
    %237 = arith.addf %236, %14 : vector<2x512xf32>
    %238 = vector.extract_strided_slice %237 {offsets = [0, 0], sizes = [2, 128], strides = [1, 1]} : vector<2x512xf32> to vector<2x128xf32>
    %239 = arith.negf %238 : vector<2x128xf32>
    %240 = math.exp %239 : vector<2x128xf32>
    %cst_63 = arith.constant 1.000000e+00 : f32
    %241 = vector.broadcast %cst_63 : f32 to vector<2x128xf32>
    %242 = arith.addf %241, %240 : vector<2x128xf32>
    %243 = arith.divf %241, %242 : vector<2x128xf32>
    %244 = vector.extract_strided_slice %237 {offsets = [0, 128], sizes = [2, 128], strides = [1, 1]} : vector<2x512xf32> to vector<2x128xf32>
    %245 = arith.negf %244 : vector<2x128xf32>
    %246 = math.exp %245 : vector<2x128xf32>
    %cst_64 = arith.constant 1.000000e+00 : f32
    %247 = vector.broadcast %cst_64 : f32 to vector<2x128xf32>
    %248 = arith.addf %247, %246 : vector<2x128xf32>
    %249 = arith.divf %247, %248 : vector<2x128xf32>
    %250 = vector.extract_strided_slice %237 {offsets = [0, 256], sizes = [2, 128], strides = [1, 1]} : vector<2x512xf32> to vector<2x128xf32>
    %251 = math.tanh %250 : vector<2x128xf32>
    %252 = vector.extract_strided_slice %237 {offsets = [0, 384], sizes = [2, 128], strides = [1, 1]} : vector<2x512xf32> to vector<2x128xf32>
    %253 = arith.negf %252 : vector<2x128xf32>
    %254 = math.exp %253 : vector<2x128xf32>
    %cst_65 = arith.constant 1.000000e+00 : f32
    %255 = vector.broadcast %cst_65 : f32 to vector<2x128xf32>
    %256 = arith.addf %255, %254 : vector<2x128xf32>
    %257 = arith.divf %255, %256 : vector<2x128xf32>
    %258 = arith.mulf %249, %199 : vector<2x128xf32>
    %259 = arith.mulf %243, %251 : vector<2x128xf32>
    %260 = arith.addf %258, %259 : vector<2x128xf32>
    %261 = math.tanh %260 : vector<2x128xf32>
    %262 = arith.mulf %257, %261 : vector<2x128xf32>
    %c0_66 = arith.constant 0 : index
    %c0_67 = arith.constant 0 : index
    %263 = vector.load %arg12[%c0_66, %c0_67] : memref<2x128xf32, #tpu.memory_space<vmem>>, vector<2x128xf32>
    tpu.vector_store %arg12[%c0_66, %c0_67], %232 {strides = array<i32>} : memref<2x128xf32, #tpu.memory_space<vmem>>, vector<2x128xf32>,
    %c0_68 = arith.constant 0 : index
    %c0_69 = arith.constant 0 : index
    %264 = vector.load %arg13[%c0_68, %c0_69] : memref<2x128xf32, #tpu.memory_space<vmem>>, vector<2x128xf32>
    tpu.vector_store %arg13[%c0_68, %c0_69], %230 {strides = array<i32>} : memref<2x128xf32, #tpu.memory_space<vmem>>, vector<2x128xf32>,
    %c0_70 = arith.constant 0 : index
    %c0_71 = arith.constant 0 : index
    %265 = vector.load %arg14[%c0_70, %c0_71] : memref<2x128xf32, #tpu.memory_space<vmem>>, vector<2x128xf32>
    tpu.vector_store %arg14[%c0_70, %c0_71], %262 {strides = array<i32>} : memref<2x128xf32, #tpu.memory_space<vmem>>, vector<2x128xf32>,
    %c0_72 = arith.constant 0 : index
    %c0_73 = arith.constant 0 : index
    %266 = vector.load %arg15[%c0_72, %c0_73] : memref<2x128xf32, #tpu.memory_space<vmem>>, vector<2x128xf32>
    tpu.vector_store %arg15[%c0_72, %c0_73], %260 {strides = array<i32>} : memref<2x128xf32, #tpu.memory_space<vmem>>, vector<2x128xf32>,
    %c1_i32 = arith.constant 1 : i32
    %267 = arith.cmpi eq, %arg0, %c1_i32 : i32
    %268 = arith.extui %267 : i1 to i32
    %c0_i32_74 = arith.constant 0 : i32
    %269 = arith.cmpi ne, %268, %c0_i32_74 : i32
    scf.if %269 {
      %270 = arith.truncf %262 : vector<2x128xf32> to vector<2x128xbf16>
      %c0_75 = arith.constant 0 : index
      %c0_76 = arith.constant 0 : index
      %271 = vector.load %arg7[%c0_75, %c0_76] : memref<128x32xbf16, #tpu.memory_space<vmem>>, vector<128x32xbf16>
      %cst_77 = arith.constant dense<0.000000e+00> : vector<2x32xf32>
      %272 = tpu.matmul %270, %271, %cst_77 {dimension_numbers = #tpu.dot_dimension_numbers<[1], [0], [0], [1], [0, 0, 1, 1], [], []>} : vector<2x128xbf16>, vector<128x32xbf16>, vector<2x32xf32> -> vector<2x32xf32>
      %c0_78 = arith.constant 0 : index
      %c0_79 = arith.constant 0 : index
      %273 = vector.load %arg8[%c0_78, %c0_79] : memref<1x32xf32, #tpu.memory_space<vmem>>, vector<1x32xf32>
      %274 = vector.broadcast %273 : vector<1x32xf32> to vector<2x32xf32>
      %275 = arith.addf %272, %274 : vector<2x32xf32>
      %cst_80 = arith.constant 0.000000e+00 : f32
      %276 = vector.broadcast %cst_80 : f32 to vector<2x32xf32>
      %277 = arith.maximumf %275, %276 : vector<2x32xf32>
      %278 = arith.truncf %277 : vector<2x32xf32> to vector<2x32xbf16>
      %c0_81 = arith.constant 0 : index
      %c0_82 = arith.constant 0 : index
      %279 = vector.load %arg9[%c0_81, %c0_82] : memref<32x8xbf16, #tpu.memory_space<vmem>>, vector<32x8xbf16>
      %cst_83 = arith.constant dense<0.000000e+00> : vector<2x8xf32>
      %280 = tpu.matmul %278, %279, %cst_83 {dimension_numbers = #tpu.dot_dimension_numbers<[1], [0], [0], [1], [0, 0, 1, 1], [], []>} : vector<2x32xbf16>, vector<32x8xbf16>, vector<2x8xf32> -> vector<2x8xf32>
      %c0_84 = arith.constant 0 : index
      %c0_85 = arith.constant 0 : index
      %281 = vector.load %arg10[%c0_84, %c0_85] : memref<1x8xf32, #tpu.memory_space<vmem>>, vector<1x8xf32>
      %282 = vector.broadcast %281 : vector<1x8xf32> to vector<2x8xf32>
      %283 = arith.addf %280, %282 : vector<2x8xf32>
      %c0_86 = arith.constant 0 : index
      %c0_87 = arith.constant 0 : index
      %284 = vector.load %arg11[%c0_86, %c0_87] : memref<2x8xf32, #tpu.memory_space<vmem>>, vector<2x8xf32>
      tpu.vector_store %arg11[%c0_86, %c0_87], %283 {strides = array<i32>} : memref<2x8xf32, #tpu.memory_space<vmem>>, vector<2x8xf32>,
    } else {
    }
    return
  }
  func.func @transform_0(%arg0: i32) -> (i32, i32, i32, i32) {
    %c0_i32 = arith.constant 0 : i32
    %c0_i32_0 = arith.constant 0 : i32
    %c0_i32_1 = arith.constant 0 : i32
    %c0_i32_2 = arith.constant 0 : i32
    return %c0_i32, %arg0, %c0_i32_0, %c0_i32_1 : i32, i32, i32, i32
  }
  func.func @transform_1(%arg0: i32) -> (i32, i32) {
    %c0_i32 = arith.constant 0 : i32
    %c0_i32_0 = arith.constant 0 : i32
    %c0_i32_1 = arith.constant 0 : i32
    return %c0_i32, %c0_i32_0 : i32, i32
  }
  func.func @transform_2(%arg0: i32) -> (i32, i32) {
    %c0_i32 = arith.constant 0 : i32
    %c0_i32_0 = arith.constant 0 : i32
    %c0_i32_1 = arith.constant 0 : i32
    return %c0_i32, %c0_i32_0 : i32, i32
  }
  func.func @transform_3(%arg0: i32) -> (i32, i32) {
    %c0_i32 = arith.constant 0 : i32
    %c0_i32_0 = arith.constant 0 : i32
    %c0_i32_1 = arith.constant 0 : i32
    return %c0_i32, %c0_i32_0 : i32, i32
  }
  func.func @transform_4(%arg0: i32) -> (i32, i32) {
    %c0_i32 = arith.constant 0 : i32
    %c0_i32_0 = arith.constant 0 : i32
    %c0_i32_1 = arith.constant 0 : i32
    return %c0_i32, %c0_i32_0 : i32, i32
  }
  func.func @transform_5(%arg0: i32) -> (i32, i32) {
    %c0_i32 = arith.constant 0 : i32
    %c0_i32_0 = arith.constant 0 : i32
    %c0_i32_1 = arith.constant 0 : i32
    return %c0_i32, %c0_i32_0 : i32, i32
  }
  func.func @transform_6(%arg0: i32) -> (i32, i32) {
    %c0_i32 = arith.constant 0 : i32
    %c0_i32_0 = arith.constant 0 : i32
    %c0_i32_1 = arith.constant 0 : i32
    return %c0_i32, %c0_i32_0 : i32, i32
  }
  func.func @transform_7(%arg0: i32) -> (i32, i32) {
    %c0_i32 = arith.constant 0 : i32
    %c0_i32_0 = arith.constant 0 : i32
    %c0_i32_1 = arith.constant 0 : i32
    return %c0_i32, %c0_i32_0 : i32, i32
  }
  func.func @transform_8(%arg0: i32) -> (i32, i32) {
    %c0_i32 = arith.constant 0 : i32
    %c0_i32_0 = arith.constant 0 : i32
    %c0_i32_1 = arith.constant 0 : i32
    return %c0_i32, %c0_i32_0 : i32, i32
  }
  func.func @transform_9(%arg0: i32) -> (i32, i32) {
    %c0_i32 = arith.constant 0 : i32
    %c0_i32_0 = arith.constant 0 : i32
    %c0_i32_1 = arith.constant 0 : i32
    return %c0_i32, %c0_i32_0 : i32, i32
  }
  func.func @transform_10(%arg0: i32) -> (i32, i32) {
    %c0_i32 = arith.constant 0 : i32
    %c0_i32_0 = arith.constant 0 : i32
    %c0_i32_1 = arith.constant 0 : i32
    return %c0_i32, %c0_i32_0 : i32, i32
  }
}

</mosaic_0001>

<bundles_post_ra>
// kernel: tpu_custom_call.1
= control target key start
LH: loop header
LB: loop body
LE: loop exit
PB: predicated region body
PF: predicated region fallthrough
CT: control target
= control target key end

     0   :  { %15 = vsyncpa [#allocation8], 0  ;;  %s4588_s0 = inlined_call_operand.vmem [shape: f32[2,2,4,32], index: 0, kind: input, shape index: {}]   ;;  %s4589_s1 = inlined_call_operand.vmem [shape: bf16[32,512], index: 1, kind: input, shape index: {}]   ;;  %s4590_s2 = inlined_call_operand.hbm [shape: bf16[128,512], index: 2, kind: input, shape index: {}]   ;;  %s4591_s3 = inlined_call_operand.vmem [shape: f32[1,512], index: 3, kind: input, shape index: {}]   ;;  %s4592_s4 = inlined_call_operand.hbm [shape: bf16[256,512], index: 4, kind: input, shape index: {}]   ;;  %s4593_s5 = inlined_call_operand.vmem [shape: f32[1,512], index: 5, kind: input, shape index: {}]   ;;  %s4594_s6 = inlined_call_operand.vmem [shape: bf16[128,32], index: 6, kind: input, shape index: {}]   ;;  %s4595_s7 = inlined_call_operand.vmem [shape: f32[1,32], index: 7, kind: input, shape index: {}]   ;;  %s4596_s8 = inlined_call_operand.vmem [shape: bf16[32,8], index: 8, kind: input, shape index: {}]   ;;  %s4597_s9 = inlined_call_operand.vmem [shape: f32[1,8], index: 9, kind: input, shape index: {}]   ;;  %s4598_s10 = inlined_call_operand.hbm [shape: f32[2,8], index: 10, kind: output, shape index: {}]  }
   0x1   :  { %16 = vsyncpa [#allocation11], 0 }
   0x2   :  { %17 = vsyncpa [#allocation9], 0  ;;  %s3613_s13 = smov 0   ;;  %s3615_s14 = smov 0  }
   0x3   :  { %s3617_s15 = smov 0  }
   0x4 LB: > { %s3629_s16 = sadd.s32 4294967295, %s3547_s15   ;;  %s3632_s17 = sadd.s32 1, %s3547_s15   ;;  %s3547_s15 = sphi %s3617_s15, %s4957_s15   ;;  %s3543_s14 = sphi %s3615_s14, %s4960_s14   ;;  %s3539_s13 = sphi %s3613_s13, %s4959_s13  }
   0x5   : > { %4751 = sst [smem:[#allocation16_spill]] %s3632_s17  ;;  %s27_s18 = ssub.s32 %s3547_s15, %s3632_s17 }
   0x6   : > { %s30_s19 = sadd.s32 1, %s3543_s14  ;;  %p28_p0 = scmp.eq.s32.totalorder %s27_s18, 0 }
   0x7   : > { %p37_p1 = scmp.ne.s32.totalorder %s3543_s14, %s3539_s13  ;;  %p38_p2 = scmp.eq.s32.totalorder %s3547_s15, 0 }
   0x8   : > { %p2707_p3 = scmp.ge.s32.totalorder %s3547_s15, 1  ;;  %p264_p5 = scmp.lt.s32.totalorder %s3547_s15, 3 }
   0x9   : > { %s3642_s20 = scalar_select %p28_p0, %s3543_s14, %s30_s19  }
   0xa   : > { %p3644_p4 = por %p38_p2, %p37_p1  ;;  %p4599_p7 = scmp.eq.s32.totalorder %s3629_s16, 0 }
   0xb   : > { %4752 = sst [smem:[#allocation17_spill]] %s3642_s20  ;;  %p3651_p8 = pnand %p2707_p3, %p264_p5 }
   0xc   : > { %s4753_s21 = scalar_select %p3644_p4, 1, 0 }
   0xd   : > { %s4754_s22 = scalar_select %p3651_p8, 1, 0 }
   0xe   : > { %s3549_s23 = smov [#allocation7]   ;;  %p2930_p9 = pneg %p3651_p8 }
   0xf   : > { %s279_s24 = sshll.u32 %s3549_s23, 4  ;;  %s3550_s26 = smov [#allocation10]   ;;  %s280_s24 = int_to_ptr.vmem [resolvable:$true] %s279_s24 }
  0x10   : > { %p3659_p10 = pnand %p4599_p7, %p2930_p9  ;;  %s295_s27 = sshll.u32 %s3550_s26, 4  ;;  %s3663_s27 = int_to_ptr.vmem [resolvable:$true] %s295_s27 }
  0x11   : > { %s3431_s30 = scalar_lea.hbm %s4590_s2, 4096 }
  0x12   : > { %p3432_p11 = scmp.ne.s32.totalorder %s4590_s2, %s3431_s30  ;;  %p3433_p12 = pneg %p3659_p10 }
  0x13   : > { %p3438_p1 = scmp.lt.u32.totalorder %s3431_s30, %s4590_s2 }
  0x14   : > { %p3434_p13 = pnand %p3433_p12, %p3432_p11 }
  0x16   : > { %p3435_p0 = pneg %p3434_p13 }
  0x18   : > { %p3440_p2 = pnand %p3438_p1, %p3435_p0 }
  0x1a   : > { %3443 = shalt.err (!%p3440_p2)
}
  0x1b   : > { %s3444_s23 = scalar_lea.vmem %s280_s24, 4096  ;;  %p3452_p6 = scmp.lt.s32.totalorder %s280_s24, %s280_s24 }
  0x1c   : > { %p3445_p3 = scmp.ne.s32.totalorder %s280_s24, %s3444_s23  ;;  %p3453_p7 = scmp.lt.s32.totalorder %s3444_s23, %s3444_s23 }
  0x1e   : > { %p3447_p5 = pnand %p3445_p3, %p3433_p12  ;;  %p3454_p8 = por %p3453_p7, %p3452_p6 }
  0x20   : > { %p3448_p9 = pneg %p3447_p5 }
  0x22   : > { %p3455_p4 = pnand %p3454_p8, %p3448_p9 }
  0x24   : > { %3458 = shalt.err (!%p3455_p4)
}
  0x25   : > { %s3551_s26 = smov 256   ;;  %s3552_s28 = smov 16  }
  0x26   : > { %2933 = dma.hbm_to_vmem [thread:$0]  (!%p3659_p10), %s4590_s2, 4096, %s280_s24, [#allocation8], %s3551_s26, %s3551_s26, %s3552_s28  }
  0x27   : > { %s3459_s18 = scalar_lea.hbm %s4592_s4, 8192 }
  0x28   : > { %p3460_p11 = scmp.ne.s32.totalorder %s4592_s4, %s3459_s18  ;;  %p3466_p7 = scmp.lt.u32.totalorder %s3459_s18, %s4592_s4 }
  0x2a   : > { %p3462_p4 = pnand %p3460_p11, %p3433_p12 }
  0x2c   : > { %p3463_p6 = pneg %p3462_p4 }
  0x2e   : > { %p3468_p8 = pnand %p3466_p7, %p3463_p6 }
  0x30   : > { %3471 = shalt.err (!%p3468_p8)
}
  0x31   : > { %s3472_s24 = scalar_lea.vmem %s3663_s27, 8192  ;;  %p3480_p2 = scmp.lt.s32.totalorder %s3663_s27, %s3663_s27 }
  0x32   : > { %p3473_p13 = scmp.ne.s32.totalorder %s3663_s27, %s3472_s24  ;;  %p3481_p3 = scmp.lt.s32.totalorder %s3472_s24, %s3472_s24 }
  0x34   : > { %p3475_p0 = pnand %p3473_p13, %p3433_p12  ;;  %p3482_p5 = por %p3481_p3, %p3480_p2 }
  0x36   : > { %p3476_p1 = pneg %p3475_p0 }
  0x38   : > { %p3483_p9 = pnand %p3482_p5, %p3476_p1 }
  0x3a   : > { %3486 = shalt.err (!%p3483_p9)
}
  0x3b   : > { %2936 = dma.hbm_to_vmem [thread:$0]  (!%p3659_p10), %s4592_s4, 8192, %s3663_s27, [#allocation11], %s3551_s26, %s3551_s26, %s3552_s28  }
  0x3c   : > { %p2710_p11 = scmp.ge.s32.totalorder %s3547_s15, 2 }
  0x3d   : > { %p4756_p4 = scmp.ne.s32.totalorder (!%p2710_p11), %s4753_s21, 0 }
  0x3e   : > { %320 = sbr.rel (%p2710_p11) target bundleno = 76 (0x4c), region = 52 }
  0x45   : > { %323 = sbr.rel (!%p4756_p4) target bundleno = 76 (0x4c), region = 56  ;;  %s325_s29 = sand.u32 (%p4756_p4), 1, %s3543_s14  }
  0x46   : > { %s2712_s30 = sshll.u32 (%p4756_p4), %s3547_s15, 2  ;;  %s2711_s11 = sshll.u32 (%p4756_p4), %s325_s29, 3 }
  0x47   : > { %s329_s25 = scalar_lea.vmem (%p4756_p4), %s4588_s0, %s2712_s30  ;;  %s327_s19 = scalar_lea.vmem (%p4756_p4), [#allocation6], %s2711_s11 }
  0x48   : > { %v345_v0 = vld [vmem:[%s329_s25] sm:$0xf] (%p4756_p4)  ;;  %v347_v1 = vld [vmem:[%s329_s25 + $0x8] sm:$0xf] (%p4756_p4) }
  0x49   : > { %346 = vst [vmem:[%s327_s19] sm:$0xf] (%p4756_p4), %v345_v0  ;;  %348 = vst [vmem:[%s327_s19 + $0x4] sm:$0xf] (%p4756_p4), %v347_v1 }
  0x4c PF: > { %p4757_p10 = scmp.ne.s32.totalorder %s4754_s22, 0 }
  0x4e   : > { %378 = sbr.rel (%p4757_p10) target bundleno = 2059 (0x80b), region = 97 }
  0x55   : > { %s381_s21 = sand.u32 1, %s3539_s13   ;;  %p4758_p12 = scmp.eq.s32.totalorder %s3629_s16, 0 }
  0x56   : > { %s3723_s27 = sshll.u32 %s381_s21, 3 }
  0x57   : > { %s383_s15 = scalar_lea.vmem [#allocation6], %s3723_s27 }
  0x58   : > { %3526 = dma.done.wait (%p4758_p12), [#allocation8], 4096   ;;  %p4759_p6 = pmov %p4758_p12 }
  0x5a   : > { %3528 = vsyncadd (%p4759_p6), [#allocation8], 4294963200  ;;  %p4760_p7 = pmov %p4759_p6 }
  0x5b   : > { %p4761_p8 = pmov %p4759_p6 }
  0x5c   : > { %3530 = dma.done.wait (%p4760_p7), [#allocation11], 8192  }
  0x5d   : > { %3532 = vsyncadd (%p4761_p8), [#allocation11], 4294959104  ;;  %p4762_p13 = scmp.ne.s32.totalorder %s3629_s16, 0 }
  0x5e   : > { %v3553_v2 = vmov (!%p4762_p13), 0.0  }
  0x5f   : > { %425 = sbr.rel (%p4762_p13) target bundleno = 102 (0x66), region = 113  ;;  %426 = vst [vmem:[#allocation2] sm:$0x3] (!%p4762_p13), %v3553_v2  ;;  %427 = vst [vmem:[#allocation3] sm:$0x3] (!%p4762_p13), %v3553_v2 }
  0x60   : > { %428 = vst [vmem:[#allocation4] sm:$0x3] (!%p4762_p13), %v3553_v2  ;;  %429 = vst [vmem:[#allocation5] sm:$0x3] (!%p4762_p13), %v3553_v2 }
  0x66 PF: > { %v2976_v3 = vld [vmem:[%s4589_s1 + $0x4] ss:$16 sps:$4 sm:$0xff]   ;;  %v2978_v4 = vld [vmem:[%s4589_s1 + $0xc] ss:$16 sps:$4 sm:$0xff]   ;;  %v4603_v5 = vmov 0   ;;  %vm507_vm0 = vcmask 261120  }
  0x67   : > { %543 = vmatprep.mubr.bf16.mxu0 %v4603_v5  ;;  %584 = vmatprep.mubr.bf16.mxu1 %v4603_v5  ;;  %v2980_v6 = vld [vmem:[%s4589_s1] ss:$16 sps:$4 sm:$0xff]   ;;  %v2981_v7 = vld [vmem:[%s4589_s1 + $0x8] ss:$16 sps:$4 sm:$0xff]   ;;  %v2982_v8 = vld [vmem:[%s4589_s1 + $0x24] ss:$16 sps:$4 sm:$0xff]  }
  0x68   : > { %511 = vmatprep.subr.bf16.mxu0 %v2976_v3  ;;  %552 = vmatprep.subr.bf16.mxu1 %v2978_v4  ;;  %v2984_v9 = vld [vmem:[%s4589_s1 + $0x2c] ss:$16 sps:$4 sm:$0xff]   ;;  %v2986_v10 = vld [vmem:[%s4589_s1 + $0x20] ss:$16 sps:$4 sm:$0xff]   ;;  %v2987_v11 = vld [vmem:[%s4589_s1 + $0x28] ss:$16 sps:$4 sm:$0xff]  }
  0x69   : > { %512 = vmatpush1.bf16.msra.mxu0 %v2980_v6  ;;  %553 = vmatpush1.bf16.msra.mxu1 %v2981_v7  ;;  %v2988_v12 = vld [vmem:[%s383_s15] sm:$0xff]   ;;  %v627_v46 = vld [vmem:[#allocation2] sm:$0x3]  ;;  %vm996_vm1 = vcmask 1041409   ;;  %vm1675_vm2 = vcmask 1042434   ;;  %vm1991_vm3 = vcmask 1043459  }
  0x6a   : > { %513 = vmatprep.subr.bf16.mxu0 %v2982_v8  ;;  %554 = vmatprep.subr.bf16.mxu1 %v2984_v9  ;;  %v3762_v13 = vld [vmem:[#allocation7 + $0x4] ss:$16 sps:$4 sm:$0xff]   ;;  %v436_v14 = vpack.c.bf16 %v2988_v12, %v2988_v12  ;;  %v3764_v15 = vld [vmem:[#allocation7 + $0xc] ss:$16 sps:$4 sm:$0xff]   ;;  %v3766_v16 = vld [vmem:[#allocation7] ss:$16 sps:$4 sm:$0xff]   ;;  %v631_v47 = vpack.c.bf16 %v627_v46, %v627_v46 }
  0x6b   : > { %4763 = vst [vmem:[#allocation18_spill] sm:$0xff] %v3764_v15  ;;  %v3768_v17 = vld [vmem:[#allocation7 + $0x8] ss:$16 sps:$4 sm:$0xff]   ;;  %v3771_v18 = vld [vmem:[#allocation7 + $0x24] ss:$16 sps:$4 sm:$0xff]   ;;  %vm2298_vm4 = vcmask 1044484  }
  0x6c   : > { %v3774_v19 = vld [vmem:[#allocation7 + $0x2c] ss:$16 sps:$4 sm:$0xff]   ;;  %v3778_v20 = vld [vmem:[#allocation7 + $0x20] ss:$16 sps:$4 sm:$0xff]   ;;  %v3782_v21 = vld [vmem:[#allocation7 + $0x28] ss:$16 sps:$4 sm:$0xff]  }
  0x6d   : > { %514 = vmatpush1.bf16.msra.mxu0 %v2986_v10  ;;  %555 = vmatpush1.bf16.msra.mxu1 %v2987_v11  ;;  %v3786_v22 = vld [vmem:[#allocation7 + $0x44] ss:$16 sps:$4 sm:$0xff]   ;;  %v3788_v23 = vld [vmem:[#allocation7 + $0x4c] ss:$16 sps:$4 sm:$0xff]   ;;  %v3794_v24 = vld [vmem:[#allocation7 + $0x40] ss:$16 sps:$4 sm:$0xff]  }
  0x6e   : > { %824 = vmatprep.subr.bf16.mxu0 %v3762_v13  ;;  %865 = vmatprep.subr.bf16.mxu1 %v3764_v15  ;;  %v3796_v25 = vld [vmem:[#allocation7 + $0x48] ss:$16 sps:$4 sm:$0xff]   ;;  %v3798_v26 = vld [vmem:[#allocation7 + $0x64] ss:$16 sps:$4 sm:$0xff]   ;;  %v3802_v27 = vld [vmem:[#allocation7 + $0x6c] ss:$16 sps:$4 sm:$0xff]  }
  0x6f   : > { %v3804_v28 = vld [vmem:[#allocation7 + $0x60] ss:$16 sps:$4 sm:$0xff]   ;;  %v3808_v29 = vld [vmem:[#allocation7 + $0x68] ss:$16 sps:$4 sm:$0xff]   ;;  %v3812_v30 = vld [vmem:[#allocation7 + $0x84] ss:$16 sps:$4 sm:$0xff]  }
  0x70   : > { %2726 = vmatmul.mubr.msk.bf16.vlgmr.msra.gmra.mrb[0].mxu0 %vm507_vm0, %v436_v14  ;;  %2727 = vmatmul.mubr.msk.bf16.vlgmr.msra.gmra.mrb[0].mxu1 %vm507_vm0, %v436_v14  ;;  %v3814_v31 = vld [vmem:[#allocation7 + $0x8c] ss:$16 sps:$4 sm:$0xff]   ;;  %v3818_v32 = vld [vmem:[#allocation7 + $0x80] ss:$16 sps:$4 sm:$0xff]   ;;  %v3820_v33 = vld [vmem:[#allocation7 + $0x88] ss:$16 sps:$4 sm:$0xff]  }
  0x71   : > { %825 = vmatpush1.bf16.msra.mxu0 %v3766_v16  ;;  %866 = vmatpush1.bf16.msra.mxu1 %v3768_v17  ;;  %v3822_v34 = vld [vmem:[#allocation7 + $0xa4] ss:$16 sps:$4 sm:$0xff]   ;;  %v3826_v35 = vld [vmem:[#allocation7 + $0xac] ss:$16 sps:$4 sm:$0xff]   ;;  %v3828_v36 = vld [vmem:[#allocation7 + $0xa0] ss:$16 sps:$4 sm:$0xff]  }
  0x72   : > { %826 = vmatprep.subr.bf16.mxu0 %v3771_v18  ;;  %867 = vmatprep.subr.bf16.mxu1 %v3774_v19  ;;  %v3830_v37 = vld [vmem:[#allocation7 + $0xa8] ss:$16 sps:$4 sm:$0xff]   ;;  %v3832_v38 = vld [vmem:[#allocation7 + $0xc4] ss:$16 sps:$4 sm:$0xff]   ;;  %v3836_v39 = vld [vmem:[#allocation7 + $0xcc] ss:$16 sps:$4 sm:$0xff]  }
  0x73   : > { %856 = vmatprep.mubr.bf16.mxu0 %v4603_v5  ;;  %897 = vmatprep.mubr.bf16.mxu1 %v4603_v5  ;;  %v3840_v40 = vld [vmem:[#allocation7 + $0xc0] ss:$16 sps:$4 sm:$0xff]   ;;  %v3842_v41 = vld [vmem:[#allocation7 + $0xc8] ss:$16 sps:$4 sm:$0xff]   ;;  %v3844_v42 = vld [vmem:[#allocation7 + $0xe4] ss:$16 sps:$4 sm:$0xff]  }
  0x74   : > { %v3846_v43 = vld [vmem:[#allocation7 + $0xec] ss:$16 sps:$4 sm:$0xff]   ;;  %v3852_v44 = vld [vmem:[#allocation7 + $0xe0] ss:$16 sps:$4 sm:$0xff]   ;;  %v3854_v45 = vld [vmem:[#allocation7 + $0xe8] ss:$16 sps:$4 sm:$0xff]  }
  0x75   : > { %827 = vmatpush1.bf16.msra.mxu0 %v3778_v20  ;;  %868 = vmatpush1.bf16.msra.mxu1 %v3782_v21  ;;  %v3862_v48 = vld [vmem:[#allocation10 + $0x4] ss:$16 sps:$4 sm:$0xff]   ;;  %v3864_v49 = vld [vmem:[#allocation10 + $0xc] ss:$16 sps:$4 sm:$0xff]   ;;  %v3866_v50 = vld [vmem:[#allocation10] ss:$16 sps:$4 sm:$0xff]  }
  0x76   : > { %828 = vmatprep.subr.bf16.mxu0 %v3786_v22  ;;  %869 = vmatprep.subr.bf16.mxu1 %v3788_v23  ;;  %v3868_v51 = vld [vmem:[#allocation10 + $0x8] ss:$16 sps:$4 sm:$0xff]   ;;  %v3870_v52 = vld [vmem:[#allocation10 + $0x24] ss:$16 sps:$4 sm:$0xff]   ;;  %v3874_v53 = vld [vmem:[#allocation10 + $0x2c] ss:$16 sps:$4 sm:$0xff]  }
  0x77   : > { %v3878_v54 = vld [vmem:[#allocation10 + $0x20] ss:$16 sps:$4 sm:$0xff]   ;;  %v3880_v55 = vld [vmem:[#allocation10 + $0x28] ss:$16 sps:$4 sm:$0xff]   ;;  %v3886_v56 = vld [vmem:[#allocation10 + $0x44] ss:$16 sps:$4 sm:$0xff]  }
  0x78   : > { %v3888_v57 = vld [vmem:[#allocation10 + $0x4c] ss:$16 sps:$4 sm:$0xff]   ;;  %v3890_v58 = vld [vmem:[#allocation10 + $0x40] ss:$16 sps:$4 sm:$0xff]   ;;  %v3892_v59 = vld [vmem:[#allocation10 + $0x48] ss:$16 sps:$4 sm:$0xff]  }
  0x79   : > { %829 = vmatpush1.bf16.msra.mxu0 %v3794_v24  ;;  %870 = vmatpush1.bf16.msra.mxu1 %v3796_v25  ;;  %4764 = vst [vmem:[#allocation19_spill] sm:$0xff] %v3890_v58  ;;  %4765 = vst [vmem:[#allocation20_spill] sm:$0xff] %v3892_v59  ;;  %v3898_v60 = vld [vmem:[#allocation10 + $0x64] ss:$16 sps:$4 sm:$0xff]   ;;  %v3900_v61 = vld [vmem:[#allocation10 + $0x6c] ss:$16 sps:$4 sm:$0xff]  }
  0x7a   : > { %830 = vmatprep.subr.bf16.mxu0 %v3798_v26  ;;  %871 = vmatprep.subr.bf16.mxu1 %v3802_v27  ;;  %4766 = vst [vmem:[#allocation21_spill] sm:$0xff] %v3898_v60  ;;  %4767 = vst [vmem:[#allocation22_spill] sm:$0xff] %v3900_v61  ;;  %v3902_v62 = vld [vmem:[#allocation10 + $0x60] ss:$16 sps:$4 sm:$0xff]   ;;  %v3904_v63 = vld [vmem:[#allocation10 + $0x68] ss:$16 sps:$4 sm:$0xff]  }
  0x7b   : > { %4768 = vst [vmem:[#allocation23_spill] sm:$0xff] %v3902_v62  ;;  %4769 = vst [vmem:[#allocation24_spill] sm:$0xff] %v3904_v63  ;;  %v3910_v0 = vld [vmem:[#allocation10 + $0x84] ss:$16 sps:$4 sm:$0xff]   ;;  %v3912_v1 = vld [vmem:[#allocation10 + $0x8c] ss:$16 sps:$4 sm:$0xff]  }
  0x7c   : > { %4770 = vst [vmem:[#allocation25_spill] sm:$0xff] %v3910_v0  ;;  %4771 = vst [vmem:[#allocation26_spill] sm:$0xff] %v3912_v1  ;;  %v3914_v2 = vld [vmem:[#allocation10 + $0x80] ss:$16 sps:$4 sm:$0xff]   ;;  %v3916_v3 = vld [vmem:[#allocation10 + $0x88] ss:$16 sps:$4 sm:$0xff]  }
  0x7d   : > { %831 = vmatpush1.bf16.msra.mxu0 %v3804_v28  ;;  %872 = vmatpush1.bf16.msra.mxu1 %v3808_v29  ;;  %4772 = vst [vmem:[#allocation27_spill] sm:$0xff] %v3914_v2  ;;  %4773 = vst [vmem:[#allocation28_spill] sm:$0xff] %v3916_v3  ;;  %v3922_v4 = vld [vmem:[#allocation10 + $0xa4] ss:$16 sps:$4 sm:$0xff]   ;;  %v3924_v6 = vld [vmem:[#allocation10 + $0xac] ss:$16 sps:$4 sm:$0xff]  }
  0x7e   : > { %832 = vmatprep.subr.bf16.mxu0 %v3812_v30  ;;  %873 = vmatprep.subr.bf16.mxu1 %v3814_v31  ;;  %4774 = vst [vmem:[#allocation29_spill] sm:$0xff] %v3922_v4  ;;  %4775 = vst [vmem:[#allocation30_spill] sm:$0xff] %v3924_v6  ;;  %v3926_v7 = vld [vmem:[#allocation10 + $0xa0] ss:$16 sps:$4 sm:$0xff]   ;;  %v3928_v8 = vld [vmem:[#allocation10 + $0xa8] ss:$16 sps:$4 sm:$0xff]  }
  0x7f   : > { %4776 = vst [vmem:[#allocation31_spill] sm:$0xff] %v3926_v7  ;;  %4777 = vst [vmem:[#allocation32_spill] sm:$0xff] %v3928_v8  ;;  %v3934_v9 = vld [vmem:[#allocation10 + $0xc4] ss:$16 sps:$4 sm:$0xff]   ;;  %v3936_v10 = vld [vmem:[#allocation10 + $0xcc] ss:$16 sps:$4 sm:$0xff]  }
  0x80   : > { %4778 = vst [vmem:[#allocation33_spill] sm:$0xff] %v3934_v9  ;;  %4779 = vst [vmem:[#allocation34_spill] sm:$0xff] %v3936_v10  ;;  %v3938_v11 = vld [vmem:[#allocation10 + $0xc0] ss:$16 sps:$4 sm:$0xff]   ;;  %v3940_v12 = vld [vmem:[#allocation10 + $0xc8] ss:$16 sps:$4 sm:$0xff]  }
  0x81   : > { %833 = vmatpush1.bf16.msra.mxu0 %v3818_v32  ;;  %874 = vmatpush1.bf16.msra.mxu1 %v3820_v33  ;;  %4780 = vst [vmem:[#allocation35_spill] sm:$0xff] %v3938_v11  ;;  %4781 = vst [vmem:[#allocation36_spill] sm:$0xff] %v3940_v12  ;;  %v3946_v14 = vld [vmem:[#allocation10 + $0xe4] ss:$16 sps:$4 sm:$0xff]   ;;  %v3948_v46 = vld [vmem:[#allocation10 + $0xec] ss:$16 sps:$4 sm:$0xff]  }
  0x82   : > { %834 = vmatprep.subr.bf16.mxu0 %v3822_v34  ;;  %875 = vmatprep.subr.bf16.mxu1 %v3826_v35  ;;  %4782 = vst [vmem:[#allocation37_spill] sm:$0xff] %v3946_v14  ;;  %4783 = vst [vmem:[#allocation38_spill] sm:$0xff] %v3948_v46  ;;  %v3952_v5 = vld [vmem:[#allocation10 + $0xe8] ss:$16 sps:$4 sm:$0xff]   ;;  %p2860_p0 = scmp.ne.s32.totalorder %s3629_s16, 1 }
  0x83   : > { %4785 = vst [vmem:[#allocation40_spill] sm:$0xff] %v3952_v5  ;;  %vm3556_vm5 = vmmov (!%p2860_p0), 0   ;;  %vm2630_vm6 = vcmask (!%p2860_p0), 58368  }
  0x85   : > { %835 = vmatpush1.bf16.msra.mxu0 %v3828_v36  ;;  %876 = vmatpush1.bf16.msra.mxu1 %v3830_v37 }
  0x86   : > { %836 = vmatprep.subr.bf16.mxu0 %v3832_v38  ;;  %877 = vmatprep.subr.bf16.mxu1 %v3836_v39 }
  0x89   : > { %837 = vmatpush1.bf16.msra.mxu0 %v3840_v40  ;;  %878 = vmatpush1.bf16.msra.mxu1 %v3842_v41 }
  0x8a   : > { %838 = vmatprep.subr.bf16.mxu0 %v3844_v42  ;;  %879 = vmatprep.subr.bf16.mxu1 %v3846_v43 }
  0x8d   : > { %839 = vmatpush1.bf16.msra.mxu0 %v3852_v44  ;;  %880 = vmatpush1.bf16.msra.mxu1 %v3854_v45 }
  0x8e   : > { %1385 = vmatprep.subr.bf16.mxu0 %v3862_v48  ;;  %1426 = vmatprep.subr.bf16.mxu1 %v3864_v49 }
  0x90   : > { %857 = vmatmul.mubr.bf16.vlgmr.msra.gmra.mrb[4].mxu0 %v631_v47  ;;  %898 = vmatmul.mubr.bf16.vlgmr.msra.gmra.mrb[4].mxu1 %v631_v47  ;;  %v3950_v47 = vld [vmem:[#allocation10 + $0xe0] ss:$16 sps:$4 sm:$0xff]  }
  0x91   : > { %1386 = vmatpush1.bf16.msra.mxu0 %v3866_v50  ;;  %1427 = vmatpush1.bf16.msra.mxu1 %v3868_v51  ;;  %4784 = vst [vmem:[#allocation39_spill] sm:$0xff] %v3950_v47 }
  0x92   : > { %1387 = vmatprep.subr.bf16.mxu0 %v3870_v52  ;;  %1428 = vmatprep.subr.bf16.mxu1 %v3874_v53 }
  0x95   : > { %1388 = vmatpush1.bf16.msra.mxu0 %v3878_v54  ;;  %1429 = vmatpush1.bf16.msra.mxu1 %v3880_v55 }
  0x96   : > { %1389 = vmatprep.subr.bf16.mxu0 %v3886_v56  ;;  %1430 = vmatprep.subr.bf16.mxu1 %v3888_v57 }
  0x99   : > { %1390 = vmatpush1.bf16.msra.mxu0 %v3890_v58  ;;  %1431 = vmatpush1.bf16.msra.mxu1 %v3892_v59 }
  0x9a   : > { %1391 = vmatprep.subr.bf16.mxu0 %v3898_v60  ;;  %1432 = vmatprep.subr.bf16.mxu1 %v3900_v61 }
  0x9d   : > { %1392 = vmatpush1.bf16.msra.mxu0 %v3902_v62  ;;  %1433 = vmatpush1.bf16.msra.mxu1 %v3904_v63 }
  0x9e   : > { %1393 = vmatprep.subr.bf16.mxu0 %v3910_v0  ;;  %1434 = vmatprep.subr.bf16.mxu1 %v3912_v1 }
  0xa1   : > { %1394 = vmatpush1.bf16.msra.mxu0 %v3914_v2  ;;  %1435 = vmatpush1.bf16.msra.mxu1 %v3916_v3 }
  0xa2   : > { %1395 = vmatprep.subr.bf16.mxu0 %v3922_v4  ;;  %1436 = vmatprep.subr.bf16.mxu1 %v3924_v6 }
  0xa5   : > { %1396 = vmatpush1.bf16.msra.mxu0 %v3926_v7  ;;  %1437 = vmatpush1.bf16.msra.mxu1 %v3928_v8  ;;  %v4004_v8 = vld [vmem:[#allocation10 + $0x184] ss:$16 sps:$4 sm:$0xff]  }
  0xa6   : > { %1397 = vmatprep.subr.bf16.mxu0 %v3934_v9  ;;  %1438 = vmatprep.subr.bf16.mxu1 %v3936_v10  ;;  %v3958_v10 = vld [vmem:[#allocation10 + $0x104] ss:$16 sps:$4 sm:$0xff]   ;;  %v3964_v9 = vld [vmem:[#allocation10 + $0x108] ss:$16 sps:$4 sm:$0xff]   ;;  %4802 = vst [vmem:[#allocation57_spill] sm:$0xff] %v4004_v8 }
  0xa7   : > { %4786 = vst [vmem:[#allocation41_spill] sm:$0xff] %v3958_v10  ;;  %4789 = vst [vmem:[#allocation44_spill] sm:$0xff] %v3964_v9 }
  0xa9   : > { %1398 = vmatpush1.bf16.msra.mxu0 %v3938_v11  ;;  %1439 = vmatpush1.bf16.msra.mxu1 %v3940_v12  ;;  %v3960_v11 = vld [vmem:[#allocation10 + $0x10c] ss:$16 sps:$4 sm:$0xff]   ;;  %v3962_v12 = vld [vmem:[#allocation10 + $0x100] ss:$16 sps:$4 sm:$0xff]  }
  0xaa   : > { %1399 = vmatprep.subr.bf16.mxu0 %v3946_v14  ;;  %1440 = vmatprep.subr.bf16.mxu1 %v3948_v46  ;;  %4787 = vst [vmem:[#allocation42_spill] sm:$0xff] %v3960_v11  ;;  %4788 = vst [vmem:[#allocation43_spill] sm:$0xff] %v3962_v12  ;;  %v3970_v46 = vld [vmem:[#allocation10 + $0x124] ss:$16 sps:$4 sm:$0xff]   ;;  %v3976_v14 = vld [vmem:[#allocation10 + $0x128] ss:$16 sps:$4 sm:$0xff]  }
  0xab   : > { %4790 = vst [vmem:[#allocation45_spill] sm:$0xff] %v3970_v46  ;;  %4793 = vst [vmem:[#allocation48_spill] sm:$0xff] %v3976_v14 }
  0xad   : > { %1400 = vmatpush1.bf16.msra.mxu0 %v3950_v47  ;;  %1441 = vmatpush1.bf16.msra.mxu1 %v3952_v5  ;;  %v3972_v47 = vld [vmem:[#allocation10 + $0x12c] ss:$16 sps:$4 sm:$0xff]   ;;  %v3974_v5 = vld [vmem:[#allocation10 + $0x120] ss:$16 sps:$4 sm:$0xff]  }
  0xae   : > { %1401 = vmatprep.subr.bf16.mxu0 %v3958_v10  ;;  %1442 = vmatprep.subr.bf16.mxu1 %v3960_v11  ;;  %4791 = vst [vmem:[#allocation46_spill] sm:$0xff] %v3972_v47  ;;  %4792 = vst [vmem:[#allocation47_spill] sm:$0xff] %v3974_v5  ;;  %v3982_v11 = vld [vmem:[#allocation10 + $0x144] ss:$16 sps:$4 sm:$0xff]   ;;  %v3988_v10 = vld [vmem:[#allocation10 + $0x148] ss:$16 sps:$4 sm:$0xff]  }
  0xaf   : > { %4794 = vst [vmem:[#allocation49_spill] sm:$0xff] %v3982_v11  ;;  %4797 = vst [vmem:[#allocation52_spill] sm:$0xff] %v3988_v10 }
  0xb1   : > { %1402 = vmatpush1.bf16.msra.mxu0 %v3962_v12  ;;  %1443 = vmatpush1.bf16.msra.mxu1 %v3964_v9  ;;  %v3984_v12 = vld [vmem:[#allocation10 + $0x14c] ss:$16 sps:$4 sm:$0xff]   ;;  %v3986_v9 = vld [vmem:[#allocation10 + $0x140] ss:$16 sps:$4 sm:$0xff]  }
  0xb2   : > { %1403 = vmatprep.subr.bf16.mxu0 %v3970_v46  ;;  %1444 = vmatprep.subr.bf16.mxu1 %v3972_v47  ;;  %4795 = vst [vmem:[#allocation50_spill] sm:$0xff] %v3984_v12  ;;  %4796 = vst [vmem:[#allocation51_spill] sm:$0xff] %v3986_v9  ;;  %v3994_v47 = vld [vmem:[#allocation10 + $0x164] ss:$16 sps:$4 sm:$0xff]   ;;  %v4000_v46 = vld [vmem:[#allocation10 + $0x168] ss:$16 sps:$4 sm:$0xff]  }
  0xb3   : > { %4798 = vst [vmem:[#allocation53_spill] sm:$0xff] %v3994_v47  ;;  %4801 = vst [vmem:[#allocation56_spill] sm:$0xff] %v4000_v46 }
  0xb5   : > { %1404 = vmatpush1.bf16.msra.mxu0 %v3974_v5  ;;  %1445 = vmatpush1.bf16.msra.mxu1 %v3976_v14  ;;  %v3996_v5 = vld [vmem:[#allocation10 + $0x16c] ss:$16 sps:$4 sm:$0xff]   ;;  %v3998_v14 = vld [vmem:[#allocation10 + $0x160] ss:$16 sps:$4 sm:$0xff]  }
  0xb6   : > { %1405 = vmatprep.subr.bf16.mxu0 %v3982_v11  ;;  %1446 = vmatprep.subr.bf16.mxu1 %v3984_v12  ;;  %4799 = vst [vmem:[#allocation54_spill] sm:$0xff] %v3996_v5  ;;  %4800 = vst [vmem:[#allocation55_spill] sm:$0xff] %v3998_v14  ;;  %v4006_v11 = vld [vmem:[#allocation10 + $0x18c] ss:$16 sps:$4 sm:$0xff]   ;;  %v4016_v12 = vld [vmem:[#allocation10 + $0x1a4] ss:$16 sps:$4 sm:$0xff]  }
  0xb7   : > { %4803 = vst [vmem:[#allocation58_spill] sm:$0xff] %v4006_v11  ;;  %4806 = vst [vmem:[#allocation61_spill] sm:$0xff] %v4016_v12 }
  0xb9   : > { %1406 = vmatpush1.bf16.msra.mxu0 %v3986_v9  ;;  %1447 = vmatpush1.bf16.msra.mxu1 %v3988_v10  ;;  %v4010_v10 = vld [vmem:[#allocation10 + $0x180] ss:$16 sps:$4 sm:$0xff]   ;;  %v4012_v9 = vld [vmem:[#allocation10 + $0x188] ss:$16 sps:$4 sm:$0xff]  }
  0xba   : > { %1407 = vmatprep.subr.bf16.mxu0 %v3994_v47  ;;  %1448 = vmatprep.subr.bf16.mxu1 %v3996_v5  ;;  %4804 = vst [vmem:[#allocation59_spill] sm:$0xff] %v4010_v10  ;;  %4805 = vst [vmem:[#allocation60_spill] sm:$0xff] %v4012_v9  ;;  %v4018_v47 = vld [vmem:[#allocation10 + $0x1ac] ss:$16 sps:$4 sm:$0xff]   ;;  %v4022_v5 = vld [vmem:[#allocation10 + $0x1a0] ss:$16 sps:$4 sm:$0xff]  }
  0xbb   : > { %4807 = vst [vmem:[#allocation62_spill] sm:$0xff] %v4018_v47  ;;  %4808 = vst [vmem:[#allocation63_spill] sm:$0xff] %v4022_v5 }
  0xbd   : > { %1408 = vmatpush1.bf16.msra.mxu0 %v3998_v14  ;;  %1449 = vmatpush1.bf16.msra.mxu1 %v4000_v46  ;;  %v4024_v14 = vld [vmem:[#allocation10 + $0x1a8] ss:$16 sps:$4 sm:$0xff]   ;;  %v629_v46 = vld [vmem:[#allocation4] sm:$0x3] }
  0xbe   : > { %1409 = vmatprep.subr.bf16.mxu0 %v4004_v8  ;;  %1450 = vmatprep.subr.bf16.mxu1 %v4006_v11  ;;  %4809 = vst [vmem:[#allocation64_spill] sm:$0xff] %v4024_v14  ;;  %v4028_v8 = vld [vmem:[#allocation10 + $0x1c4] ss:$16 sps:$4 sm:$0xff]   ;;  %v4030_v11 = vld [vmem:[#allocation10 + $0x1cc] ss:$16 sps:$4 sm:$0xff]   ;;  %v1000_v7 = vpack.c.bf16 %v629_v46, %v629_v46 }
  0xbf   : > { %4810 = vst [vmem:[#allocation65_spill] sm:$0xff] %v4028_v8  ;;  %4811 = vst [vmem:[#allocation66_spill] sm:$0xff] %v4030_v11  ;;  %v4048_v46 = vld [vmem:[#allocation10 + $0x1e8] ss:$16 sps:$4 sm:$0xff]  }
  0xc0   : > { %1417 = vmatprep.mubr.bf16.mxu0 %v1000_v7  ;;  %1458 = vmatprep.mubr.bf16.mxu1 %v1000_v7  ;;  %v4046_v7 = vld [vmem:[#allocation10 + $0x1e0] ss:$16 sps:$4 sm:$0xff]   ;;  %4817 = vst [vmem:[#allocation72_spill] sm:$0xff] %v4048_v46 }
  0xc1   : > { %1410 = vmatpush1.bf16.msra.mxu0 %v4010_v10  ;;  %1451 = vmatpush1.bf16.msra.mxu1 %v4012_v9  ;;  %v4034_v9 = vld [vmem:[#allocation10 + $0x1c0] ss:$16 sps:$4 sm:$0xff]   ;;  %v4036_v10 = vld [vmem:[#allocation10 + $0x1c8] ss:$16 sps:$4 sm:$0xff]   ;;  %4816 = vst [vmem:[#allocation71_spill] sm:$0xff] %v4046_v7 }
  0xc2   : > { %1411 = vmatprep.subr.bf16.mxu0 %v4016_v12  ;;  %1452 = vmatprep.subr.bf16.mxu1 %v4018_v47  ;;  %4812 = vst [vmem:[#allocation67_spill] sm:$0xff] %v4034_v9  ;;  %4813 = vst [vmem:[#allocation68_spill] sm:$0xff] %v4036_v10  ;;  %v4040_v47 = vld [vmem:[#allocation10 + $0x1e4] ss:$16 sps:$4 sm:$0xff]   ;;  %v4042_v12 = vld [vmem:[#allocation10 + $0x1ec] ss:$16 sps:$4 sm:$0xff]  }
  0xc3   : > { %4814 = vst [vmem:[#allocation69_spill] sm:$0xff] %v4040_v47  ;;  %4815 = vst [vmem:[#allocation70_spill] sm:$0xff] %v4042_v12 }
  0xc5   : > { %1412 = vmatpush1.bf16.msra.mxu0 %v4022_v5  ;;  %1453 = vmatpush1.bf16.msra.mxu1 %v4024_v14 }
  0xc6   : > { %1413 = vmatprep.subr.bf16.mxu0 %v4028_v8  ;;  %1454 = vmatprep.subr.bf16.mxu1 %v4030_v11  ;;  %v447_v11 = vlaneseq }
  0xc9   : > { %1414 = vmatpush1.bf16.msra.mxu0 %v4034_v9  ;;  %1455 = vmatpush1.bf16.msra.mxu1 %v4036_v10  ;;  %v448_v9 = vshrl.u32 %v447_v11, 7 }
  0xca   : > { %1415 = vmatprep.subr.bf16.mxu0 %v4040_v47  ;;  %1456 = vmatprep.subr.bf16.mxu1 %v4042_v12  ;;  %v445_v47 = vld [vmem:[%s4591_s3] sm:$0xf] }
  0xcb   : > { %v4056_v8 = vsub.s32 0, %v448_v9  ;;  %v4058_v10 = vsub.s32 2, %v448_v9  ;;  %v4063_v14 = vsub.s32 1, %v448_v9  ;;  %v4065_v12 = vsub.s32 3, %v448_v9 }
  0xcd   : > { %1416 = vmatpush1.bf16.msra.mxu0 %v4046_v7  ;;  %1457 = vmatpush1.bf16.msra.mxu1 %v4048_v46  ;;  %4818 = vst [vmem:[#allocation73_spill] sm:$0xff] %v4058_v10  ;;  %4819 = vst [vmem:[#allocation74_spill] sm:$0xff] %v4063_v14  ;;  %v450_v46 = vrot.slane %v445_v47, %v4056_v8  ;;  %v462_v11 = vrot.slane %v445_v47, %v4065_v12 }
  0xce   : > { %1501 = vmatprep.subr.bf16.mxu0 %v3762_v13  ;;  %1542 = vmatprep.subr.bf16.mxu1 %v3764_v15  ;;  %4820 = vst [vmem:[#allocation75_spill] sm:$0xff] %v4065_v12  ;;  %v458_v13 = vrot.slane %v445_v47, %v4058_v10  ;;  %v454_v15 = vrot.slane %v445_v47, %v4063_v14 }
 0x143   : > { %v545_v7 = vpop.f32.mrb[0].mxu0  ;;  %v586_v5 = vpop.f32.mrb[0].mxu1 }
 0x144   : > { %v546_v6 = vadd.f32 %v545_v7, %v450_v46  ;;  %v547_v4 = vpop.f32.mrb[1].mxu0  ;;  %v587_v3 = vadd.f32 %v586_v5, %v458_v13  ;;  %v588_v2 = vpop.f32.mrb[1].mxu1 }
 0x145   : > { %v548_v1 = vadd.f32 %v547_v4, %v454_v15  ;;  %v549_v0 = vpop.f32.mrb[2].mxu0  ;;  %v589_v63 = vadd.f32 %v588_v2, %v462_v11  ;;  %v590_v62 = vpop.f32.mrb[2].mxu1 }
 0x146   : > { %v550_v9 = vpop.f32.mrb[3].mxu0  ;;  %v591_v61 = vpop.f32.mrb[3].mxu1 }
 0x147   : > { %v4071_v60 = vcombine.low %v546_v6, %v548_v1  ;;  %v4073_v59 = vcombine.high %v546_v6, %v548_v1  ;;  %v4075_v10 = vcombine.low %v587_v3, %v589_v63  ;;  %v4077_v14 = vcombine.high %v587_v3, %v589_v63 }
 0x149   : > { %4821 = vst [vmem:[#allocation76_spill] sm:$0xff] %v4073_v59  ;;  %4822 = vst [vmem:[#allocation77_spill] sm:$0xff] %v4077_v14 }
 0x163   : > { %v858_v47 = vpop.f32.mrb[4].mxu0  ;;  %v899_v12 = vpop.f32.mrb[4].mxu1 }
 0x164   : > { %v860_v7 = vpop.f32.mrb[5].mxu0  ;;  %v901_v46 = vpop.f32.mrb[5].mxu1 }
 0x165   : > { %v910_v5 = vcombine.low %v858_v47, %v860_v7  ;;  %v911_v13 = vcombine.low %v899_v12, %v901_v46  ;;  %v862_v15 = vpop.f32.mrb[6].mxu0  ;;  %v903_v0 = vpop.f32.mrb[6].mxu1 }
 0x166   : > { %v863_v2 = vpop.f32.mrb[7].mxu0  ;;  %v904_v62 = vpop.f32.mrb[7].mxu1 }
 0x167   : > { %v912_v4 = vrot.slane %v910_v5, 1  ;;  %v918_v61 = vadd.f32 %v910_v5, %v4071_v60  ;;  %v913_v11 = vrot.slane %v911_v13, 1  ;;  %v919_v63 = vadd.f32 %v911_v13, %v4075_v10 }
 0x169   : > { %v920_v1 = vadd.f32 %v912_v4, %v4073_v59  ;;  %v2760_v6 = vmul.f32 -1.442695, %v918_v61  ;;  %v936_v9 = vrot.slane %v918_v61, 4  ;;  %v921_v3 = vadd.f32 %v913_v11, %v4077_v14 }
 0x16a   : > { %v956_v46 = vrot.slane %v919_v63, 4 }
 0x16b   : > { %3133 = vpow2.f32 %v2760_v6  ;;  %v2761_v58 = vmul.f32 -1.442695, %v920_v1  ;;  %v937_v47 = vrot.slane %v920_v1, 4  ;;  %v2762_v12 = vmul.f32 -1.442695, %v936_v9 }
 0x16c   : > { %v957_v15 = vrot.slane %v921_v3, 4  ;;  %v2764_v5 = vmul.f32 -1.442695, %v956_v46 }
 0x16d   : > { %3135 = vpow2.f32 %v2761_v58  ;;  %v2763_v7 = vmul.f32 -1.442695, %v937_v47  ;;  %v628_v47 = vld [vmem:[#allocation3] sm:$0x3] }
 0x16e   : > { %3137 = vpow2.f32 %v2762_v12  ;;  %v2765_v0 = vmul.f32 -1.442695, %v957_v15  ;;  %v973_v46 = vrot.slane %v628_v47, 1 }
 0x16f   : > { %3139 = vpow2.f32 %v2763_v7 }
 0x170   : > { %3141 = vtanh.f32 %v919_v63 }
 0x171   : > { %3143 = vpow2.f32 %v2764_v5 }
 0x172   : > { %3145 = vpow2.f32 %v2765_v0 }
 0x175   : > { %v3134_v2 = vpop.eup %3133 }
 0x176   : > { %v928_v62 = vadd.f32 1.0, %v3134_v2 }
 0x177   : > { %v3136_v4 = vpop.eup %3135 }
 0x178   : > { %v3138_v13 = vpop.eup %3137  ;;  %v929_v61 = vadd.f32 1.0, %v3136_v4  ;;  %3147 = vrcp.f32 %v928_v62 }
 0x179   : > { %v3140_v11 = vpop.eup %3139  ;;  %v946_v1 = vadd.f32 1.0, %v3138_v13  ;;  %3149 = vtanh.f32 %v921_v3 }
 0x17a   : > { %3151 = vrcp.f32 %v929_v61  ;;  %v947_v58 = vadd.f32 1.0, %v3140_v11  ;;  %v3142_v6 = vpop.eup %3141 }
 0x17b   : > { %3153 = vrcp.f32 %v946_v1  ;;  %v3144_v9 = vpop.eup %3143 }
 0x17c   : > { %3155 = vrcp.f32 %v947_v58  ;;  %v3146_v12 = vpop.eup %3145  ;;  %v966_v0 = vadd.f32 1.0, %v3144_v9 }
 0x17d   : > { %v967_v4 = vadd.f32 1.0, %v3146_v12 }
 0x17e   : > { %3157 = vrcp.f32 %v966_v0 }
 0x17f   : > { %3159 = vrcp.f32 %v967_v4 }
 0x182   : > { %v3148_v7 = vpop.eup %3147 }
 0x183   : > { %v3150_v63 = vpop.eup %3149  ;;  %v978_v15 = vmul.f32 %v3148_v7, %v3142_v6 }
 0x184   : > { %v3152_v5 = vpop.eup %3151 }
 0x185   : > { %v3154_v2 = vpop.eup %3153  ;;  %v979_v62 = vmul.f32 %v3152_v5, %v3150_v63 }
 0x186   : > { %v3156_v14 = vpop.eup %3155  ;;  %v976_v13 = vmul.f32 %v3154_v2, %v628_v47 }
 0x187   : > { %v977_v3 = vmul.f32 %v3156_v14, %v973_v46 }
 0x188   : > { %v4083_v61 = vadd.f32 %v978_v15, %v976_v13  ;;  %v3158_v1 = vpop.eup %3157  ;;  %v4823_v13 = vmov 0  }
 0x189   : > { %v4085_v11 = vadd.f32 %v979_v62, %v977_v3  ;;  %v3160_v58 = vpop.eup %3159  ;;  %v4863_v3 = vld [vmem:[#allocation58_spill] sm:$0xff] }
 0x18a   : > { %3161 = vtanh.f32 %v4083_v61 }
 0x18b   : > { %3163 = vtanh.f32 %v4085_v11 }
 0x194   : > { %v3162_v6 = vpop.eup %3161 }
 0x195   : > { %v3164_v9 = vpop.eup %3163  ;;  %v984_v7 = vmul.f32 %v3162_v6, %v3158_v1  ;;  %v4864_v1 = vld [vmem:[#allocation59_spill] sm:$0xff]  ;;  %v4866_v6 = vld [vmem:[#allocation61_spill] sm:$0xff] }
 0x196   : > { %v985_v12 = vmul.f32 %v3164_v9, %v3160_v58  ;;  %v4865_v58 = vld [vmem:[#allocation60_spill] sm:$0xff]  ;;  %v4867_v9 = vld [vmem:[#allocation62_spill] sm:$0xff] }
 0x197   : > { %v991_v47 = vrot.slane %v984_v7, %v4056_v8  ;;  %v1491_v63 = vpack.c.bf16 %v984_v7, %v984_v7  ;;  %v4868_v7 = vld [vmem:[#allocation63_spill] sm:$0xff] }
 0x198   : > { %v995_v14 = vrot.slane %v985_v12, %v4056_v8  ;;  %v1492_v46 = vpack.c.bf16 %v985_v12, %v985_v12  ;;  %v4869_v12 = vld [vmem:[#allocation64_spill] sm:$0xff] }
 0x199   : > { %v1495_v2 = vunpack.c.l.b16 %v1491_v63  ;;  %v4872_v63 = vld [vmem:[#allocation67_spill] sm:$0xff] }
 0x19a   : > { %v997_v15 = vsel %vm996_vm1, %v995_v14, %v991_v47  ;;  %v1496_v5 = vunpack.c.l.b16 %v1492_v46  ;;  %v4870_v47 = vld [vmem:[#allocation65_spill] sm:$0xff]  ;;  %v4871_v14 = vld [vmem:[#allocation66_spill] sm:$0xff]  ;;  %v4873_v46 = vld [vmem:[#allocation68_spill] sm:$0xff] }
 0x19b   : > { %v999_v0 = vpack.c.bf16 %v997_v15, %v997_v15  ;;  %v4874_v15 = vld [vmem:[#allocation69_spill] sm:$0xff] }
 0x19c   : > { %v1497_v4 = vrot.slane %v1496_v5, 7  ;;  %v4875_v5 = vld [vmem:[#allocation70_spill] sm:$0xff] }
 0x19d   : > { %1418 = vmatmul.mubr.bf16.vlgmr.msra.gmra.mrb[8].mxu0 %v999_v0  ;;  %1459 = vmatmul.mubr.bf16.vlgmr.msra.gmra.mrb[8].mxu1 %v999_v0  ;;  %v4876_v0 = vld [vmem:[#allocation71_spill] sm:$0xff] }
 0x19e   : > { %1502 = vmatpush1.bf16.msra.mxu0 %v3766_v16  ;;  %1543 = vmatpush1.bf16.msra.mxu1 %v3768_v17  ;;  %v1498_v62 = vsel %vm996_vm1, %v1497_v4, %v1495_v2  ;;  %v4824_v17 = vld [vmem:[#allocation19_spill] sm:$0xff]  ;;  %v4877_v2 = vld [vmem:[#allocation72_spill] sm:$0xff] }
 0x19f   : > { %1503 = vmatprep.subr.bf16.mxu0 %v3771_v18  ;;  %1544 = vmatprep.subr.bf16.mxu1 %v3774_v19  ;;  %v1499_v16 = vpack.c.b16 %v1498_v62, %v1498_v62  ;;  %v4825_v18 = vld [vmem:[#allocation20_spill] sm:$0xff]  ;;  %v4826_v19 = vld [vmem:[#allocation21_spill] sm:$0xff]  ;;  %v4879_v62 = vld [vmem:[#allocation18_spill] sm:$0xff] }
 0x1a0   : > { %1533 = vmatprep.mubr.bf16.mxu0 %v4823_v13  ;;  %1574 = vmatprep.mubr.bf16.mxu1 %v4823_v13  ;;  %v4189_v4 = vld [vmem:[#allocation7 + $0x4] ss:$16 sps:$4 sm:$0xff]  }
 0x1a1   : > { %4878 = vst [vmem:[#allocation19_spill] sm:$0xff] %v4189_v4 }
 0x1a2   : > { %1504 = vmatpush1.bf16.msra.mxu0 %v3778_v20  ;;  %1545 = vmatpush1.bf16.msra.mxu1 %v3782_v21  ;;  %v4827_v20 = vld [vmem:[#allocation22_spill] sm:$0xff]  ;;  %v4828_v21 = vld [vmem:[#allocation23_spill] sm:$0xff] }
 0x1a3   : > { %1505 = vmatprep.subr.bf16.mxu0 %v3786_v22  ;;  %1546 = vmatprep.subr.bf16.mxu1 %v3788_v23  ;;  %v4829_v22 = vld [vmem:[#allocation24_spill] sm:$0xff]  ;;  %v4830_v23 = vld [vmem:[#allocation25_spill] sm:$0xff] }
 0x1a6   : > { %1506 = vmatpush1.bf16.msra.mxu0 %v3794_v24  ;;  %1547 = vmatpush1.bf16.msra.mxu1 %v3796_v25  ;;  %v4831_v24 = vld [vmem:[#allocation26_spill] sm:$0xff]  ;;  %v4832_v25 = vld [vmem:[#allocation27_spill] sm:$0xff] }
 0x1a7   : > { %1507 = vmatprep.subr.bf16.mxu0 %v3798_v26  ;;  %1548 = vmatprep.subr.bf16.mxu1 %v3802_v27  ;;  %v4833_v26 = vld [vmem:[#allocation28_spill] sm:$0xff]  ;;  %v4834_v27 = vld [vmem:[#allocation29_spill] sm:$0xff] }
 0x1aa   : > { %1508 = vmatpush1.bf16.msra.mxu0 %v3804_v28  ;;  %1549 = vmatpush1.bf16.msra.mxu1 %v3808_v29  ;;  %v4835_v28 = vld [vmem:[#allocation30_spill] sm:$0xff]  ;;  %v4836_v29 = vld [vmem:[#allocation31_spill] sm:$0xff] }
 0x1ab   : > { %1509 = vmatprep.subr.bf16.mxu0 %v3812_v30  ;;  %1550 = vmatprep.subr.bf16.mxu1 %v3814_v31  ;;  %v4837_v30 = vld [vmem:[#allocation32_spill] sm:$0xff]  ;;  %v4838_v31 = vld [vmem:[#allocation33_spill] sm:$0xff] }
 0x1ae   : > { %1510 = vmatpush1.bf16.msra.mxu0 %v3818_v32  ;;  %1551 = vmatpush1.bf16.msra.mxu1 %v3820_v33  ;;  %v4839_v32 = vld [vmem:[#allocation34_spill] sm:$0xff]  ;;  %v4840_v33 = vld [vmem:[#allocation35_spill] sm:$0xff] }
 0x1af   : > { %1511 = vmatprep.subr.bf16.mxu0 %v3822_v34  ;;  %1552 = vmatprep.subr.bf16.mxu1 %v3826_v35  ;;  %v4841_v34 = vld [vmem:[#allocation36_spill] sm:$0xff]  ;;  %v4842_v35 = vld [vmem:[#allocation37_spill] sm:$0xff] }
 0x1b2   : > { %1512 = vmatpush1.bf16.msra.mxu0 %v3828_v36  ;;  %1553 = vmatpush1.bf16.msra.mxu1 %v3830_v37  ;;  %v4843_v36 = vld [vmem:[#allocation38_spill] sm:$0xff]  ;;  %v4844_v37 = vld [vmem:[#allocation39_spill] sm:$0xff] }
 0x1b3   : > { %1513 = vmatprep.subr.bf16.mxu0 %v3832_v38  ;;  %1554 = vmatprep.subr.bf16.mxu1 %v3836_v39  ;;  %v4845_v38 = vld [vmem:[#allocation40_spill] sm:$0xff]  ;;  %v4846_v39 = vld [vmem:[#allocation41_spill] sm:$0xff] }
 0x1b6   : > { %1514 = vmatpush1.bf16.msra.mxu0 %v3840_v40  ;;  %1555 = vmatpush1.bf16.msra.mxu1 %v3842_v41  ;;  %v4847_v40 = vld [vmem:[#allocation42_spill] sm:$0xff]  ;;  %v4848_v41 = vld [vmem:[#allocation43_spill] sm:$0xff] }
 0x1b7   : > { %1515 = vmatprep.subr.bf16.mxu0 %v3844_v42  ;;  %1556 = vmatprep.subr.bf16.mxu1 %v3846_v43  ;;  %v4849_v42 = vld [vmem:[#allocation44_spill] sm:$0xff]  ;;  %v4850_v43 = vld [vmem:[#allocation45_spill] sm:$0xff] }
 0x1ba   : > { %1516 = vmatpush1.bf16.msra.mxu0 %v3852_v44  ;;  %1557 = vmatpush1.bf16.msra.mxu1 %v3854_v45  ;;  %v4851_v44 = vld [vmem:[#allocation46_spill] sm:$0xff]  ;;  %v4852_v45 = vld [vmem:[#allocation47_spill] sm:$0xff] }
 0x1bb   : > { %1699 = vmatprep.subr.bf16.mxu0 %v3862_v48  ;;  %1740 = vmatprep.subr.bf16.mxu1 %v3864_v49  ;;  %v4853_v48 = vld [vmem:[#allocation48_spill] sm:$0xff]  ;;  %v4854_v49 = vld [vmem:[#allocation49_spill] sm:$0xff] }
 0x1bd   : > { %1534 = vmatmul.mubr.bf16.vlgmr.msra.gmra.mrb[12].mxu0 %v1499_v16  ;;  %1575 = vmatmul.mubr.bf16.vlgmr.msra.gmra.mrb[12].mxu1 %v1499_v16  ;;  %v605_v16 = vld [vmem:[%s4593_s5] sm:$0xf] }
 0x1be   : > { %1700 = vmatpush1.bf16.msra.mxu0 %v3866_v50  ;;  %1741 = vmatpush1.bf16.msra.mxu1 %v3868_v51  ;;  %v4855_v50 = vld [vmem:[#allocation50_spill] sm:$0xff]  ;;  %v4856_v51 = vld [vmem:[#allocation51_spill] sm:$0xff] }
 0x1bf   : > { %1701 = vmatprep.subr.bf16.mxu0 %v3870_v52  ;;  %1742 = vmatprep.subr.bf16.mxu1 %v3874_v53  ;;  %v4857_v52 = vld [vmem:[#allocation52_spill] sm:$0xff]  ;;  %v4858_v53 = vld [vmem:[#allocation53_spill] sm:$0xff] }
 0x1c2   : > { %1702 = vmatpush1.bf16.msra.mxu0 %v3878_v54  ;;  %1743 = vmatpush1.bf16.msra.mxu1 %v3880_v55  ;;  %v4859_v54 = vld [vmem:[#allocation54_spill] sm:$0xff]  ;;  %v4860_v55 = vld [vmem:[#allocation55_spill] sm:$0xff] }
 0x1c3   : > { %1703 = vmatprep.subr.bf16.mxu0 %v3886_v56  ;;  %1744 = vmatprep.subr.bf16.mxu1 %v3888_v57  ;;  %v4861_v56 = vld [vmem:[#allocation56_spill] sm:$0xff]  ;;  %v4862_v57 = vld [vmem:[#allocation57_spill] sm:$0xff] }
 0x1c6   : > { %1704 = vmatpush1.bf16.msra.mxu0 %v4824_v17  ;;  %1745 = vmatpush1.bf16.msra.mxu1 %v4825_v18  ;;  %v4197_v17 = vrot.slane %v605_v16, %v4056_v8  ;;  %v4881_v18 = vld [vmem:[#allocation74_spill] sm:$0xff] }
 0x1c7   : > { %1705 = vmatprep.subr.bf16.mxu0 %v4826_v19  ;;  %1746 = vmatprep.subr.bf16.mxu1 %v4827_v20  ;;  %v4200_v19 = vrot.slane %v605_v16, %v4881_v18 }
 0x1c8   : > { %4880 = vst [vmem:[#allocation20_spill] sm:$0xff] %v4197_v17 }
 0x1c9   : > { %4882 = vst [vmem:[#allocation21_spill] sm:$0xff] %v4200_v19 }
 0x1ca   : > { %1706 = vmatpush1.bf16.msra.mxu0 %v4828_v21  ;;  %1747 = vmatpush1.bf16.msra.mxu1 %v4829_v22 }
 0x1cb   : > { %1707 = vmatprep.subr.bf16.mxu0 %v4830_v23  ;;  %1748 = vmatprep.subr.bf16.mxu1 %v4831_v24 }
 0x1ce   : > { %1708 = vmatpush1.bf16.msra.mxu0 %v4832_v25  ;;  %1749 = vmatpush1.bf16.msra.mxu1 %v4833_v26 }
 0x1cf   : > { %1709 = vmatprep.subr.bf16.mxu0 %v4834_v27  ;;  %1750 = vmatprep.subr.bf16.mxu1 %v4835_v28 }
 0x1d2   : > { %1710 = vmatpush1.bf16.msra.mxu0 %v4836_v29  ;;  %1751 = vmatpush1.bf16.msra.mxu1 %v4837_v30 }
 0x1d3   : > { %1711 = vmatprep.subr.bf16.mxu0 %v4838_v31  ;;  %1752 = vmatprep.subr.bf16.mxu1 %v4839_v32 }
 0x1d6   : > { %1712 = vmatpush1.bf16.msra.mxu0 %v4840_v33  ;;  %1753 = vmatpush1.bf16.msra.mxu1 %v4841_v34 }
 0x1d7   : > { %1713 = vmatprep.subr.bf16.mxu0 %v4842_v35  ;;  %1754 = vmatprep.subr.bf16.mxu1 %v4843_v36 }
 0x1da   : > { %1714 = vmatpush1.bf16.msra.mxu0 %v4844_v37  ;;  %1755 = vmatpush1.bf16.msra.mxu1 %v4845_v38 }
 0x1db   : > { %1715 = vmatprep.subr.bf16.mxu0 %v4846_v39  ;;  %1756 = vmatprep.subr.bf16.mxu1 %v4847_v40 }
 0x1de   : > { %1716 = vmatpush1.bf16.msra.mxu0 %v4848_v41  ;;  %1757 = vmatpush1.bf16.msra.mxu1 %v4849_v42 }
 0x1df   : > { %1717 = vmatprep.subr.bf16.mxu0 %v4850_v43  ;;  %1758 = vmatprep.subr.bf16.mxu1 %v4851_v44 }
 0x1e2   : > { %1718 = vmatpush1.bf16.msra.mxu0 %v4852_v45  ;;  %1759 = vmatpush1.bf16.msra.mxu1 %v4853_v48 }
 0x1e3   : > { %1719 = vmatprep.subr.bf16.mxu0 %v4854_v49  ;;  %1760 = vmatprep.subr.bf16.mxu1 %v4855_v50 }
 0x1e6   : > { %1720 = vmatpush1.bf16.msra.mxu0 %v4856_v51  ;;  %1761 = vmatpush1.bf16.msra.mxu1 %v4857_v52 }
 0x1e7   : > { %1721 = vmatprep.subr.bf16.mxu0 %v4858_v53  ;;  %1762 = vmatprep.subr.bf16.mxu1 %v4859_v54 }
 0x1ea   : > { %1722 = vmatpush1.bf16.msra.mxu0 %v4860_v55  ;;  %1763 = vmatpush1.bf16.msra.mxu1 %v4861_v56 }
 0x1eb   : > { %1723 = vmatprep.subr.bf16.mxu0 %v4862_v57  ;;  %1764 = vmatprep.subr.bf16.mxu1 %v4863_v3 }
 0x1ee   : > { %1724 = vmatpush1.bf16.msra.mxu0 %v4864_v1  ;;  %1765 = vmatpush1.bf16.msra.mxu1 %v4865_v58 }
 0x1ef   : > { %1725 = vmatprep.subr.bf16.mxu0 %v4866_v6  ;;  %1766 = vmatprep.subr.bf16.mxu1 %v4867_v9 }
 0x1f2   : > { %1726 = vmatpush1.bf16.msra.mxu0 %v4868_v7  ;;  %1767 = vmatpush1.bf16.msra.mxu1 %v4869_v12  ;;  %v4885_v7 = vld [vmem:[#allocation73_spill] sm:$0xff] }
 0x1f3   : > { %1727 = vmatprep.subr.bf16.mxu0 %v4870_v47  ;;  %1768 = vmatprep.subr.bf16.mxu1 %v4871_v14  ;;  %v4883_v47 = vld [vmem:[#allocation75_spill] sm:$0xff]  ;;  %v4209_v9 = vrot.slane %v605_v16, %v4885_v7 }
 0x1f4   : > { %v4205_v8 = vrot.slane %v605_v16, %v4883_v47 }
 0x1f5   : > { %4886 = vst [vmem:[#allocation23_spill] sm:$0xff] %v4209_v9 }
 0x1f6   : > { %1728 = vmatpush1.bf16.msra.mxu0 %v4872_v63  ;;  %1769 = vmatpush1.bf16.msra.mxu1 %v4873_v46  ;;  %4884 = vst [vmem:[#allocation22_spill] sm:$0xff] %v4205_v8 }
 0x1f7   : > { %1729 = vmatprep.subr.bf16.mxu0 %v4874_v15  ;;  %1770 = vmatprep.subr.bf16.mxu1 %v4875_v5 }
 0x1fa   : > { %1730 = vmatpush1.bf16.msra.mxu0 %v4876_v0  ;;  %1771 = vmatpush1.bf16.msra.mxu1 %v4877_v2 }
 0x1fb   : > { %1815 = vmatprep.subr.bf16.mxu0 %v4189_v4  ;;  %1856 = vmatprep.subr.bf16.mxu1 %v4879_v62 }
 0x270   : > { %v1419_v20 = vpop.f32.mrb[8].mxu0  ;;  %v1460_v21 = vpop.f32.mrb[8].mxu1 }
 0x271   : > { %v1420_v22 = vadd.f32 %v1419_v20, %v4197_v17  ;;  %v1421_v2 = vpop.f32.mrb[9].mxu0  ;;  %v1462_v0 = vpop.f32.mrb[9].mxu1  ;;  %v1461_v17 = vadd.f32 %v1460_v21, %v4209_v9 }
 0x272   : > { %v1422_v4 = vadd.f32 %v1421_v2, %v4200_v19  ;;  %v1423_v5 = vpop.f32.mrb[10].mxu0  ;;  %v1464_v62 = vpop.f32.mrb[10].mxu1  ;;  %v1463_v12 = vadd.f32 %v1462_v0, %v4205_v8 }
 0x273   : > { %v2830_v15 = vmul.f32 -1.442695, %v1420_v22  ;;  %v1424_v46 = vpop.f32.mrb[11].mxu0  ;;  %v1465_v63 = vpop.f32.mrb[11].mxu1 }
 0x274   : > { %v2831_v14 = vmul.f32 -1.442695, %v1422_v4  ;;  %v2832_v20 = vmul.f32 -1.442695, %v1463_v12 }
 0x275   : > { %3165 = vpow2.f32 %v2830_v15  ;;  %v630_v15 = vld [vmem:[#allocation5] sm:$0x3] }
 0x276   : > { %3167 = vpow2.f32 %v2831_v14 }
 0x277   : > { %3169 = vpow2.f32 %v2832_v20 }
 0x278   : > { %3171 = vtanh.f32 %v1461_v17 }
 0x27f   : > { %v3166_v2 = vpop.eup %3165 }
 0x280   : > { %v3168_v5 = vpop.eup %3167  ;;  %v1470_v62 = vadd.f32 1.0, %v3166_v2 }
 0x281   : > { %v1476_v63 = vadd.f32 1.0, %v3168_v5  ;;  %v3170_v46 = vpop.eup %3169 }
 0x282   : > { %3173 = vrcp.f32 %v1470_v62  ;;  %v3172_v4 = vpop.eup %3171  ;;  %v1483_v47 = vadd.f32 1.0, %v3170_v46 }
 0x283   : > { %3175 = vrcp.f32 %v1476_v63 }
 0x284   : > { %3177 = vrcp.f32 %v1483_v47 }
 0x28c   : > { %v3174_v14 = vpop.eup %3173 }
 0x28d   : > { %v3176_v22 = vpop.eup %3175  ;;  %v1487_v0 = vmul.f32 %v3174_v14, %v3172_v4 }
 0x28e   : > { %v1486_v16 = vmul.f32 %v3176_v22, %v630_v15 }
 0x290   : > { %v4212_v7 = vadd.f32 %v1487_v0, %v1486_v16  ;;  %v1535_v12 = vpop.f32.mrb[12].mxu0  ;;  %v1576_v21 = vpop.f32.mrb[12].mxu1  ;;  %v4887_v0 = vld [vmem:[#allocation77_spill] sm:$0xff] }
 0x291   : > { %v1537_v9 = vpop.f32.mrb[13].mxu0  ;;  %v1578_v2 = vpop.f32.mrb[13].mxu1 }
 0x292   : > { %3179 = vtanh.f32 %v4212_v7  ;;  %v1587_v17 = vcombine.low %v1535_v12, %v1537_v9  ;;  %v1588_v20 = vcombine.low %v1576_v21, %v1578_v2  ;;  %v1539_v5 = vpop.f32.mrb[14].mxu0  ;;  %v1580_v62 = vpop.f32.mrb[14].mxu1 }
 0x293   : > { %v1540_v63 = vpop.f32.mrb[15].mxu0  ;;  %v1581_v8 = vpop.f32.mrb[15].mxu1 }
 0x294   : > { %v1589_v19 = vrot.slane %v1587_v17, 7  ;;  %v1597_v4 = vadd.f32 %v1587_v17, %v4073_v59  ;;  %v1590_v46 = vrot.slane %v1588_v20, 7  ;;  %v1598_v16 = vadd.f32 %v1588_v20, %v4887_v0  ;;  %v3178_v2 = vpop.eup %3177 }
 0x296   : > { %v1595_v15 = vadd.f32 %v1589_v19, %v4071_v60  ;;  %v2834_v14 = vmul.f32 -1.442695, %v1597_v4  ;;  %v1614_v22 = vrot.slane %v1597_v4, 4  ;;  %v1596_v47 = vadd.f32 %v1590_v46, %v4075_v10 }
 0x297   : > { %v1634_v17 = vrot.slane %v1598_v16, 4 }
 0x298   : > { %v2833_v6 = vmul.f32 -1.442695, %v1595_v15  ;;  %3181 = vpow2.f32 %v2834_v14  ;;  %v1613_v9 = vrot.slane %v1595_v15, 4  ;;  %v2836_v12 = vmul.f32 -1.442695, %v1614_v22 }
 0x299   : > { %v1633_v8 = vrot.slane %v1596_v47, 4  ;;  %v2838_v4 = vmul.f32 -1.442695, %v1634_v17 }
 0x29a   : > { %3183 = vpow2.f32 %v2833_v6  ;;  %v2835_v21 = vmul.f32 -1.442695, %v1613_v9 }
 0x29b   : > { %3185 = vpow2.f32 %v2836_v12  ;;  %v2837_v19 = vmul.f32 -1.442695, %v1633_v8 }
 0x29c   : > { %v3180_v5 = vpop.eup %3179  ;;  %3187 = vpow2.f32 %v2835_v21 }
 0x29d   : > { %v1490_v62 = vmul.f32 %v3180_v5, %v3178_v2  ;;  %3189 = vtanh.f32 %v1598_v16 }
 0x29e   : > { %3191 = vpow2.f32 %v2837_v19 }
 0x29f   : > { %v1679_v63 = vrot.slane %v1490_v62, 7  ;;  %3193 = vpow2.f32 %v2838_v4 }
 0x2a1   : > { %v1682_v59 = vpack.c.bf16 %v1679_v63, %v1679_v63 }
 0x2a2   : > { %v3182_v46 = vpop.eup %3181 }
 0x2a3   : > { %v1606_v20 = vadd.f32 1.0, %v3182_v46  ;;  %v1693_v14 = vshll.u32 %v1682_v59, 16  ;;  %v1691_v9 = vshrl.u32 %v1682_v59, 16  ;;  %v1652_v59 = vrot.slane %v4085_v11, 7 }
 0x2a4   : > { %v3184_v15 = vpop.eup %3183 }
 0x2a5   : > { %v3186_v6 = vpop.eup %3185  ;;  %v1605_v22 = vadd.f32 1.0, %v3184_v15  ;;  %3195 = vrcp.f32 %v1606_v20  ;;  %v1695_v12 = vrot.slane %v1693_v14, 1 }
 0x2a6   : > { %v3188_v0 = vpop.eup %3187  ;;  %v1624_v21 = vadd.f32 1.0, %v3186_v6  ;;  %3197 = vtanh.f32 %v1596_v47  ;;  %v1651_v47 = vrot.slane %v4083_v61, 7 }
 0x2a7   : > { %3199 = vrcp.f32 %v1605_v22  ;;  %v1623_v2 = vadd.f32 1.0, %v3188_v0  ;;  %v1696_v8 = vor.u32 %v1695_v12, %v1691_v9  ;;  %v3190_v16 = vpop.eup %3189 }
 0x2a8   : > { %3201 = vrcp.f32 %v1624_v21  ;;  %v3192_v5 = vpop.eup %3191 }
 0x2a9   : > { %3203 = vrcp.f32 %v1623_v2  ;;  %1731 = vmatprep.mubr.bf16.mxu0 %v1696_v8  ;;  %1772 = vmatprep.mubr.bf16.mxu1 %v1696_v8  ;;  %v3194_v17 = vpop.eup %3193  ;;  %v1643_v46 = vadd.f32 1.0, %v3192_v5 }
 0x2aa   : > { %v1644_v14 = vadd.f32 1.0, %v3194_v17 }
 0x2ab   : > { %3205 = vrcp.f32 %v1643_v46 }
 0x2ac   : > { %3207 = vrcp.f32 %v1644_v14 }
 0x2af   : > { %v3196_v62 = vpop.eup %3195 }
 0x2b0   : > { %v3198_v19 = vpop.eup %3197  ;;  %v1658_v63 = vmul.f32 %v3196_v62, %v3190_v16 }
 0x2b1   : > { %v3200_v4 = vpop.eup %3199 }
 0x2b2   : > { %v3202_v20 = vpop.eup %3201  ;;  %v1657_v0 = vmul.f32 %v3200_v4, %v3198_v19 }
 0x2b3   : > { %v3204_v15 = vpop.eup %3203  ;;  %v1656_v6 = vmul.f32 %v3202_v20, %v1652_v59 }
 0x2b4   : > { %v1655_v22 = vmul.f32 %v3204_v15, %v1651_v47 }
 0x2b5   : > { %v4221_v9 = vadd.f32 %v1658_v63, %v1656_v6  ;;  %v3206_v21 = vpop.eup %3205 }
 0x2b6   : > { %v4223_v12 = vadd.f32 %v1657_v0, %v1655_v22  ;;  %v3208_v11 = vpop.eup %3207  ;;  %v4232_v22 = vld [vmem:[#allocation7] ss:$16 sps:$4 sm:$0xff]  }
 0x2b7   : > { %3209 = vtanh.f32 %v4221_v9 }
 0x2b8   : > { %3211 = vtanh.f32 %v4223_v12 }
 0x2c1   : > { %v3210_v2 = vpop.eup %3209 }
 0x2c2   : > { %v3212_v8 = vpop.eup %3211  ;;  %v1664_v61 = vmul.f32 %v3210_v2, %v3208_v11  ;;  %v4241_v11 = vld [vmem:[#allocation7 + $0x2c] ss:$16 sps:$4 sm:$0xff]   ;;  %v4246_v2 = vld [vmem:[#allocation7 + $0x20] ss:$16 sps:$4 sm:$0xff]  }
 0x2c3   : > { %v1663_v16 = vmul.f32 %v3212_v8, %v3206_v21  ;;  %v4238_v21 = vld [vmem:[#allocation7 + $0x24] ss:$16 sps:$4 sm:$0xff]   ;;  %v4249_v8 = vld [vmem:[#allocation7 + $0x28] ss:$16 sps:$4 sm:$0xff]  }
 0x2c4   : > { %v1674_v17 = vrot.slane %v1664_v61, %v4881_v18  ;;  %v1806_v19 = vpack.c.bf16 %v1664_v61, %v1664_v61  ;;  %v4252_v61 = vld [vmem:[#allocation7 + $0x44] ss:$16 sps:$4 sm:$0xff]  }
 0x2c5   : > { %v1670_v5 = vrot.slane %v1663_v16, %v4881_v18  ;;  %v1805_v62 = vpack.c.bf16 %v1663_v16, %v1663_v16  ;;  %v4235_v18 = vld [vmem:[#allocation7 + $0x8] ss:$16 sps:$4 sm:$0xff]   ;;  %v4255_v16 = vld [vmem:[#allocation7 + $0x4c] ss:$16 sps:$4 sm:$0xff]  }
 0x2c6   : > { %v1810_v59 = vunpack.c.l.b16 %v1806_v19  ;;  %v4267_v19 = vld [vmem:[#allocation7 + $0x6c] ss:$16 sps:$4 sm:$0xff]  }
 0x2c7   : > { %v1676_v63 = vsel %vm1675_vm2, %v1674_v17, %v1670_v5  ;;  %v1809_v4 = vunpack.c.l.b16 %v1805_v62  ;;  %v4258_v5 = vld [vmem:[#allocation7 + $0x40] ss:$16 sps:$4 sm:$0xff]   ;;  %v4261_v17 = vld [vmem:[#allocation7 + $0x48] ss:$16 sps:$4 sm:$0xff]   ;;  %v4264_v62 = vld [vmem:[#allocation7 + $0x64] ss:$16 sps:$4 sm:$0xff]  }
 0x2c8   : > { %v1681_v46 = vpack.c.bf16 %v1676_v63, %v1676_v63  ;;  %v4270_v63 = vld [vmem:[#allocation7 + $0x60] ss:$16 sps:$4 sm:$0xff]  }
 0x2c9   : > { %v1811_v20 = vrot.slane %v1809_v4, 1  ;;  %v4273_v4 = vld [vmem:[#allocation7 + $0x68] ss:$16 sps:$4 sm:$0xff]  }
 0x2ca   : > { %v1686_v47 = vshll.u32 %v1681_v46, 16  ;;  %v1684_v0 = vshrl.u32 %v1681_v46, 16  ;;  %v4276_v46 = vld [vmem:[#allocation7 + $0x84] ss:$16 sps:$4 sm:$0xff]  }
 0x2cb   : > { %v4230_v14 = vsel %vm996_vm1, %v1810_v59, %v1811_v20  ;;  %v4279_v59 = vld [vmem:[#allocation7 + $0x8c] ss:$16 sps:$4 sm:$0xff]   ;;  %v4282_v20 = vld [vmem:[#allocation7 + $0x80] ss:$16 sps:$4 sm:$0xff]  }
 0x2cc   : > { %v1688_v15 = vrot.slane %v1686_v47, 1  ;;  %4888 = vst [vmem:[#allocation24_spill] sm:$0xff] %v4279_v59  ;;  %4889 = vst [vmem:[#allocation25_spill] sm:$0xff] %v4282_v20  ;;  %v4285_v47 = vld [vmem:[#allocation7 + $0x88] ss:$16 sps:$4 sm:$0xff]  }
 0x2cd   : > { %4890 = vst [vmem:[#allocation26_spill] sm:$0xff] %v4285_v47 }
 0x2ce   : > { %v1689_v6 = vor.u32 %v1688_v15, %v1684_v0  ;;  %v4288_v0 = vld [vmem:[#allocation7 + $0xa4] ss:$16 sps:$4 sm:$0xff]   ;;  %v4291_v15 = vld [vmem:[#allocation7 + $0xac] ss:$16 sps:$4 sm:$0xff]  }
 0x2cf   : > { %4891 = vst [vmem:[#allocation27_spill] sm:$0xff] %v4288_v0  ;;  %4892 = vst [vmem:[#allocation28_spill] sm:$0xff] %v4291_v15 }
 0x2d0   : > { %1732 = vmatmul.mubr.bf16.vlgmr.msra.gmra.mrb[16].mxu0 %v1689_v6  ;;  %1773 = vmatmul.mubr.bf16.vlgmr.msra.gmra.mrb[16].mxu1 %v1689_v6  ;;  %v4294_v6 = vld [vmem:[#allocation7 + $0xa0] ss:$16 sps:$4 sm:$0xff]  }
 0x2d1   : > { %1816 = vmatpush1.bf16.msra.mxu0 %v4232_v22  ;;  %1857 = vmatpush1.bf16.msra.mxu1 %v4235_v18  ;;  %4893 = vst [vmem:[#allocation29_spill] sm:$0xff] %v4294_v6 }
 0x2d2   : > { %1817 = vmatprep.subr.bf16.mxu0 %v4238_v21  ;;  %1858 = vmatprep.subr.bf16.mxu1 %v4241_v11 }
 0x2d3   : > { %1847 = vmatprep.mubr.bf16.mxu0 %v4823_v13  ;;  %1888 = vmatprep.mubr.bf16.mxu1 %v4823_v13 }
 0x2d5   : > { %1818 = vmatpush1.bf16.msra.mxu0 %v4246_v2  ;;  %1859 = vmatpush1.bf16.msra.mxu1 %v4249_v8 }
 0x2d6   : > { %1819 = vmatprep.subr.bf16.mxu0 %v4252_v61  ;;  %1860 = vmatprep.subr.bf16.mxu1 %v4255_v16 }
 0x2d9   : > { %1820 = vmatpush1.bf16.msra.mxu0 %v4258_v5  ;;  %1861 = vmatpush1.bf16.msra.mxu1 %v4261_v17 }
 0x2da   : > { %1821 = vmatprep.subr.bf16.mxu0 %v4264_v62  ;;  %1862 = vmatprep.subr.bf16.mxu1 %v4267_v19 }
 0x2dd   : > { %1822 = vmatpush1.bf16.msra.mxu0 %v4270_v63  ;;  %1863 = vmatpush1.bf16.msra.mxu1 %v4273_v4 }
 0x2de   : > { %1823 = vmatprep.subr.bf16.mxu0 %v4276_v46  ;;  %1864 = vmatprep.subr.bf16.mxu1 %v4279_v59  ;;  %v4297_v59 = vld [vmem:[#allocation7 + $0xa8] ss:$16 sps:$4 sm:$0xff]  }
 0x2df   : > { %4894 = vst [vmem:[#allocation30_spill] sm:$0xff] %v4297_v59 }
 0x2e1   : > { %1824 = vmatpush1.bf16.msra.mxu0 %v4282_v20  ;;  %1865 = vmatpush1.bf16.msra.mxu1 %v4285_v47  ;;  %v4300_v20 = vld [vmem:[#allocation7 + $0xc4] ss:$16 sps:$4 sm:$0xff]   ;;  %v4303_v47 = vld [vmem:[#allocation7 + $0xcc] ss:$16 sps:$4 sm:$0xff]  }
 0x2e2   : > { %1825 = vmatprep.subr.bf16.mxu0 %v4288_v0  ;;  %1866 = vmatprep.subr.bf16.mxu1 %v4291_v15  ;;  %4895 = vst [vmem:[#allocation31_spill] sm:$0xff] %v4300_v20  ;;  %4896 = vst [vmem:[#allocation32_spill] sm:$0xff] %v4303_v47  ;;  %v4306_v0 = vld [vmem:[#allocation7 + $0xc0] ss:$16 sps:$4 sm:$0xff]   ;;  %v4309_v15 = vld [vmem:[#allocation7 + $0xc8] ss:$16 sps:$4 sm:$0xff]  }
 0x2e3   : > { %4897 = vst [vmem:[#allocation33_spill] sm:$0xff] %v4306_v0  ;;  %4898 = vst [vmem:[#allocation34_spill] sm:$0xff] %v4309_v15 }
 0x2e5   : > { %1826 = vmatpush1.bf16.msra.mxu0 %v4294_v6  ;;  %1867 = vmatpush1.bf16.msra.mxu1 %v4297_v59  ;;  %v4312_v6 = vld [vmem:[#allocation7 + $0xe4] ss:$16 sps:$4 sm:$0xff]   ;;  %v4315_v59 = vld [vmem:[#allocation7 + $0xec] ss:$16 sps:$4 sm:$0xff]  }
 0x2e6   : > { %1827 = vmatprep.subr.bf16.mxu0 %v4300_v20  ;;  %1868 = vmatprep.subr.bf16.mxu1 %v4303_v47  ;;  %4899 = vst [vmem:[#allocation35_spill] sm:$0xff] %v4312_v6  ;;  %4900 = vst [vmem:[#allocation36_spill] sm:$0xff] %v4315_v59  ;;  %v4318_v20 = vld [vmem:[#allocation7 + $0xe0] ss:$16 sps:$4 sm:$0xff]   ;;  %v4321_v47 = vld [vmem:[#allocation7 + $0xe8] ss:$16 sps:$4 sm:$0xff]  }
 0x2e7   : > { %4901 = vst [vmem:[#allocation37_spill] sm:$0xff] %v4318_v20  ;;  %4902 = vst [vmem:[#allocation38_spill] sm:$0xff] %v4321_v47 }
 0x2e9   : > { %1828 = vmatpush1.bf16.msra.mxu0 %v4306_v0  ;;  %1869 = vmatpush1.bf16.msra.mxu1 %v4309_v15  ;;  %v1813_v0 = vpack.c.b16 %v4230_v14, %v4230_v14  ;;  %v4326_v15 = vld [vmem:[#allocation10 + $0x4] ss:$16 sps:$4 sm:$0xff]   ;;  %v4341_v14 = vld [vmem:[#allocation10 + $0x2c] ss:$16 sps:$4 sm:$0xff]  }
 0x2ea   : > { %1829 = vmatprep.subr.bf16.mxu0 %v4312_v6  ;;  %1870 = vmatprep.subr.bf16.mxu1 %v4315_v59  ;;  %4903 = vst [vmem:[#allocation39_spill] sm:$0xff] %v4326_v15  ;;  %v4329_v6 = vld [vmem:[#allocation10 + $0xc] ss:$16 sps:$4 sm:$0xff]   ;;  %v4332_v59 = vld [vmem:[#allocation10] ss:$16 sps:$4 sm:$0xff]   ;;  %4907 = vst [vmem:[#allocation43_spill] sm:$0xff] %v4341_v14 }
 0x2eb   : > { %4904 = vst [vmem:[#allocation40_spill] sm:$0xff] %v4332_v59 }
 0x2ed   : > { %1830 = vmatpush1.bf16.msra.mxu0 %v4318_v20  ;;  %1871 = vmatpush1.bf16.msra.mxu1 %v4321_v47  ;;  %v4335_v20 = vld [vmem:[#allocation10 + $0x8] ss:$16 sps:$4 sm:$0xff]   ;;  %v4338_v47 = vld [vmem:[#allocation10 + $0x24] ss:$16 sps:$4 sm:$0xff]  }
 0x2ee   : > { %2005 = vmatprep.subr.bf16.mxu0 %v4326_v15  ;;  %2046 = vmatprep.subr.bf16.mxu1 %v4329_v6  ;;  %4905 = vst [vmem:[#allocation41_spill] sm:$0xff] %v4335_v20  ;;  %4906 = vst [vmem:[#allocation42_spill] sm:$0xff] %v4338_v47  ;;  %v4344_v15 = vld [vmem:[#allocation10 + $0x20] ss:$16 sps:$4 sm:$0xff]  }
 0x2ef   : > { %4908 = vst [vmem:[#allocation44_spill] sm:$0xff] %v4344_v15 }
 0x2f0   : > { %1848 = vmatmul.mubr.bf16.vlgmr.msra.gmra.mrb[20].mxu0 %v1813_v0  ;;  %1889 = vmatmul.mubr.bf16.vlgmr.msra.gmra.mrb[20].mxu1 %v1813_v0  ;;  %v4347_v0 = vld [vmem:[#allocation10 + $0x28] ss:$16 sps:$4 sm:$0xff]  }
 0x2f1   : > { %2006 = vmatpush1.bf16.msra.mxu0 %v4332_v59  ;;  %2047 = vmatpush1.bf16.msra.mxu1 %v4335_v20  ;;  %4909 = vst [vmem:[#allocation45_spill] sm:$0xff] %v4347_v0  ;;  %v4350_v59 = vld [vmem:[#allocation10 + $0x44] ss:$16 sps:$4 sm:$0xff]   ;;  %v4353_v20 = vld [vmem:[#allocation10 + $0x4c] ss:$16 sps:$4 sm:$0xff]  }
 0x2f2   : > { %2007 = vmatprep.subr.bf16.mxu0 %v4338_v47  ;;  %2048 = vmatprep.subr.bf16.mxu1 %v4341_v14  ;;  %4910 = vst [vmem:[#allocation46_spill] sm:$0xff] %v4350_v59  ;;  %4911 = vst [vmem:[#allocation47_spill] sm:$0xff] %v4353_v20  ;;  %v4356_v47 = vld [vmem:[#allocation10 + $0x40] ss:$16 sps:$4 sm:$0xff]   ;;  %v4359_v14 = vld [vmem:[#allocation10 + $0x48] ss:$16 sps:$4 sm:$0xff]  }
 0x2f5   : > { %2008 = vmatpush1.bf16.msra.mxu0 %v4344_v15  ;;  %2049 = vmatpush1.bf16.msra.mxu1 %v4347_v0  ;;  %v4362_v15 = vld [vmem:[#allocation10 + $0x64] ss:$16 sps:$4 sm:$0xff]   ;;  %v4365_v0 = vld [vmem:[#allocation10 + $0x6c] ss:$16 sps:$4 sm:$0xff]  }
 0x2f6   : > { %2009 = vmatprep.subr.bf16.mxu0 %v4350_v59  ;;  %2050 = vmatprep.subr.bf16.mxu1 %v4353_v20  ;;  %v4368_v59 = vld [vmem:[#allocation10 + $0x60] ss:$16 sps:$4 sm:$0xff]   ;;  %v4371_v20 = vld [vmem:[#allocation10 + $0x68] ss:$16 sps:$4 sm:$0xff]  }
 0x2f9   : > { %2010 = vmatpush1.bf16.msra.mxu0 %v4356_v47  ;;  %2051 = vmatpush1.bf16.msra.mxu1 %v4359_v14 }
 0x2fa   : > { %2011 = vmatprep.subr.bf16.mxu0 %v4362_v15  ;;  %2052 = vmatprep.subr.bf16.mxu1 %v4365_v0 }
 0x2fd   : > { %2012 = vmatpush1.bf16.msra.mxu0 %v4368_v59  ;;  %2053 = vmatpush1.bf16.msra.mxu1 %v4371_v20 }
 0x2fe   : > { %2013 = vmatprep.subr.bf16.mxu0 %v4830_v23  ;;  %2054 = vmatprep.subr.bf16.mxu1 %v4831_v24  ;;  %v4912_v23 = vld [vmem:[#allocation61_spill] sm:$0xff]  ;;  %v4913_v24 = vld [vmem:[#allocation62_spill] sm:$0xff] }
 0x301   : > { %2014 = vmatpush1.bf16.msra.mxu0 %v4832_v25  ;;  %2055 = vmatpush1.bf16.msra.mxu1 %v4833_v26  ;;  %v4914_v25 = vld [vmem:[#allocation63_spill] sm:$0xff]  ;;  %v4915_v26 = vld [vmem:[#allocation64_spill] sm:$0xff] }
 0x302   : > { %2015 = vmatprep.subr.bf16.mxu0 %v4834_v27  ;;  %2056 = vmatprep.subr.bf16.mxu1 %v4835_v28  ;;  %v4916_v27 = vld [vmem:[#allocation65_spill] sm:$0xff]  ;;  %v4917_v28 = vld [vmem:[#allocation66_spill] sm:$0xff] }
 0x305   : > { %2016 = vmatpush1.bf16.msra.mxu0 %v4836_v29  ;;  %2057 = vmatpush1.bf16.msra.mxu1 %v4837_v30  ;;  %v4918_v29 = vld [vmem:[#allocation67_spill] sm:$0xff]  ;;  %v4919_v30 = vld [vmem:[#allocation68_spill] sm:$0xff] }
 0x306   : > { %2017 = vmatprep.subr.bf16.mxu0 %v4838_v31  ;;  %2058 = vmatprep.subr.bf16.mxu1 %v4839_v32  ;;  %v4920_v31 = vld [vmem:[#allocation69_spill] sm:$0xff]  ;;  %v4921_v32 = vld [vmem:[#allocation70_spill] sm:$0xff] }
 0x309   : > { %2018 = vmatpush1.bf16.msra.mxu0 %v4840_v33  ;;  %2059 = vmatpush1.bf16.msra.mxu1 %v4841_v34  ;;  %v4922_v33 = vld [vmem:[#allocation71_spill] sm:$0xff]  ;;  %v4923_v34 = vld [vmem:[#allocation72_spill] sm:$0xff] }
 0x30a   : > { %2019 = vmatprep.subr.bf16.mxu0 %v4842_v35  ;;  %2060 = vmatprep.subr.bf16.mxu1 %v4843_v36  ;;  %v4924_v35 = vld [vmem:[#allocation19_spill] sm:$0xff] }
 0x30b   : > { %v3372_v36 = vld [vmem:[#allocation7 + $0xc] ss:$16 sps:$4 sm:$0xff]  }
 0x30d   : > { %2020 = vmatpush1.bf16.msra.mxu0 %v4844_v37  ;;  %2061 = vmatpush1.bf16.msra.mxu1 %v4845_v38 }
 0x30e   : > { %2021 = vmatprep.subr.bf16.mxu0 %v4846_v39  ;;  %2062 = vmatprep.subr.bf16.mxu1 %v4847_v40  ;;  %v4925_v39 = vld [vmem:[#allocation20_spill] sm:$0xff] }
 0x311   : > { %2022 = vmatpush1.bf16.msra.mxu0 %v4848_v41  ;;  %2063 = vmatpush1.bf16.msra.mxu1 %v4849_v42 }
 0x312   : > { %2023 = vmatprep.subr.bf16.mxu0 %v4850_v43  ;;  %2064 = vmatprep.subr.bf16.mxu1 %v4851_v44  ;;  %v4926_v43 = vld [vmem:[#allocation21_spill] sm:$0xff] }
 0x315   : > { %2024 = vmatpush1.bf16.msra.mxu0 %v4852_v45  ;;  %2065 = vmatpush1.bf16.msra.mxu1 %v4853_v48 }
 0x316   : > { %2025 = vmatprep.subr.bf16.mxu0 %v4854_v49  ;;  %2066 = vmatprep.subr.bf16.mxu1 %v4855_v50 }
 0x319   : > { %2026 = vmatpush1.bf16.msra.mxu0 %v4856_v51  ;;  %2067 = vmatpush1.bf16.msra.mxu1 %v4857_v52 }
 0x31a   : > { %2027 = vmatprep.subr.bf16.mxu0 %v4858_v53  ;;  %2068 = vmatprep.subr.bf16.mxu1 %v4859_v54  ;;  %v4927_v53 = vld [vmem:[#allocation22_spill] sm:$0xff] }
 0x31d   : > { %2028 = vmatpush1.bf16.msra.mxu0 %v4860_v55  ;;  %2069 = vmatpush1.bf16.msra.mxu1 %v4861_v56  ;;  %v4928_v56 = vld [vmem:[#allocation23_spill] sm:$0xff] }
 0x31e   : > { %2029 = vmatprep.subr.bf16.mxu0 %v4862_v57  ;;  %2070 = vmatprep.subr.bf16.mxu1 %v4863_v3 }
 0x321   : > { %2030 = vmatpush1.bf16.msra.mxu0 %v4864_v1  ;;  %2071 = vmatpush1.bf16.msra.mxu1 %v4865_v58 }
 0x322   : > { %2031 = vmatprep.subr.bf16.mxu0 %v4912_v23  ;;  %2072 = vmatprep.subr.bf16.mxu1 %v4913_v24 }
 0x325   : > { %2032 = vmatpush1.bf16.msra.mxu0 %v4914_v25  ;;  %2073 = vmatpush1.bf16.msra.mxu1 %v4915_v26 }
 0x326   : > { %2033 = vmatprep.subr.bf16.mxu0 %v4916_v27  ;;  %2074 = vmatprep.subr.bf16.mxu1 %v4917_v28 }
 0x329   : > { %2034 = vmatpush1.bf16.msra.mxu0 %v4918_v29  ;;  %2075 = vmatpush1.bf16.msra.mxu1 %v4919_v30 }
 0x32a   : > { %2035 = vmatprep.subr.bf16.mxu0 %v4920_v31  ;;  %2076 = vmatprep.subr.bf16.mxu1 %v4921_v32 }
 0x32d   : > { %2036 = vmatpush1.bf16.msra.mxu0 %v4922_v33  ;;  %2077 = vmatpush1.bf16.msra.mxu1 %v4923_v34 }
 0x32e   : > { %2122 = vmatprep.subr.bf16.mxu0 %v4924_v35  ;;  %2163 = vmatprep.subr.bf16.mxu1 %v3372_v36 }
 0x3a3   : > { %v1733_v37 = vpop.f32.mrb[16].mxu0  ;;  %v1774_v38 = vpop.f32.mrb[16].mxu1 }
 0x3a4   : > { %v1734_v40 = vadd.f32 %v1733_v37, %v4925_v39  ;;  %v1735_v41 = vpop.f32.mrb[17].mxu0  ;;  %v1776_v42 = vpop.f32.mrb[17].mxu1  ;;  %v1775_v57 = vadd.f32 %v1774_v38, %v4928_v56 }
 0x3a5   : > { %v1736_v44 = vadd.f32 %v1735_v41, %v4926_v43  ;;  %v1737_v45 = vpop.f32.mrb[18].mxu0  ;;  %v1778_v48 = vpop.f32.mrb[18].mxu1  ;;  %v1777_v54 = vadd.f32 %v1776_v42, %v4927_v53 }
 0x3a6   : > { %v2839_v49 = vmul.f32 -1.442695, %v1734_v40  ;;  %v1738_v50 = vpop.f32.mrb[19].mxu0  ;;  %v1779_v51 = vpop.f32.mrb[19].mxu1 }
 0x3a7   : > { %v2840_v52 = vmul.f32 -1.442695, %v1736_v44  ;;  %v2841_v55 = vmul.f32 -1.442695, %v1777_v54 }
 0x3a8   : > { %3213 = vpow2.f32 %v2839_v49  ;;  %v4929_v49 = vld [vmem:[#allocation76_spill] sm:$0xff] }
 0x3a9   : > { %3215 = vpow2.f32 %v2840_v52 }
 0x3aa   : > { %3217 = vpow2.f32 %v2841_v55 }
 0x3ab   : > { %3219 = vtanh.f32 %v1775_v57 }
 0x3b2   : > { %v3214_v3 = vpop.eup %3213 }
 0x3b3   : > { %v3216_v1 = vpop.eup %3215  ;;  %v1784_v58 = vadd.f32 1.0, %v3214_v3 }
 0x3b4   : > { %v1790_v23 = vadd.f32 1.0, %v3216_v1  ;;  %v3218_v24 = vpop.eup %3217 }
 0x3b5   : > { %3221 = vrcp.f32 %v1784_v58  ;;  %v3220_v25 = vpop.eup %3219  ;;  %v1797_v29 = vadd.f32 1.0, %v3218_v24 }
 0x3b6   : > { %3223 = vrcp.f32 %v1790_v23  ;;  %v4930_v23 = vld [vmem:[#allocation77_spill] sm:$0xff] }
 0x3b7   : > { %3225 = vrcp.f32 %v1797_v29 }
 0x3bf   : > { %v3222_v26 = vpop.eup %3221 }
 0x3c0   : > { %v3224_v27 = vpop.eup %3223  ;;  %v1801_v28 = vmul.f32 %v3222_v26, %v3220_v25 }
 0x3c1   : > { %v1800_v30 = vmul.f32 %v3224_v27, %v4212_v7  ;;  %v3226_v25 = vpop.eup %3225 }
 0x3c3   : > { %v4428_v31 = vadd.f32 %v1801_v28, %v1800_v30  ;;  %v1849_v32 = vpop.f32.mrb[20].mxu0  ;;  %v1890_v33 = vpop.f32.mrb[20].mxu1 }
 0x3c4   : > { %v1851_v34 = vpop.f32.mrb[21].mxu0  ;;  %v1892_v35 = vpop.f32.mrb[21].mxu1 }
 0x3c5   : > { %v1901_v36 = vcombine.low %v1849_v32, %v1851_v34  ;;  %v1902_v37 = vcombine.low %v1890_v33, %v1892_v35  ;;  %v1853_v38 = vpop.f32.mrb[22].mxu0  ;;  %v1894_v40 = vpop.f32.mrb[22].mxu1  ;;  %3227 = vtanh.f32 %v4428_v31 }
 0x3c6   : > { %v1854_v41 = vpop.f32.mrb[23].mxu0  ;;  %v1895_v42 = vpop.f32.mrb[23].mxu1 }
 0x3c7   : > { %v1903_v44 = vrot.slane %v1901_v36, 6  ;;  %v1905_v45 = vrot.slane %v1901_v36, 7  ;;  %v1904_v48 = vrot.slane %v1902_v37, 6  ;;  %v1906_v51 = vrot.slane %v1902_v37, 7 }
 0x3c9   : > { %v1911_v7 = vadd.f32 %v1903_v44, %v4071_v60  ;;  %v1913_v50 = vadd.f32 %v1905_v45, %v4929_v49  ;;  %v1912_v3 = vadd.f32 %v1904_v48, %v4075_v10  ;;  %v1914_v24 = vadd.f32 %v1906_v51, %v4930_v23 }
 0x3cb   : > { %v2842_v52 = vmul.f32 -1.442695, %v1911_v7  ;;  %v2843_v54 = vmul.f32 -1.442695, %v1913_v50  ;;  %v1929_v55 = vrot.slane %v1911_v7, 4  ;;  %v1930_v57 = vrot.slane %v1913_v50, 4 }
 0x3cc   : > { %v1949_v27 = vrot.slane %v1912_v3, 4  ;;  %v1950_v29 = vrot.slane %v1914_v24, 4 }
 0x3cd   : > { %3229 = vpow2.f32 %v2842_v52  ;;  %v2844_v1 = vmul.f32 -1.442695, %v1929_v55  ;;  %v2845_v58 = vmul.f32 -1.442695, %v1930_v57  ;;  %v1967_v55 = vrot.slane %v4223_v12, 7 }
 0x3ce   : > { %3231 = vpow2.f32 %v2843_v54  ;;  %v2846_v32 = vmul.f32 -1.442695, %v1949_v27  ;;  %v2847_v34 = vmul.f32 -1.442695, %v1950_v29 }
 0x3cf   : > { %v3228_v26 = vpop.eup %3227  ;;  %3233 = vpow2.f32 %v2844_v1 }
 0x3d0   : > { %3235 = vpow2.f32 %v2845_v58  ;;  %v1804_v28 = vmul.f32 %v3228_v26, %v3226_v25  ;;  %v1968_v58 = vrot.slane %v4221_v9, 7 }
 0x3d1   : > { %3237 = vtanh.f32 %v1912_v3 }
 0x3d2   : > { %v1995_v30 = vrot.slane %v1804_v28, 6  ;;  %3239 = vtanh.f32 %v1914_v24 }
 0x3d3   : > { %3241 = vpow2.f32 %v2846_v32 }
 0x3d4   : > { %v1998_v33 = vpack.c.bf16 %v1995_v30, %v1995_v30  ;;  %3243 = vpow2.f32 %v2847_v34 }
 0x3d6   : > { %v2002_v35 = vrot.slane %v1998_v33, 1 }
 0x3d7   : > { %v3230_v36 = vpop.eup %3229 }
 0x3d8   : > { %v3232_v37 = vpop.eup %3231  ;;  %v1921_v38 = vadd.f32 1.0, %v3230_v36  ;;  %2037 = vmatprep.mubr.bf16.mxu0 %v2002_v35  ;;  %2078 = vmatprep.mubr.bf16.mxu1 %v2002_v35  ;;  %v4931_v36 = vld [vmem:[#allocation73_spill] sm:$0xff] }
 0x3d9   : > { %v3234_v40 = vpop.eup %3233  ;;  %v1922_v41 = vadd.f32 1.0, %v3232_v37 }
 0x3da   : > { %v3236_v42 = vpop.eup %3235  ;;  %3245 = vrcp.f32 %v1921_v38  ;;  %v1939_v44 = vadd.f32 1.0, %v3234_v40 }
 0x3db   : > { %3247 = vrcp.f32 %v1922_v41  ;;  %v1940_v45 = vadd.f32 1.0, %v3236_v42  ;;  %v3238_v48 = vpop.eup %3237 }
 0x3dc   : > { %3249 = vrcp.f32 %v1939_v44  ;;  %v3240_v7 = vpop.eup %3239 }
 0x3dd   : > { %3251 = vrcp.f32 %v1940_v45  ;;  %v3242_v50 = vpop.eup %3241 }
 0x3de   : > { %v3244_v51 = vpop.eup %3243  ;;  %v1959_v57 = vadd.f32 1.0, %v3242_v50 }
 0x3df   : > { %v1960_v24 = vadd.f32 1.0, %v3244_v51 }
 0x3e0   : > { %3253 = vrcp.f32 %v1959_v57  ;;  %v4949_v57 = vld [vmem:[#allocation41_spill] sm:$0xff] }
 0x3e1   : > { %3255 = vrcp.f32 %v1960_v24  ;;  %v4953_v24 = vld [vmem:[#allocation45_spill] sm:$0xff] }
 0x3e4   : > { %v3246_v52 = vpop.eup %3245 }
 0x3e5   : > { %v3248_v54 = vpop.eup %3247  ;;  %v1973_v3 = vmul.f32 %v3246_v52, %v3238_v48 }
 0x3e6   : > { %v3250_v1 = vpop.eup %3249  ;;  %v1974_v25 = vmul.f32 %v3248_v54, %v3240_v7  ;;  %v4947_v54 = vld [vmem:[#allocation39_spill] sm:$0xff] }
 0x3e7   : > { %v3252_v26 = vpop.eup %3251  ;;  %v1971_v27 = vmul.f32 %v3250_v1, %v1967_v55  ;;  %v4948_v55 = vld [vmem:[#allocation40_spill] sm:$0xff]  ;;  %v4951_v1 = vld [vmem:[#allocation43_spill] sm:$0xff] }
 0x3e8   : > { %v1972_v28 = vmul.f32 %v3252_v26, %v1968_v58  ;;  %v4952_v58 = vld [vmem:[#allocation44_spill] sm:$0xff]  ;;  %v4955_v26 = vld [vmem:[#allocation47_spill] sm:$0xff] }
 0x3e9   : > { %v4437_v29 = vadd.f32 %v1973_v3, %v1971_v27  ;;  %v4950_v3 = vld [vmem:[#allocation42_spill] sm:$0xff]  ;;  %v3374_v27 = vld [vmem:[#allocation10 + $0x8c] ss:$16 sps:$4 sm:$0xff]  }
 0x3ea   : > { %v4439_v30 = vadd.f32 %v1974_v25, %v1972_v28  ;;  %v3254_v12 = vpop.eup %3253  ;;  %v4954_v25 = vld [vmem:[#allocation46_spill] sm:$0xff] }
 0x3eb   : > { %3257 = vtanh.f32 %v4437_v29  ;;  %v3256_v32 = vpop.eup %3255  ;;  %v3375_v28 = vld [vmem:[#allocation10 + $0x80] ss:$16 sps:$4 sm:$0xff]  }
 0x3ec   : > { %3259 = vtanh.f32 %v4439_v30 }
 0x3f5   : > { %v3258_v33 = vpop.eup %3257 }
 0x3f6   : > { %v3260_v34 = vpop.eup %3259  ;;  %v1979_v9 = vmul.f32 %v3258_v33, %v3254_v12  ;;  %v3376_v12 = vld [vmem:[#allocation10 + $0x88] ss:$16 sps:$4 sm:$0xff]  }
 0x3f7   : > { %v1980_v35 = vmul.f32 %v3260_v34, %v3256_v32  ;;  %v3377_v32 = vld [vmem:[#allocation10 + $0xa4] ss:$16 sps:$4 sm:$0xff]   ;;  %v3384_v33 = vld [vmem:[#allocation10 + $0xc8] ss:$16 sps:$4 sm:$0xff]  }
 0x3f8   : > { %v1986_v37 = vrot.slane %v1979_v9, %v4931_v36  ;;  %v2111_v38 = vpack.c.bf16 %v1979_v9, %v1979_v9  ;;  %v3385_v34 = vld [vmem:[#allocation10 + $0xe4] ss:$16 sps:$4 sm:$0xff]   ;;  %v3386_v9 = vld [vmem:[#allocation10 + $0xec] ss:$16 sps:$4 sm:$0xff]  }
 0x3f9   : > { %v1990_v40 = vrot.slane %v1980_v35, %v4931_v36  ;;  %v2112_v41 = vpack.c.bf16 %v1980_v35, %v1980_v35  ;;  %v3387_v35 = vld [vmem:[#allocation10 + $0xe0] ss:$16 sps:$4 sm:$0xff]   ;;  %v3388_v36 = vld [vmem:[#allocation10 + $0xe8] ss:$16 sps:$4 sm:$0xff]  }
 0x3fa   : > { %v2115_v42 = vunpack.c.l.b16 %v2111_v38  ;;  %v3390_v38 = vld [vmem:[#allocation10 + $0x10c] ss:$16 sps:$4 sm:$0xff]  }
 0x3fb   : > { %v1992_v44 = vsel %vm1991_vm3, %v1990_v40, %v1986_v37  ;;  %v2116_v45 = vunpack.c.l.b16 %v2112_v41  ;;  %v3389_v37 = vld [vmem:[#allocation10 + $0x104] ss:$16 sps:$4 sm:$0xff]   ;;  %v3391_v40 = vld [vmem:[#allocation10 + $0x100] ss:$16 sps:$4 sm:$0xff]   ;;  %v3392_v41 = vld [vmem:[#allocation10 + $0x108] ss:$16 sps:$4 sm:$0xff]  }
 0x3fc   : > { %v1997_v48 = vpack.c.bf16 %v1992_v44, %v1992_v44  ;;  %v2117_v7 = vrot.slane %v2115_v42, 2  ;;  %v3393_v42 = vld [vmem:[#allocation10 + $0x124] ss:$16 sps:$4 sm:$0xff]   ;;  %v3394_v44 = vld [vmem:[#allocation10 + $0x12c] ss:$16 sps:$4 sm:$0xff]  }
 0x3fd   : > { %v2118_v50 = vrot.slane %v2116_v45, 1  ;;  %v3395_v45 = vld [vmem:[#allocation10 + $0x120] ss:$16 sps:$4 sm:$0xff]  }
 0x3fe   : > { %v2001_v51 = vrot.slane %v1997_v48, 1  ;;  %v3396_v48 = vld [vmem:[#allocation10 + $0x128] ss:$16 sps:$4 sm:$0xff]  }
 0x3ff   : > { %v2119_v52 = vsel %vm996_vm1, %v2118_v50, %v2117_v7  ;;  %v3397_v7 = vld [vmem:[#allocation10 + $0x144] ss:$16 sps:$4 sm:$0xff]   ;;  %v3398_v50 = vld [vmem:[#allocation10 + $0x14c] ss:$16 sps:$4 sm:$0xff]  }
 0x400   : > { %2038 = vmatmul.mubr.bf16.vlgmr.msra.gmra.mrb[24].mxu0 %v2001_v51  ;;  %2079 = vmatmul.mubr.bf16.vlgmr.msra.gmra.mrb[24].mxu1 %v2001_v51  ;;  %v3399_v51 = vld [vmem:[#allocation10 + $0x140] ss:$16 sps:$4 sm:$0xff]  }
 0x401   : > { %2123 = vmatpush1.bf16.msra.mxu0 %v4232_v22  ;;  %2164 = vmatpush1.bf16.msra.mxu1 %v4235_v18  ;;  %v4933_v22 = vld [vmem:[#allocation25_spill] sm:$0xff]  ;;  %v4934_v18 = vld [vmem:[#allocation26_spill] sm:$0xff] }
 0x402   : > { %2124 = vmatprep.subr.bf16.mxu0 %v4238_v21  ;;  %2165 = vmatprep.subr.bf16.mxu1 %v4241_v11  ;;  %v4935_v21 = vld [vmem:[#allocation27_spill] sm:$0xff]  ;;  %v4936_v11 = vld [vmem:[#allocation28_spill] sm:$0xff] }
 0x403   : > { %2154 = vmatprep.mubr.bf16.mxu0 %v4823_v13  ;;  %2195 = vmatprep.mubr.bf16.mxu1 %v4823_v13  ;;  %v4932_v13 = vld [vmem:[#allocation24_spill] sm:$0xff] }
 0x405   : > { %2125 = vmatpush1.bf16.msra.mxu0 %v4246_v2  ;;  %2166 = vmatpush1.bf16.msra.mxu1 %v4249_v8  ;;  %v4937_v2 = vld [vmem:[#allocation29_spill] sm:$0xff]  ;;  %v4938_v8 = vld [vmem:[#allocation30_spill] sm:$0xff] }
 0x406   : > { %2126 = vmatprep.subr.bf16.mxu0 %v4252_v61  ;;  %2167 = vmatprep.subr.bf16.mxu1 %v4255_v16  ;;  %v4939_v61 = vld [vmem:[#allocation31_spill] sm:$0xff]  ;;  %v4940_v16 = vld [vmem:[#allocation32_spill] sm:$0xff] }
 0x409   : > { %2127 = vmatpush1.bf16.msra.mxu0 %v4258_v5  ;;  %2168 = vmatpush1.bf16.msra.mxu1 %v4261_v17  ;;  %v4941_v5 = vld [vmem:[#allocation33_spill] sm:$0xff]  ;;  %v4942_v17 = vld [vmem:[#allocation34_spill] sm:$0xff] }
 0x40a   : > { %2128 = vmatprep.subr.bf16.mxu0 %v4264_v62  ;;  %2169 = vmatprep.subr.bf16.mxu1 %v4267_v19  ;;  %v4943_v62 = vld [vmem:[#allocation35_spill] sm:$0xff]  ;;  %v4944_v19 = vld [vmem:[#allocation36_spill] sm:$0xff] }
 0x40d   : > { %2129 = vmatpush1.bf16.msra.mxu0 %v4270_v63  ;;  %2170 = vmatpush1.bf16.msra.mxu1 %v4273_v4  ;;  %v4945_v63 = vld [vmem:[#allocation37_spill] sm:$0xff]  ;;  %v4946_v4 = vld [vmem:[#allocation38_spill] sm:$0xff] }
 0x40e   : > { %2130 = vmatprep.subr.bf16.mxu0 %v4276_v46  ;;  %2171 = vmatprep.subr.bf16.mxu1 %v4932_v13  ;;  %v2120_v46 = vpack.c.b16 %v2119_v52, %v2119_v52  ;;  %v3400_v52 = vld [vmem:[#allocation10 + $0x148] ss:$16 sps:$4 sm:$0xff]   ;;  %v3401_v13 = vld [vmem:[#allocation10 + $0x164] ss:$16 sps:$4 sm:$0xff]  }
 0x411   : > { %2131 = vmatpush1.bf16.msra.mxu0 %v4933_v22  ;;  %2172 = vmatpush1.bf16.msra.mxu1 %v4934_v18  ;;  %v3402_v22 = vld [vmem:[#allocation10 + $0x16c] ss:$16 sps:$4 sm:$0xff]   ;;  %v3403_v18 = vld [vmem:[#allocation10 + $0x160] ss:$16 sps:$4 sm:$0xff]  }
 0x412   : > { %2132 = vmatprep.subr.bf16.mxu0 %v4935_v21  ;;  %2173 = vmatprep.subr.bf16.mxu1 %v4936_v11  ;;  %v3404_v21 = vld [vmem:[#allocation10 + $0x168] ss:$16 sps:$4 sm:$0xff]   ;;  %v3405_v11 = vld [vmem:[#allocation10 + $0x184] ss:$16 sps:$4 sm:$0xff]  }
 0x415   : > { %2133 = vmatpush1.bf16.msra.mxu0 %v4937_v2  ;;  %2174 = vmatpush1.bf16.msra.mxu1 %v4938_v8  ;;  %v3406_v2 = vld [vmem:[#allocation10 + $0x18c] ss:$16 sps:$4 sm:$0xff]   ;;  %v3407_v8 = vld [vmem:[#allocation10 + $0x180] ss:$16 sps:$4 sm:$0xff]  }
 0x416   : > { %2134 = vmatprep.subr.bf16.mxu0 %v4939_v61  ;;  %2175 = vmatprep.subr.bf16.mxu1 %v4940_v16  ;;  %v3408_v61 = vld [vmem:[#allocation10 + $0x188] ss:$16 sps:$4 sm:$0xff]   ;;  %v3409_v16 = vld [vmem:[#allocation10 + $0x1a4] ss:$16 sps:$4 sm:$0xff]  }
 0x419   : > { %2135 = vmatpush1.bf16.msra.mxu0 %v4941_v5  ;;  %2176 = vmatpush1.bf16.msra.mxu1 %v4942_v17  ;;  %v3410_v5 = vld [vmem:[#allocation10 + $0x1ac] ss:$16 sps:$4 sm:$0xff]   ;;  %v3411_v17 = vld [vmem:[#allocation10 + $0x1a0] ss:$16 sps:$4 sm:$0xff]  }
 0x41a   : > { %2136 = vmatprep.subr.bf16.mxu0 %v4943_v62  ;;  %2177 = vmatprep.subr.bf16.mxu1 %v4944_v19  ;;  %v3412_v62 = vld [vmem:[#allocation10 + $0x1a8] ss:$16 sps:$4 sm:$0xff]   ;;  %v3413_v19 = vld [vmem:[#allocation10 + $0x1c4] ss:$16 sps:$4 sm:$0xff]  }
 0x41d   : > { %2137 = vmatpush1.bf16.msra.mxu0 %v4945_v63  ;;  %2178 = vmatpush1.bf16.msra.mxu1 %v4946_v4  ;;  %v3414_v63 = vld [vmem:[#allocation10 + $0x1cc] ss:$16 sps:$4 sm:$0xff]   ;;  %v3415_v4 = vld [vmem:[#allocation10 + $0x1c0] ss:$16 sps:$4 sm:$0xff]  }
 0x41e   : > { %2324 = vmatprep.subr.bf16.mxu0 %v4947_v54  ;;  %2365 = vmatprep.subr.bf16.mxu1 %v4329_v6  ;;  %v3373_v6 = vld [vmem:[#allocation10 + $0x84] ss:$16 sps:$4 sm:$0xff]  }
 0x41f   : > { %v3417_v54 = vld [vmem:[#allocation10 + $0x1e4] ss:$16 sps:$4 sm:$0xff]  }
 0x420   : > { %2155 = vmatmul.mubr.bf16.vlgmr.msra.gmra.mrb[28].mxu0 %v2120_v46  ;;  %2196 = vmatmul.mubr.bf16.vlgmr.msra.gmra.mrb[28].mxu1 %v2120_v46  ;;  %v3416_v46 = vld [vmem:[#allocation10 + $0x1c8] ss:$16 sps:$4 sm:$0xff]  }
 0x421   : > { %2325 = vmatpush1.bf16.msra.mxu0 %v4948_v55  ;;  %2366 = vmatpush1.bf16.msra.mxu1 %v4949_v57  ;;  %v3418_v55 = vld [vmem:[#allocation10 + $0x1ec] ss:$16 sps:$4 sm:$0xff]   ;;  %v3419_v57 = vld [vmem:[#allocation10 + $0x1e0] ss:$16 sps:$4 sm:$0xff]  }
 0x422   : > { %2326 = vmatprep.subr.bf16.mxu0 %v4950_v3  ;;  %2367 = vmatprep.subr.bf16.mxu1 %v4951_v1  ;;  %v3420_v3 = vld [vmem:[#allocation10 + $0x1e8] ss:$16 sps:$4 sm:$0xff]  }
 0x425   : > { %2327 = vmatpush1.bf16.msra.mxu0 %v4952_v58  ;;  %2368 = vmatpush1.bf16.msra.mxu1 %v4953_v24 }
 0x426   : > { %2328 = vmatprep.subr.bf16.mxu0 %v4954_v25  ;;  %2369 = vmatprep.subr.bf16.mxu1 %v4955_v26 }
 0x429   : > { %2329 = vmatpush1.bf16.msra.mxu0 %v4356_v47  ;;  %2370 = vmatpush1.bf16.msra.mxu1 %v4359_v14  ;;  %v3378_v47 = vld [vmem:[#allocation10 + $0xac] ss:$16 sps:$4 sm:$0xff]   ;;  %v3379_v14 = vld [vmem:[#allocation10 + $0xa0] ss:$16 sps:$4 sm:$0xff]  }
 0x42a   : > { %2330 = vmatprep.subr.bf16.mxu0 %v4362_v15  ;;  %2371 = vmatprep.subr.bf16.mxu1 %v4365_v0  ;;  %v3380_v15 = vld [vmem:[#allocation10 + $0xa8] ss:$16 sps:$4 sm:$0xff]   ;;  %v3381_v0 = vld [vmem:[#allocation10 + $0xc4] ss:$16 sps:$4 sm:$0xff]  }
 0x42d   : > { %2331 = vmatpush1.bf16.msra.mxu0 %v4368_v59  ;;  %2372 = vmatpush1.bf16.msra.mxu1 %v4371_v20  ;;  %v3382_v59 = vld [vmem:[#allocation10 + $0xcc] ss:$16 sps:$4 sm:$0xff]   ;;  %v3383_v20 = vld [vmem:[#allocation10 + $0xc0] ss:$16 sps:$4 sm:$0xff]  }
 0x42e   : > { %2332 = vmatprep.subr.bf16.mxu0 %v3373_v6  ;;  %2373 = vmatprep.subr.bf16.mxu1 %v3374_v27 }
 0x431   : > { %2333 = vmatpush1.bf16.msra.mxu0 %v3375_v28  ;;  %2374 = vmatpush1.bf16.msra.mxu1 %v3376_v12 }
 0x432   : > { %2334 = vmatprep.subr.bf16.mxu0 %v3377_v32  ;;  %2375 = vmatprep.subr.bf16.mxu1 %v3378_v47 }
 0x435   : > { %2335 = vmatpush1.bf16.msra.mxu0 %v3379_v14  ;;  %2376 = vmatpush1.bf16.msra.mxu1 %v3380_v15 }
 0x436   : > { %2336 = vmatprep.subr.bf16.mxu0 %v3381_v0  ;;  %2377 = vmatprep.subr.bf16.mxu1 %v3382_v59 }
 0x439   : > { %2337 = vmatpush1.bf16.msra.mxu0 %v3383_v20  ;;  %2378 = vmatpush1.bf16.msra.mxu1 %v3384_v33 }
 0x43a   : > { %2338 = vmatprep.subr.bf16.mxu0 %v3385_v34  ;;  %2379 = vmatprep.subr.bf16.mxu1 %v3386_v9 }
 0x43d   : > { %2339 = vmatpush1.bf16.msra.mxu0 %v3387_v35  ;;  %2380 = vmatpush1.bf16.msra.mxu1 %v3388_v36 }
 0x43e   : > { %2340 = vmatprep.subr.bf16.mxu0 %v3389_v37  ;;  %2381 = vmatprep.subr.bf16.mxu1 %v3390_v38 }
 0x441   : > { %2341 = vmatpush1.bf16.msra.mxu0 %v3391_v40  ;;  %2382 = vmatpush1.bf16.msra.mxu1 %v3392_v41 }
 0x442   : > { %2342 = vmatprep.subr.bf16.mxu0 %v3393_v42  ;;  %2383 = vmatprep.subr.bf16.mxu1 %v3394_v44 }
 0x445   : > { %2343 = vmatpush1.bf16.msra.mxu0 %v3395_v45  ;;  %2384 = vmatpush1.bf16.msra.mxu1 %v3396_v48 }
 0x446   : > { %2344 = vmatprep.subr.bf16.mxu0 %v3397_v7  ;;  %2385 = vmatprep.subr.bf16.mxu1 %v3398_v50 }
 0x449   : > { %2345 = vmatpush1.bf16.msra.mxu0 %v3399_v51  ;;  %2386 = vmatpush1.bf16.msra.mxu1 %v3400_v52 }
 0x44a   : > { %2346 = vmatprep.subr.bf16.mxu0 %v3401_v13  ;;  %2387 = vmatprep.subr.bf16.mxu1 %v3402_v22 }
 0x44d   : > { %2347 = vmatpush1.bf16.msra.mxu0 %v3403_v18  ;;  %2388 = vmatpush1.bf16.msra.mxu1 %v3404_v21 }
 0x44e   : > { %2348 = vmatprep.subr.bf16.mxu0 %v3405_v11  ;;  %2389 = vmatprep.subr.bf16.mxu1 %v3406_v2 }
 0x451   : > { %2349 = vmatpush1.bf16.msra.mxu0 %v3407_v8  ;;  %2390 = vmatpush1.bf16.msra.mxu1 %v3408_v61 }
 0x452   : > { %2350 = vmatprep.subr.bf16.mxu0 %v3409_v16  ;;  %2391 = vmatprep.subr.bf16.mxu1 %v3410_v5 }
 0x455   : > { %2351 = vmatpush1.bf16.msra.mxu0 %v3411_v17  ;;  %2392 = vmatpush1.bf16.msra.mxu1 %v3412_v62 }
 0x456   : > { %2352 = vmatprep.subr.bf16.mxu0 %v3413_v19  ;;  %2393 = vmatprep.subr.bf16.mxu1 %v3414_v63 }
 0x459   : > { %2353 = vmatpush1.bf16.msra.mxu0 %v3415_v4  ;;  %2394 = vmatpush1.bf16.msra.mxu1 %v3416_v46 }
 0x45a   : > { %2354 = vmatprep.subr.bf16.mxu0 %v3417_v54  ;;  %2395 = vmatprep.subr.bf16.mxu1 %v3418_v55 }
 0x45d   : > { %2355 = vmatpush1.bf16.msra.mxu0 %v3419_v57  ;;  %2396 = vmatpush1.bf16.msra.mxu1 %v3420_v3 }
 0x4d3   : > { %v2039_v1 = vpop.f32.mrb[24].mxu0  ;;  %v2080_v58 = vpop.f32.mrb[24].mxu1 }
 0x4d4   : > { %v2040_v24 = vadd.f32 %v2039_v1, %v4925_v39  ;;  %v2041_v25 = vpop.f32.mrb[25].mxu0  ;;  %v2082_v26 = vpop.f32.mrb[25].mxu1  ;;  %v2081_v59 = vadd.f32 %v2080_v58, %v4928_v56 }
 0x4d5   : > { %v2042_v6 = vadd.f32 %v2041_v25, %v4926_v43  ;;  %v2043_v27 = vpop.f32.mrb[26].mxu0  ;;  %v2084_v28 = vpop.f32.mrb[26].mxu1  ;;  %v2083_v15 = vadd.f32 %v2082_v26, %v4927_v53 }
 0x4d6   : > { %v2848_v12 = vmul.f32 -1.442695, %v2040_v24  ;;  %v2044_v32 = vpop.f32.mrb[27].mxu0  ;;  %v2085_v47 = vpop.f32.mrb[27].mxu1 }
 0x4d7   : > { %v2849_v14 = vmul.f32 -1.442695, %v2042_v6  ;;  %v2850_v0 = vmul.f32 -1.442695, %v2083_v15 }
 0x4d8   : > { %3261 = vpow2.f32 %v2848_v12 }
 0x4d9   : > { %3263 = vpow2.f32 %v2849_v14 }
 0x4da   : > { %3265 = vpow2.f32 %v2850_v0 }
 0x4db   : > { %3267 = vtanh.f32 %v2081_v59 }
 0x4e2   : > { %v3262_v20 = vpop.eup %3261 }
 0x4e3   : > { %v3264_v33 = vpop.eup %3263  ;;  %v2090_v34 = vadd.f32 1.0, %v3262_v20 }
 0x4e4   : > { %v2096_v9 = vadd.f32 1.0, %v3264_v33  ;;  %v3266_v35 = vpop.eup %3265 }
 0x4e5   : > { %3269 = vrcp.f32 %v2090_v34  ;;  %v3268_v36 = vpop.eup %3267  ;;  %v2103_v41 = vadd.f32 1.0, %v3266_v35 }
 0x4e6   : > { %3271 = vrcp.f32 %v2096_v9 }
 0x4e7   : > { %3273 = vrcp.f32 %v2103_v41 }
 0x4ef   : > { %v3270_v37 = vpop.eup %3269 }
 0x4f0   : > { %v3272_v38 = vpop.eup %3271  ;;  %v2107_v40 = vmul.f32 %v3270_v37, %v3268_v36  ;;  %v2274_v37 = vrot.slane %v4437_v29, 7 }
 0x4f1   : > { %v2106_v42 = vmul.f32 %v3272_v38, %v4428_v31  ;;  %v3274_v55 = vpop.eup %3273 }
 0x4f3   : > { %v4499_v44 = vadd.f32 %v2107_v40, %v2106_v42  ;;  %v2156_v45 = vpop.f32.mrb[28].mxu0  ;;  %v2197_v48 = vpop.f32.mrb[28].mxu1  ;;  %v2275_v42 = vrot.slane %v4439_v30, 7 }
 0x4f4   : > { %v2158_v7 = vpop.f32.mrb[29].mxu0  ;;  %v2199_v50 = vpop.f32.mrb[29].mxu1 }
 0x4f5   : > { %3275 = vtanh.f32 %v4499_v44  ;;  %v2208_v51 = vcombine.low %v2156_v45, %v2158_v7  ;;  %v2209_v52 = vcombine.low %v2197_v48, %v2199_v50  ;;  %v2160_v13 = vpop.f32.mrb[30].mxu0  ;;  %v2201_v22 = vpop.f32.mrb[30].mxu1 }
 0x4f6   : > { %v2161_v18 = vpop.f32.mrb[31].mxu0  ;;  %v2202_v21 = vpop.f32.mrb[31].mxu1  ;;  %v4956_v22 = vld [vmem:[#allocation75_spill] sm:$0xff] }
 0x4f7   : > { %v2210_v11 = vrot.slane %v2208_v51, 5  ;;  %v2212_v2 = vrot.slane %v2208_v51, 6  ;;  %v2211_v8 = vrot.slane %v2209_v52, 5  ;;  %v2213_v16 = vrot.slane %v2209_v52, 6 }
 0x4f9   : > { %v2218_v31 = vadd.f32 %v2210_v11, %v4071_v60  ;;  %v2220_v61 = vadd.f32 %v2212_v2, %v4929_v49  ;;  %v2219_v63 = vadd.f32 %v2211_v8, %v4075_v10  ;;  %v2221_v54 = vadd.f32 %v2213_v16, %v4930_v23 }
 0x4fb   : > { %v2851_v5 = vmul.f32 -1.442695, %v2218_v31  ;;  %v2852_v17 = vmul.f32 -1.442695, %v2220_v61  ;;  %v2236_v62 = vrot.slane %v2218_v31, 4  ;;  %v2237_v19 = vrot.slane %v2220_v61, 4 }
 0x4fc   : > { %v2256_v60 = vrot.slane %v2219_v63, 4  ;;  %v2257_v49 = vrot.slane %v2221_v54, 4 }
 0x4fd   : > { %3277 = vpow2.f32 %v2851_v5  ;;  %v2853_v4 = vmul.f32 -1.442695, %v2236_v62  ;;  %v2854_v46 = vmul.f32 -1.442695, %v2237_v19 }
 0x4fe   : > { %3279 = vpow2.f32 %v2852_v17  ;;  %v2855_v58 = vmul.f32 -1.442695, %v2256_v60  ;;  %v2856_v25 = vmul.f32 -1.442695, %v2257_v49 }
 0x4ff   : > { %v3276_v57 = vpop.eup %3275  ;;  %3281 = vpow2.f32 %v2853_v4 }
 0x500   : > { %3283 = vpow2.f32 %v2854_v46  ;;  %v2110_v3 = vmul.f32 %v3276_v57, %v3274_v55 }
 0x501   : > { %3285 = vtanh.f32 %v2219_v63 }
 0x502   : > { %v2302_v1 = vrot.slane %v2110_v3, 5  ;;  %3287 = vtanh.f32 %v2221_v54 }
 0x503   : > { %3289 = vpow2.f32 %v2855_v58 }
 0x504   : > { %v2305_v24 = vpack.c.bf16 %v2302_v1, %v2302_v1  ;;  %3291 = vpow2.f32 %v2856_v25 }
 0x506   : > { %v2315_v26 = vshrl.u32 %v2305_v24, 16  ;;  %v2318_v10 = vshll.u32 %v2305_v24, 16 }
 0x507   : > { %v3278_v6 = vpop.eup %3277 }
 0x508   : > { %v3280_v27 = vpop.eup %3279  ;;  %v2228_v28 = vadd.f32 1.0, %v3278_v6  ;;  %v2317_v23 = vrot.slane %v2315_v26, 1  ;;  %v2320_v12 = vrot.slane %v2318_v10, 2 }
 0x509   : > { %v3282_v32 = vpop.eup %3281  ;;  %v2229_v47 = vadd.f32 1.0, %v3280_v27 }
 0x50a   : > { %v3284_v14 = vpop.eup %3283  ;;  %3293 = vrcp.f32 %v2228_v28  ;;  %v2246_v15 = vadd.f32 1.0, %v3282_v32  ;;  %v2321_v0 = vor.u32 %v2320_v12, %v2317_v23 }
 0x50b   : > { %3295 = vrcp.f32 %v2229_v47  ;;  %v2247_v59 = vadd.f32 1.0, %v3284_v14  ;;  %v3286_v20 = vpop.eup %3285 }
 0x50c   : > { %3297 = vrcp.f32 %v2246_v15  ;;  %2356 = vmatprep.mubr.bf16.mxu0 %v2321_v0  ;;  %2397 = vmatprep.mubr.bf16.mxu1 %v2321_v0  ;;  %v3288_v33 = vpop.eup %3287 }
 0x50d   : > { %3299 = vrcp.f32 %v2247_v59  ;;  %v3290_v34 = vpop.eup %3289 }
 0x50e   : > { %v3292_v9 = vpop.eup %3291  ;;  %v2266_v38 = vadd.f32 1.0, %v3290_v34 }
 0x50f   : > { %v2267_v45 = vadd.f32 1.0, %v3292_v9 }
 0x510   : > { %3301 = vrcp.f32 %v2266_v38  ;;  %v3424_v38 = vld [vmem:[%s4594_s6 + $0x18] sm:$0xff] (!%p2860_p0)  }
 0x511   : > { %3303 = vrcp.f32 %v2267_v45  ;;  %v3428_v45 = vld [vmem:[%s4594_s6 + $0x38] sm:$0xff] (!%p2860_p0)  }
 0x514   : > { %v3294_v35 = vpop.eup %3293 }
 0x515   : > { %v3296_v36 = vpop.eup %3295  ;;  %v2280_v40 = vmul.f32 %v3294_v35, %v3286_v20  ;;  %v3421_v35 = vld [vmem:[%s4594_s6] sm:$0xff] (!%p2860_p0)  }
 0x516   : > { %v3298_v41 = vpop.eup %3297  ;;  %v2281_v48 = vmul.f32 %v3296_v36, %v3288_v33  ;;  %v3555_v36 = vmov (!%p2860_p0), 0.0  }
 0x517   : > { %v3300_v7 = vpop.eup %3299  ;;  %v2278_v50 = vmul.f32 %v3298_v41, %v2274_v37  ;;  %2890 = vmatprep.subr.bf16.mxu0 (!%p2860_p0), %v3555_v36  ;;  %2910 = vmatprep.subr.bf16.mxu1 (!%p2860_p0), %v3555_v36  ;;  %v3423_v37 = vld [vmem:[%s4594_s6 + $0x10] sm:$0xff] (!%p2860_p0)   ;;  %v3426_v41 = vld [vmem:[%s4594_s6 + $0x28] sm:$0xff] (!%p2860_p0)  }
 0x518   : > { %v2279_v51 = vmul.f32 %v3300_v7, %v2275_v42  ;;  %v3427_v42 = vld [vmem:[%s4594_s6 + $0x30] sm:$0xff] (!%p2860_p0)   ;;  %v3429_v7 = vld [vmem:[%s4596_s8] sm:$0xff] (!%p2860_p0)  }
 0x519   : > { %v2282_v52 = vadd.f32 %v2280_v40, %v2278_v50  ;;  %v3425_v40 = vld [vmem:[%s4594_s6 + $0x20] sm:$0xff] (!%p2860_p0)   ;;  %v3430_v50 = vld [vmem:[%s4596_s8 + $0x8] sm:$0xff] (!%p2860_p0)  }
 0x51a   : > { %v2283_v13 = vadd.f32 %v2281_v48, %v2279_v51  ;;  %v3302_v11 = vpop.eup %3301  ;;  %v2861_v51 = vld [vmem:[%s4595_s7] ss:$0 sm:$0xff] (!%p2860_p0) }
 0x51b   : > { %3305 = vtanh.f32 %v2282_v52  ;;  %v2436_v18 = vrot.slane %v2282_v52, %v4956_v22  ;;  %v3304_v30 = vpop.eup %3303 }
 0x51c   : > { %3307 = vtanh.f32 %v2283_v13  ;;  %v2440_v29 = vrot.slane %v2283_v13, %v4956_v22 }
 0x51e   : > { %v2441_v21 = vsel %vm2298_vm4, %v2440_v29, %v2436_v18 }
 0x51f   : > { %2443 = vst [vmem:[#allocation3 - $0x3] sm:$0x18] %v2441_v21 }
 0x525   : > { %v3306_v2 = vpop.eup %3305 }
 0x526   : > { %v3308_v8 = vpop.eup %3307  ;;  %v2286_v31 = vmul.f32 %v3306_v2, %v3302_v11 }
 0x527   : > { %v2287_v61 = vmul.f32 %v3308_v8, %v3304_v30  ;;  %v2870_v30 = vld [vmem:[%s4597_s9] ss:$0 sm:$0xff] (!%p2860_p0) }
 0x528   : > { %v2293_v16 = vrot.slane %v2286_v31, %v4956_v22 }
 0x529   : > { %v2297_v5 = vrot.slane %v2287_v61, %v4956_v22 }
 0x52b   : > { %v2299_v17 = vsel %vm2298_vm4, %v2297_v5, %v2293_v16 }
 0x52c   : > { %v2304_v62 = vpack.c.bf16 %v2299_v17, %v2299_v17  ;;  %2430 = vst [vmem:[#allocation2 - $0x3] sm:$0x18] %v2299_v17 }
 0x52e   : > { %v2307_v19 = vshrl.u32 %v2304_v62, 16  ;;  %v2310_v63 = vshll.u32 %v2304_v62, 16 }
 0x530   : > { %v2309_v4 = vrot.slane %v2307_v19, 1  ;;  %v2312_v46 = vrot.slane %v2310_v63, 2 }
 0x532   : > { %v2313_v54 = vor.u32 %v2312_v46, %v2309_v4 }
 0x534   : > { %2357 = vmatmul.mubr.bf16.vlgmr.msra.gmra.mrb[32].mxu0 %v2313_v54  ;;  %2398 = vmatmul.mubr.bf16.vlgmr.msra.gmra.mrb[32].mxu1 %v2313_v54 }
 0x535   : > { %2891 = vmatpush3.bf16.msra.mxu0 (!%p2860_p0), %v3421_v35  ;;  %2906 = vmatprep.mubr.msk.bf16.mxu0 (!%p2860_p0), %vm3556_vm5, %v3555_v36 }
 0x536   : > { %2892 = vmatprep.subr.bf16.mxu0 (!%p2860_p0), %v3555_v36  ;;  %2914 = vmatprep.mubr.msk.bf16.mxu1 (!%p2860_p0), %vm3556_vm5, %v3555_v36 }
 0x537   : > { %2911 = vmatpush3.bf16.msra.mxu1 (!%p2860_p0), %v3429_v7 }
 0x538   : > { %2912 = vmatprep.subr.bf16.mxu1 (!%p2860_p0), %v3555_v36 }
 0x53b   : > { %2913 = vmatpush3.bf16.msra.mxu1 (!%p2860_p0), %v3430_v50 }
 0x607   : > { %v2358_v55 = vpop.f32.mrb[32].mxu0  ;;  %v2399_v57 = vpop.f32.mrb[32].mxu1 }
 0x608   : > { %v2359_v60 = vadd.f32 %v2358_v55, %v4925_v39  ;;  %v2360_v3 = vpop.f32.mrb[33].mxu0  ;;  %v2401_v49 = vpop.f32.mrb[33].mxu1  ;;  %v2400_v23 = vadd.f32 %v2399_v57, %v4928_v56 }
 0x609   : > { %v2361_v1 = vadd.f32 %v2360_v3, %v4926_v43  ;;  %v2362_v58 = vpop.f32.mrb[34].mxu0  ;;  %v2403_v24 = vpop.f32.mrb[34].mxu1  ;;  %v2402_v27 = vadd.f32 %v2401_v49, %v4927_v53 }
 0x60a   : > { %v2857_v25 = vmul.f32 -1.442695, %v2359_v60  ;;  %v2363_v26 = vpop.f32.mrb[35].mxu0  ;;  %v2404_v10 = vpop.f32.mrb[35].mxu1 }
 0x60b   : > { %v2858_v6 = vmul.f32 -1.442695, %v2361_v1  ;;  %v2859_v28 = vmul.f32 -1.442695, %v2402_v27 }
 0x60c   : > { %3309 = vpow2.f32 %v2857_v25 }
 0x60d   : > { %3311 = vpow2.f32 %v2858_v6 }
 0x60e   : > { %3313 = vpow2.f32 %v2859_v28 }
 0x60f   : > { %3315 = vtanh.f32 %v2400_v23 }
 0x616   : > { %v3310_v12 = vpop.eup %3309 }
 0x617   : > { %v3312_v32 = vpop.eup %3311  ;;  %v2409_v39 = vadd.f32 1.0, %v3310_v12 }
 0x618   : > { %v2415_v47 = vadd.f32 1.0, %v3312_v32  ;;  %v3314_v43 = vpop.eup %3313 }
 0x619   : > { %3317 = vrcp.f32 %v2409_v39  ;;  %v3316_v14 = vpop.eup %3315  ;;  %v2422_v20 = vadd.f32 1.0, %v3314_v43 }
 0x61a   : > { %3319 = vrcp.f32 %v2415_v47 }
 0x61b   : > { %3321 = vrcp.f32 %v2422_v20 }
 0x623   : > { %v3318_v15 = vpop.eup %3317 }
 0x624   : > { %v3320_v0 = vpop.eup %3319  ;;  %v2426_v59 = vmul.f32 %v3318_v15, %v3316_v14 }
 0x625   : > { %v2425_v33 = vmul.f32 %v3320_v0, %v4499_v44  ;;  %v3322_v56 = vpop.eup %3321  ;;  %v3422_v44 = vld [vmem:[%s4594_s6 + $0x8] sm:$0xff] (!%p2860_p0)  }
 0x626   : > { %2893 = vmatpush3.bf16.msra.mxu0 (!%p2860_p0), %v3422_v44 }
 0x627   : > { %v2427_v53 = vadd.f32 %v2426_v59, %v2425_v33  ;;  %2894 = vmatprep.subr.bf16.mxu0 (!%p2860_p0), %v3555_v36 }
 0x629   : > { %3323 = vtanh.f32 %v2427_v53  ;;  %2445 = vst [vmem:[#allocation5] sm:$0x3] %v2427_v53 }
 0x62a   : > { %2895 = vmatpush3.bf16.msra.mxu0 (!%p2860_p0), %v3423_v37 }
 0x62b   : > { %2896 = vmatprep.subr.bf16.mxu0 (!%p2860_p0), %v3555_v36 }
 0x62e   : > { %2897 = vmatpush3.bf16.msra.mxu0 (!%p2860_p0), %v3424_v38 }
 0x62f   : > { %2898 = vmatprep.subr.bf16.mxu0 (!%p2860_p0), %v3555_v36 }
 0x630   : > { %2449 = sbr.rel (%p2860_p0) target bundleno = 2034 (0x7f2), region = 117 }
 0x632   : > { %2899 = vmatpush3.bf16.msra.mxu0 (!%p2860_p0), %v3425_v40 }
 0x633   : > { %v3324_v34 = vpop.eup %3323  ;;  %2900 = vmatprep.subr.bf16.mxu0 (!%p2860_p0), %v3555_v36 }
 0x634   : > { %v2429_v9 = vmul.f32 %v3324_v34, %v3322_v56 }
 0x636   : > { %2444 = vst [vmem:[#allocation4] sm:$0x3] %v2429_v9  ;;  %2901 = vmatpush3.bf16.msra.mxu0 (!%p2860_p0), %v3426_v41  ;;  %v2450_v48 = vpack.c.bf16 (!%p2860_p0), %v2429_v9, %v2429_v9 }
 0x637   : > { %2902 = vmatprep.subr.bf16.mxu0 %v3555_v36 }
 0x63a   : > { %2903 = vmatpush3.bf16.msra.mxu0 %v3427_v42 }
 0x63b   : > { %2904 = vmatprep.subr.bf16.mxu0 %v3555_v36 }
 0x63e   : > { %2905 = vmatpush3.bf16.msra.mxu0 %v3428_v45 }
 0x641   : > { %2907 = vmatmul.mubr.bf16.vlgmr.msra.gmra.mrb[0].mxu0 %v2450_v48 }
 0x714   : > { %v2556_v52 = vpop.f32.mrb[0].mxu0 }
 0x715   : > { %v2557_v13 = vadd.f32 %v2861_v51, %v2556_v52  ;;  %v2908_v22 = vpop.f32.mrb[1].mxu0 }
 0x716   : > { %v2559_v18 = vpop.f32.mrb[2].mxu0 }
 0x717   : > { %v2562_v29 = vmax.f32 %v2557_v13, 0.0  ;;  %v2909_v21 = vpop.f32.mrb[3].mxu0 }
 0x719   : > { %v2563_v11 = vpack.c.bf16 %v2562_v29, %v2562_v29 }
 0x71b   : > { %2915 = vmatmul.mubr.msk.bf16.vlgmr.msra.gmra.mrb[0].mxu1 %vm507_vm0, %v2563_v11 }
 0x7ee   : > { %v2624_v2 = vpop.f32.mrb[0].mxu1 }
 0x7ef   : > { %v2625_v8 = vadd.f32 %v2870_v30, %v2624_v2  ;;  %v2916_v31 = vpop.f32.mrb[1].mxu1 }
 0x7f0   : > { %v2627_v61 = vpop.f32.mrb[2].mxu1 }
 0x7f1   : > { %2631 = vst.msk [vmem:[#allocation12] sm:$0x3] %vm2630_vm6, %v2625_v8  ;;  %v2917_v16 = vpop.f32.mrb[3].mxu1 }
 0x7f2 PF: > { %p2941_p1 = scmp.eq.s32.totalorder %s3629_s16, 1  ;;  %s3557_s29 = smov [#allocation12]  }
 0x7f3   : > { %s2639_s30 = sshll.u32 %s3557_s29, 4  ;;  %s2640_s30 = int_to_ptr.vmem [resolvable:$true] %s2639_s30 }
 0x7f4   : > { %s3487_s11 = scalar_lea.vmem %s2640_s30, 32  ;;  %p3494_p9 = scmp.lt.s32.totalorder %s2640_s30, %s2640_s30 }
 0x7f5   : > { %p3488_p2 = scmp.ne.s32.totalorder %s2640_s30, %s3487_s11  ;;  %p3495_p11 = scmp.lt.s32.totalorder %s3487_s11, %s3487_s11 }
 0x7f7   : > { %p3489_p3 = pnand %p3488_p2, %p2941_p1  ;;  %p3496_p4 = por %p3495_p11, %p3494_p9 }
 0x7f9   : > { %p3490_p5 = pneg %p3489_p3 }
 0x7fb   : > { %p3497_p10 = pnand %p3496_p4, %p3490_p5 }
 0x7fd   : > { %3500 = shalt.err (!%p3497_p10)
}
 0x7fe   : > { %s3501_s25 = scalar_lea.hbm %s4598_s10, 32 }
 0x7ff   : > { %p3502_p12 = scmp.ne.s32.totalorder %s4598_s10, %s3501_s25  ;;  %p3507_p8 = scmp.lt.u32.totalorder %s3501_s25, %s4598_s10 }
 0x801   : > { %p3503_p6 = pnand %p3502_p12, %p2941_p1 }
 0x803   : > { %p3504_p7 = pneg %p3503_p6 }
 0x805   : > { %p3509_p13 = pnand %p3507_p8, %p3504_p7 }
 0x807   : > { %3512 = shalt.err (!%p3509_p13)
}
 0x808   : > { %2927 = dma.vmem_to_hbm [thread:$0]  (%p2941_p1), %s2640_s30, 32, %s4598_s10, [#allocation9]  }
 0x809   : > { %3534 = dma.done.wait (%p2941_p1), [#allocation9], 32  }
 0x80a   : > { %3536 = vsyncadd (%p2941_p1), [#allocation9], 4294967264 }
 0x80b PF: > { %s4957_s15 = sld [smem:[#allocation16_spill]]  ;;  %s4958_s26 = sld [smem:[#allocation17_spill]] }
 0x80c   : > { %s4959_s13 = smov %s3543_s14 }
 0x811   : > { %p20_p0 = scmp.ge.s32.totalorder %s4957_s15, 4   ;;  %s4960_s14 = smov %s4958_s26 }
 0x813   :  { %22 = sbr.rel (!%p20_p0) target bundleno = 4 (0x4), region = 150 }
 0x81a   :  { %2652 = vsyncpa [#allocation8], 1 }
 0x81b   :  { %2654 = vsyncpa [#allocation8 + $0x1], 1 }
 0x81c   :  { %2655 = vsyncpa [#allocation11], 1 }
 0x81d   :  { %2656 = vsyncpa [#allocation9], 1 }
 0x81e   :  { %2658 = vsyncpa [#allocation9 + $0x1], 1 }

</bundles_post_ra>
